<compile_context>
chip_gen: v6e
topology: v6e:2x2x1
jax: 0.10.0
libtpu: 0.0.40
codegen_flags: <defaults>
</compile_context>

<pallas_src>
import functools

import jax
import jax.numpy as jnp
from jax import lax
from jax.experimental import pallas as pl
from jax.experimental.pallas import tpu as pltpu


_EPS = 1e-8


def _tile(n, pref):
    """Largest convenient tile: `pref` if it divides n, else the full dim."""
    return pref if n % pref == 0 else n


# ---------------------------------------------------------------------------
# Kernel bodies
# ---------------------------------------------------------------------------
def _matmul_scale_project_kernel(a_ref, b_ref, d_ref, w_ref, o_ref, acc_ref):
    """o = ((a @ b) / (d + eps)) @ w, accumulated over the last grid axis."""
    k = pl.program_id(2)

    @pl.when(k == 0)
    def _():
        acc_ref[...] = jnp.zeros_like(acc_ref)

    acc_ref[...] += jnp.dot(a_ref[...], b_ref[...],
                            preferred_element_type=jnp.float32)

    @pl.when(k == pl.num_programs(2) - 1)
    def _():
        scaled = acc_ref[...] / (d_ref[...] + _EPS)
        o_ref[...] = jnp.dot(scaled.astype(w_ref.dtype), w_ref[...],
                             preferred_element_type=jnp.float32)


def _user_feature_kernel(rel_ref, emb_ref, scale_ref, w_ref, o_ref, acc_ref):
    """o = (sum_r scale_r * (rel_r @ emb)) @ w, with (r, k) as reduction axes."""
    r = pl.program_id(1)
    k = pl.program_id(2)

    @pl.when(jnp.logical_and(r == 0, k == 0))
    def _():
        acc_ref[...] = jnp.zeros_like(acc_ref)

    part = jnp.dot(rel_ref[...], emb_ref[...],
                   preferred_element_type=jnp.float32)
    acc_ref[...] += scale_ref[...] * part

    @pl.when(jnp.logical_and(r == pl.num_programs(1) - 1,
                             k == pl.num_programs(2) - 1))
    def _():
        o_ref[...] = jnp.dot(acc_ref[...].astype(w_ref.dtype), w_ref[...],
                             preferred_element_type=jnp.float32)


def _atb_project_kernel(a_ref, b_ref, w_ref, o_ref, acc_ref):
    """o = (a^T @ b) @ w without materializing a^T in HBM."""
    k = pl.program_id(1)

    @pl.when(k == 0)
    def _():
        acc_ref[...] = jnp.zeros_like(acc_ref)

    acc_ref[...] += lax.dot_general(
        a_ref[...], b_ref[...],
        dimension_numbers=(((0,), (0,)), ((), ())),
        preferred_element_type=jnp.float32)

    @pl.when(k == pl.num_programs(1) - 1)
    def _():
        o_ref[...] = jnp.dot(acc_ref[...].astype(w_ref.dtype), w_ref[...],
                             preferred_element_type=jnp.float32)


def _scores_kernel(u1_ref, v1_ref, u2_ref, v2_ref, o_ref, acc_ref, *,
                   lamb_over_r):
    """scores = sum_f u1*v1 + (lamb/R) * sum_r sum_f u2_r*v2_r (broadcast in-kernel)."""
    r = pl.program_id(1)

    @pl.when(r == 0)
    def _():
        u1 = u1_ref[...]
        v1 = v1_ref[...]
        acc_ref[...] = jnp.sum(u1[:, None, :] * v1, axis=-1)

    u2 = u2_ref[...]
    v2 = v2_ref[...]
    acc_ref[...] += lamb_over_r * jnp.sum(u2[:, None, :] * v2, axis=-1)

    @pl.when(r == pl.num_programs(1) - 1)
    def _():
        o_ref[...] = acc_ref[...]


def _sumsq_kernel(x_ref, o_ref):
    i = pl.program_id(0)

    @pl.when(i == 0)
    def _():
        o_ref[...] = jnp.zeros_like(o_ref)

    x = x_ref[...].astype(jnp.float32)
    o_ref[...] = o_ref[...] + jnp.sum(x * x)


# ---------------------------------------------------------------------------
# pallas_call wrappers
# ---------------------------------------------------------------------------
def item_propagation(ig, item_emb, igd, wp, *, tm=128, tk=128):
    """(R, I, D):  ((ig_r @ E_i) / (deg_r + eps)) @ Wp_r  for every relation r."""
    R, I, _ = ig.shape
    D = item_emb.shape[1]
    tm = _tile(I, tm)
    tk = _tile(I, tk)
    return pl.pallas_call(
        _matmul_scale_project_kernel,
        out_shape=jax.ShapeDtypeStruct((R, I, D), jnp.float32),
        grid=(R, I // tm, I // tk),
        in_specs=[
            pl.BlockSpec((None, tm, tk), lambda r, i, k: (r, i, k)),
            pl.BlockSpec((tk, D), lambda r, i, k: (k, 0)),
            pl.BlockSpec((None, tm, 1), lambda r, i, k: (r, i, 0)),
            pl.BlockSpec((None, D, D), lambda r, i, k: (r, 0, 0)),
        ],
        out_specs=pl.BlockSpec((None, tm, D), lambda r, i, k: (r, i, 0)),
        scratch_shapes=[pltpu.VMEM((tm, D), jnp.float32)],
        compiler_params=pltpu.CompilerParams(
            dimension_semantics=("parallel", "parallel", "arbitrary")),
    )(ig, item_emb, igd, wp)


def user_item_projection(rel, item_prop_bf16, denom, wb, *, tm=128, tk=128):
    """(R, U, 2D):  ((rel_r @ item_prop_r) / (deg_r + eps)) @ Wb_r."""
    R, U, I = rel.shape
    F2 = item_prop_bf16.shape[-1]
    tm = _tile(U, tm)
    tk = _tile(I, tk)
    return pl.pallas_call(
        _matmul_scale_project_kernel,
        out_shape=jax.ShapeDtypeStruct((R, U, F2), jnp.float32),
        grid=(R, U // tm, I // tk),
        in_specs=[
            pl.BlockSpec((None, tm, tk), lambda r, i, k: (r, i, k)),
            pl.BlockSpec((None, tk, F2), lambda r, i, k: (r, k, 0)),
            pl.BlockSpec((None, tm, 1), lambda r, i, k: (r, i, 0)),
            pl.BlockSpec((None, F2, F2), lambda r, i, k: (r, 0, 0)),
        ],
        out_specs=pl.BlockSpec((None, tm, F2), lambda r, i, k: (r, i, 0)),
        scratch_shapes=[pltpu.VMEM((tm, F2), jnp.float32)],
        compiler_params=pltpu.CompilerParams(
            dimension_semantics=("parallel", "parallel", "arbitrary")),
    )(rel, item_prop_bf16, denom, wb)


def user_behavior_feature(rel, item_emb, scale, w, *, tm=128, tk=128):
    """(U, D):  (sum_r scale_r * (rel_r @ E_i)) @ W — R folded into the grid."""
    R, U, I = rel.shape
    D = item_emb.shape[1]
    tm = _tile(U, tm)
    tk = _tile(I, tk)
    return pl.pallas_call(
        _user_feature_kernel,
        out_shape=jax.ShapeDtypeStruct((U, D), jnp.float32),
        grid=(U // tm, R, I // tk),
        in_specs=[
            pl.BlockSpec((None, tm, tk), lambda i, r, k: (r, i, k)),
            pl.BlockSpec((tk, D), lambda i, r, k: (k, 0)),
            pl.BlockSpec((None, tm, 1), lambda i, r, k: (r, i, 0)),
            pl.BlockSpec((D, D), lambda i, r, k: (0, 0)),
        ],
        out_specs=pl.BlockSpec((tm, D), lambda i, r, k: (i, 0)),
        scratch_shapes=[pltpu.VMEM((tm, D), jnp.float32)],
        compiler_params=pltpu.CompilerParams(
            dimension_semantics=("parallel", "arbitrary", "arbitrary")),
    )(rel, item_emb, scale, w)


def item_cf_feature(train_matrix, user_emb, w, *, tn=128, tk=128):
    """(I, D):  (train_matrix^T @ E_u) @ W — transpose folded into dot_general."""
    U, I = train_matrix.shape
    D = user_emb.shape[1]
    tn = _tile(I, tn)
    tk = _tile(U, tk)
    return pl.pallas_call(
        _atb_project_kernel,
        out_shape=jax.ShapeDtypeStruct((I, D), jnp.float32),
        grid=(I // tn, U // tk),
        in_specs=[
            pl.BlockSpec((tk, tn), lambda i, k: (k, i)),
            pl.BlockSpec((tk, D), lambda i, k: (k, 0)),
            pl.BlockSpec((D, D), lambda i, k: (0, 0)),
        ],
        out_specs=pl.BlockSpec((tn, D), lambda i, k: (i, 0)),
        scratch_shapes=[pltpu.VMEM((tn, D), jnp.float32)],
        compiler_params=pltpu.CompilerParams(
            dimension_semantics=("parallel", "arbitrary")),
    )(train_matrix, user_emb, w)


def fused_scores(u1, v1, u2, v2, *, lamb, tb=128):
    """(B, K): score1 + lamb * mean_r score2_r; user rows broadcast in-kernel."""
    R, B, F2 = u2.shape
    K = v1.shape[1]
    tb = _tile(B, tb)
    kernel = functools.partial(_scores_kernel, lamb_over_r=lamb / R)
    return pl.pallas_call(
        kernel,
        out_shape=jax.ShapeDtypeStruct((B, K), jnp.float32),
        grid=(B // tb, R),
        in_specs=[
            pl.BlockSpec((tb, F2), lambda b, r: (b, 0)),
            pl.BlockSpec((tb, K, F2), lambda b, r: (b, 0, 0)),
            pl.BlockSpec((None, tb, F2), lambda b, r: (r, b, 0)),
            pl.BlockSpec((None, tb, K, F2), lambda b, r: (r, b, 0, 0)),
        ],
        out_specs=pl.BlockSpec((tb, K), lambda b, r: (b, 0)),
        scratch_shapes=[pltpu.VMEM((tb, K), jnp.float32)],
        compiler_params=pltpu.CompilerParams(
            dimension_semantics=("parallel", "arbitrary")),
    )(u1, v1, u2, v2)


def pallas_sumsq(x, *, tr=64):
    """Scalar sum of squares of a (rows, features) array, tiled over rows."""
    x2 = x.reshape(-1, x.shape[-1])
    M, N = x2.shape
    tr = _tile(M, tr)
    out = pl.pallas_call(
        _sumsq_kernel,
        out_shape=jax.ShapeDtypeStruct((1, 1), jnp.float32),
        grid=(M // tr,),
        in_specs=[pl.BlockSpec((tr, N), lambda i: (i, 0))],
        out_specs=pl.BlockSpec((1, 1), lambda i: (0, 0)),
        compiler_params=pltpu.CompilerParams(
            dimension_semantics=("arbitrary",)),
    )(x2)
    return out[0, 0]


# ---------------------------------------------------------------------------
# MBGCN forward: Pallas kernels + JAX glue for gathers / concats
# ---------------------------------------------------------------------------
@functools.partial(jax.jit, static_argnames=("lamb", "l2_norm"))
def mbgcn_forward(params, graphs, user, item, *, lamb, l2_norm):
    item_emb = params["item_embedding"]          # (I, D)      bf16
    user_emb = params["user_embedding"]          # (U, D)      bf16
    mgnn_weight = params["mgnn_weight"]          # (R,)        f32
    wp = params["item_propagate_W"]              # (R, D, D)   bf16
    wb = params["item_behavior_W"]               # (R, 2D, 2D) bf16
    w = params["W"]                              # (D, D)      bf16

    rel = graphs["relations"]                    # (R, U, I)   bf16
    ig = graphs["item_graphs"]                   # (R, I, I)   bf16
    igd = graphs["item_graph_degree"]            # (R, I, 1)   f32
    ubd = graphs["user_behavior_degree"]         # (U, R)      f32
    train_matrix = graphs["train_matrix"]        # (U, I)      bf16

    R = mgnn_weight.shape[0]
    U, D = user_emb.shape
    I = item_emb.shape[0]
    B, K = item.shape

    # behaviour weights: tiny (U, R) math -> plain JAX glue
    total_weight = jnp.sum(ubd * mgnn_weight[None, :], axis=1, keepdims=True)
    ubw = ubd * mgnn_weight[None, :] / (total_weight + _EPS)          # (U, R)
    uf_scale = (ubw / (ubd + _EPS)).T[:, :, None]                     # (R, U, 1)
    ubd_col = ubd.T[:, :, None]                                       # (R, U, 1)

    # ((item_graph_r @ E_i) / deg_r) @ Wp_r  (fused, R in grid)        (R, I, D)
    prop = item_propagation(ig, item_emb, igd, wp)
    item_prop = jnp.concatenate(
        [jnp.broadcast_to(item_emb.astype(jnp.float32)[None], (R, I, D)), prop],
        axis=-1)                                                      # (R, I, 2D) f32

    # (sum_r w_r/deg_r * (rel_r @ E_i)) @ W  (R folded as reduction)   (U, D)
    user_feat = user_behavior_feature(rel, item_emb, uf_scale, w)

    # ((rel_r @ item_prop_r) / deg_r) @ Wb_r                           (R, U, 2D)
    tproj = user_item_projection(rel, item_prop.astype(jnp.bfloat16), ubd_col, wb)

    # (train_matrix^T @ E_u) @ W  (no HBM transpose)                   (I, D)
    item_feat = item_cf_feature(train_matrix, user_emb, w)

    user_full = jnp.concatenate([user_emb.astype(jnp.float32), user_feat], axis=1)
    item_full = jnp.concatenate([item_emb.astype(jnp.float32), item_feat], axis=1)
    # TODO(synk): message/node dropout layers are identity here (p=0 / eval mode).

    u1 = user_full[user]            # (B, 2D)      -- NOT pre-broadcast over K
    v1 = item_full[item]            # (B, K, 2D)
    u2 = tproj[:, user]             # (R, B, 2D)
    v2 = item_prop[:, item]         # (R, B, K, 2D)

    scores = fused_scores(u1, v1, u2, v2, lamb=lamb)                  # (B, K)
    l2_loss = l2_norm * (K * pallas_sumsq(u1) +
                         pallas_sumsq(v1.reshape(B * K, 2 * D)))
    return scores, l2_loss


# ---------------------------------------------------------------------------
# Pure-JAX reference: same math and same bf16-input / f32-accumulate policy
# ---------------------------------------------------------------------------
def mbgcn_reference(params, graphs, user, item, *, lamb, l2_norm):
    f32, bf16 = jnp.float32, jnp.bfloat16
    item_emb = params["item_embedding"]
    user_emb = params["user_embedding"]
    mgnn_weight = params["mgnn_weight"]
    wp = params["item_propagate_W"]
    wb = params["item_behavior_W"]
    w = params["W"]
    rel = graphs["relations"]
    ig = graphs["item_graphs"]
    igd = graphs["item_graph_degree"]
    ubd = graphs["user_behavior_degree"]
    train_matrix = graphs["train_matrix"]
    R = mgnn_weight.shape[0]
    B, K = item.shape

    total_weight = jnp.sum(ubd * mgnn_weight[None, :], axis=1, keepdims=True)
    ubw = ubd * mgnn_weight[None, :] / (total_weight + _EPS)

    user_feature = 0.0
    score2 = 0.0
    for r in range(R):
        prop = jnp.dot(ig[r], item_emb, preferred_element_type=f32)
        prop = (prop / (igd[r] + _EPS)).astype(bf16)
        prop = jnp.dot(prop, wp[r], preferred_element_type=f32)
        item_prop = jnp.concatenate([item_emb.astype(f32), prop], axis=1)
        tmp_item_embedding = item_prop[item]
        denom = ubd[:, r:r + 1] + _EPS
        neigh = jnp.dot(rel[r], item_emb, preferred_element_type=f32) / denom
        user_feature = user_feature + ubw[:, r:r + 1] * neigh
        uin = jnp.dot(rel[r], item_prop.astype(bf16),
                      preferred_element_type=f32) / denom
        tproj = jnp.dot(uin.astype(bf16), wb[r], preferred_element_type=f32)
        tuser = tproj[user][:, None, :]
        score2 = score2 + jnp.sum(tuser * tmp_item_embedding, axis=2)
    score2 = score2 / R

    item_feature = jnp.dot(train_matrix.T, user_emb, preferred_element_type=f32)
    user_feature = jnp.dot(user_feature.astype(bf16), w, preferred_element_type=f32)
    item_feature = jnp.dot(item_feature.astype(bf16), w, preferred_element_type=f32)
    user_full = jnp.concatenate([user_emb.astype(f32), user_feature], axis=1)
    item_full = jnp.concatenate([item_emb.astype(f32), item_feature], axis=1)
    tmp_u = jnp.broadcast_to(user_full[user][:, None, :],
                             (B, K, user_full.shape[1]))
    tmp_i = item_full[item]
    score1 = jnp.sum(tmp_u * tmp_i, axis=2)
    scores = score1 + lamb * score2
    l2_loss = l2_norm * (jnp.sum(tmp_u ** 2) + jnp.sum(tmp_i ** 2))
    return scores, l2_loss


# ---------------------------------------------------------------------------
# Deterministic synthetic example
# ---------------------------------------------------------------------------
if __name__ == "__main__":
    U, I, D, R = 256, 512, 128, 2        # users, items, embed_size, behaviours
    B, K = 8, 16                         # batch users, candidate items per user
    lamb, l2_norm = 0.5, 1e-4

    key = jax.random.PRNGKey(0)
    ks = jax.random.split(key, 12)

    def xavier(k, shape):
        std = (2.0 / (shape[-2] + shape[-1])) ** 0.5
        return std * jax.random.normal(k, shape, dtype=jnp.float32)

    params = {
        "item_embedding": xavier(ks[0], (I, D)).astype(jnp.bfloat16),
        "user_embedding": xavier(ks[1], (U, D)).astype(jnp.bfloat16),
        "mgnn_weight": jnp.array([1.0, 0.5], dtype=jnp.float32),
        "item_behavior_W": xavier(ks[2], (R, 2 * D, 2 * D)).astype(jnp.bfloat16),
        "item_propagate_W": xavier(ks[3], (R, D, D)).astype(jnp.bfloat16),
        "W": xavier(ks[4], (D, D)).astype(jnp.bfloat16),
    }

    relations = jax.random.bernoulli(ks[5], 0.3, (R, U, I)).astype(jnp.float32)
    item_graphs = jax.random.bernoulli(ks[6], 0.2, (R, I, I)).astype(jnp.float32)
    graphs = {
        "relations": relations.astype(jnp.bfloat16),
        "item_graphs": item_graphs.astype(jnp.bfloat16),
        "item_graph_degree": jnp.sum(item_graphs, axis=2, keepdims=True),  # (R, I, 1)
        "user_behavior_degree": jnp.sum(relations, axis=2).T,              # (U, R)
        "train_matrix": jax.random.bernoulli(ks[7], 0.3, (U, I)).astype(jnp.bfloat16),
    }

    user = jax.random.randint(ks[8], (B,), 0, U)
    item = jax.random.randint(ks[9], (B, K), 0, I)

    scores, l2_loss = mbgcn_forward(params, graphs, user, item,
                                    lamb=lamb, l2_norm=l2_norm)
    scores = jax.block_until_ready(scores)
    l2_loss = jax.block_until_ready(l2_loss)

    ref_scores, ref_l2 = mbgcn_reference(params, graphs, user, item,
                                         lamb=lamb, l2_norm=l2_norm)
    assert scores.shape == (B, K)
    assert jnp.allclose(scores, ref_scores, rtol=5e-3, atol=5e-3), (
        float(jnp.max(jnp.abs(scores - ref_scores))))
    assert jnp.allclose(l2_loss, ref_l2, rtol=5e-3, atol=5e-3), (
        float(jnp.abs(l2_loss - ref_l2)))

    print("KERNEL_OK")
</pallas_src>

<mosaic_0001>
module attributes {stable_mosaic.version = 11 : i64} {
  func.func @_user_feature_kernel(%arg0: i32, %arg1: i32, %arg2: i32, %arg3: memref<1x128x128xbf16, #tpu.memory_space<vmem>>, %arg4: memref<128x128xbf16, #tpu.memory_space<vmem>>, %arg5: memref<1x128x1xf32, #tpu.memory_space<vmem>>, %arg6: memref<128x128xbf16, #tpu.memory_space<vmem>>, %arg7: memref<128x128xf32, #tpu.memory_space<vmem>>, %arg8: memref<128x128xf32, #tpu.memory_space<vmem>>) attributes {dimension_semantics = [#tpu.dimension_semantics<parallel>, #tpu.dimension_semantics<arbitrary>, #tpu.dimension_semantics<arbitrary>], iteration_bounds = array<i64: 2, 2, 4>, scalar_prefetch = 0 : i64, scratch_operands = 1 : i64, tpu.core_type = #tpu.core_type<tc>, window_params = [{transform_indices = @transform_0, window_bounds = array<i64: 1, 128, 128>}, {transform_indices = @transform_1, window_bounds = array<i64: 128, 128>}, {transform_indices = @transform_2, window_bounds = array<i64: 1, 128, 1>}, {pipeline_mode = #tpu.pipeline_mode<synchronous>, transform_indices = @transform_3, window_bounds = array<i64: 128, 128>}, {transform_indices = @transform_4, window_bounds = array<i64: 128, 128>}]} {
    %c0_i32 = arith.constant 0 : i32
    %0 = arith.cmpi eq, %arg1, %c0_i32 : i32
    %c0_i32_0 = arith.constant 0 : i32
    %1 = arith.cmpi eq, %arg2, %c0_i32_0 : i32
    %2 = arith.andi %0, %1 : i1
    %3 = arith.extui %2 : i1 to i32
    %c0_i32_1 = arith.constant 0 : i32
    %4 = arith.cmpi ne, %3, %c0_i32_1 : i32
    scf.if %4 {
      %cst_14 = arith.constant 0.000000e+00 : f32
      %21 = vector.broadcast %cst_14 : f32 to vector<128x128xf32>
      %c0_15 = arith.constant 0 : index
      %c0_16 = arith.constant 0 : index
      %22 = vector.load %arg8[%c0_15, %c0_16] : memref<128x128xf32, #tpu.memory_space<vmem>>, vector<128x128xf32>
      tpu.vector_store %arg8[%c0_15, %c0_16], %21 {strides = array<i32>} : memref<128x128xf32, #tpu.memory_space<vmem>>, vector<128x128xf32>,
    } else {
    }
    %c0 = arith.constant 0 : index
    %c0_2 = arith.constant 0 : index
    %c0_3 = arith.constant 0 : index
    %5 = vector.load %arg3[%c0, %c0_2, %c0_3] : memref<1x128x128xbf16, #tpu.memory_space<vmem>>, vector<1x128x128xbf16>
    %6 = vector.shape_cast %5 : vector<1x128x128xbf16> to vector<128x128xbf16>
    %c0_4 = arith.constant 0 : index
    %c0_5 = arith.constant 0 : index
    %7 = vector.load %arg4[%c0_4, %c0_5] : memref<128x128xbf16, #tpu.memory_space<vmem>>, vector<128x128xbf16>
    %cst = arith.constant dense<0.000000e+00> : vector<128x128xf32>
    %8 = tpu.matmul %6, %7, %cst {dimension_numbers = #tpu.dot_dimension_numbers<[1], [0], [0], [1], [0, 0, 1, 1], [], []>} : vector<128x128xbf16>, vector<128x128xbf16>, vector<128x128xf32> -> vector<128x128xf32>
    %c0_6 = arith.constant 0 : index
    %c0_7 = arith.constant 0 : index
    %9 = vector.load %arg8[%c0_6, %c0_7] : memref<128x128xf32, #tpu.memory_space<vmem>>, vector<128x128xf32>
    %c0_8 = arith.constant 0 : index
    %c0_9 = arith.constant 0 : index
    %c0_10 = arith.constant 0 : index
    %10 = vector.load %arg5[%c0_8, %c0_9, %c0_10] : memref<1x128x1xf32, #tpu.memory_space<vmem>>, vector<1x128x1xf32>
    %11 = vector.shape_cast %10 : vector<1x128x1xf32> to vector<128x1xf32>
    %12 = vector.broadcast %11 : vector<128x1xf32> to vector<128x128xf32>
    %13 = arith.mulf %12, %8 : vector<128x128xf32>
    %14 = arith.addf %9, %13 : vector<128x128xf32>
    %c0_11 = arith.constant 0 : index
    %c0_12 = arith.constant 0 : index
    %15 = vector.load %arg8[%c0_11, %c0_12] : memref<128x128xf32, #tpu.memory_space<vmem>>, vector<128x128xf32>
    tpu.vector_store %arg8[%c0_11, %c0_12], %14 {strides = array<i32>} : memref<128x128xf32, #tpu.memory_space<vmem>>, vector<128x128xf32>,
    %c1_i32 = arith.constant 1 : i32
    %16 = arith.cmpi eq, %arg1, %c1_i32 : i32
    %c3_i32 = arith.constant 3 : i32
    %17 = arith.cmpi eq, %arg2, %c3_i32 : i32
    %18 = arith.andi %16, %17 : i1
    %19 = arith.extui %18 : i1 to i32
    %c0_i32_13 = arith.constant 0 : i32
    %20 = arith.cmpi ne, %19, %c0_i32_13 : i32
    scf.if %20 {
      %c0_14 = arith.constant 0 : index
      %c0_15 = arith.constant 0 : index
      %21 = vector.load %arg8[%c0_14, %c0_15] : memref<128x128xf32, #tpu.memory_space<vmem>>, vector<128x128xf32>
      %22 = arith.truncf %21 : vector<128x128xf32> to vector<128x128xbf16>
      %c0_16 = arith.constant 0 : index
      %c0_17 = arith.constant 0 : index
      %23 = vector.load %arg6[%c0_16, %c0_17] : memref<128x128xbf16, #tpu.memory_space<vmem>>, vector<128x128xbf16>
      %cst_18 = arith.constant dense<0.000000e+00> : vector<128x128xf32>
      %24 = tpu.matmul %22, %23, %cst_18 {dimension_numbers = #tpu.dot_dimension_numbers<[1], [0], [0], [1], [0, 0, 1, 1], [], []>} : vector<128x128xbf16>, vector<128x128xbf16>, vector<128x128xf32> -> vector<128x128xf32>
      %c0_19 = arith.constant 0 : index
      %c0_20 = arith.constant 0 : index
      %25 = vector.load %arg7[%c0_19, %c0_20] : memref<128x128xf32, #tpu.memory_space<vmem>>, vector<128x128xf32>
      tpu.vector_store %arg7[%c0_19, %c0_20], %24 {strides = array<i32>} : memref<128x128xf32, #tpu.memory_space<vmem>>, vector<128x128xf32>,
    } else {
    }
    return
  }
  func.func @transform_0(%arg0: i32, %arg1: i32, %arg2: i32) -> (i32, i32, i32) {
    %c0_i32 = arith.constant 0 : i32
    return %arg1, %arg0, %arg2 : i32, i32, i32
  }
  func.func @transform_1(%arg0: i32, %arg1: i32, %arg2: i32) -> (i32, i32) {
    %c0_i32 = arith.constant 0 : i32
    %c0_i32_0 = arith.constant 0 : i32
    return %arg2, %c0_i32 : i32, i32
  }
  func.func @transform_2(%arg0: i32, %arg1: i32, %arg2: i32) -> (i32, i32, i32) {
    %c0_i32 = arith.constant 0 : i32
    %c0_i32_0 = arith.constant 0 : i32
    return %arg1, %arg0, %c0_i32 : i32, i32, i32
  }
  func.func @transform_3(%arg0: i32, %arg1: i32, %arg2: i32) -> (i32, i32) {
    %c0_i32 = arith.constant 0 : i32
    %c0_i32_0 = arith.constant 0 : i32
    %c0_i32_1 = arith.constant 0 : i32
    return %c0_i32, %c0_i32_0 : i32, i32
  }
  func.func @transform_4(%arg0: i32, %arg1: i32, %arg2: i32) -> (i32, i32) {
    %c0_i32 = arith.constant 0 : i32
    %c0_i32_0 = arith.constant 0 : i32
    return %arg0, %c0_i32 : i32, i32
  }
}

module attributes {stable_mosaic.version = 11 : i64} {
  func.func @_atb_project_kernel(%arg0: i32, %arg1: i32, %arg2: memref<128x128xbf16, #tpu.memory_space<vmem>>, %arg3: memref<128x128xbf16, #tpu.memory_space<vmem>>, %arg4: memref<128x128xbf16, #tpu.memory_space<vmem>>, %arg5: memref<128x128xf32, #tpu.memory_space<vmem>>, %arg6: memref<128x128xf32, #tpu.memory_space<vmem>>) attributes {dimension_semantics = [#tpu.dimension_semantics<parallel>, #tpu.dimension_semantics<arbitrary>], iteration_bounds = array<i64: 4, 2>, scalar_prefetch = 0 : i64, scratch_operands = 1 : i64, tpu.core_type = #tpu.core_type<tc>, window_params = [{transform_indices = @transform_0, window_bounds = array<i64: 128, 128>}, {transform_indices = @transform_1, window_bounds = array<i64: 128, 128>}, {pipeline_mode = #tpu.pipeline_mode<synchronous>, transform_indices = @transform_2, window_bounds = array<i64: 128, 128>}, {transform_indices = @transform_3, window_bounds = array<i64: 128, 128>}]} {
    %c0_i32 = arith.constant 0 : i32
    %0 = arith.cmpi eq, %arg1, %c0_i32 : i32
    %1 = arith.extui %0 : i1 to i32
    %c0_i32_0 = arith.constant 0 : i32
    %2 = arith.cmpi ne, %1, %c0_i32_0 : i32
    scf.if %2 {
      %cst_9 = arith.constant 0.000000e+00 : f32
      %12 = vector.broadcast %cst_9 : f32 to vector<128x128xf32>
      %c0_10 = arith.constant 0 : index
      %c0_11 = arith.constant 0 : index
      %13 = vector.load %arg6[%c0_10, %c0_11] : memref<128x128xf32, #tpu.memory_space<vmem>>, vector<128x128xf32>
      tpu.vector_store %arg6[%c0_10, %c0_11], %12 {strides = array<i32>} : memref<128x128xf32, #tpu.memory_space<vmem>>, vector<128x128xf32>,
    } else {
    }
    %c0 = arith.constant 0 : index
    %c0_1 = arith.constant 0 : index
    %3 = vector.load %arg6[%c0, %c0_1] : memref<128x128xf32, #tpu.memory_space<vmem>>, vector<128x128xf32>
    %c0_2 = arith.constant 0 : index
    %c0_3 = arith.constant 0 : index
    %4 = vector.load %arg2[%c0_2, %c0_3] : memref<128x128xbf16, #tpu.memory_space<vmem>>, vector<128x128xbf16>
    %c0_4 = arith.constant 0 : index
    %c0_5 = arith.constant 0 : index
    %5 = vector.load %arg3[%c0_4, %c0_5] : memref<128x128xbf16, #tpu.memory_space<vmem>>, vector<128x128xbf16>
    %cst = arith.constant dense<0.000000e+00> : vector<128x128xf32>
    %6 = tpu.matmul %4, %5, %cst {dimension_numbers = #tpu.dot_dimension_numbers<[0], [0], [1], [1], [0, 1, 1, 1], [], []>} : vector<128x128xbf16>, vector<128x128xbf16>, vector<128x128xf32> -> vector<128x128xf32>
    %7 = arith.addf %3, %6 : vector<128x128xf32>
    %c0_6 = arith.constant 0 : index
    %c0_7 = arith.constant 0 : index
    %8 = vector.load %arg6[%c0_6, %c0_7] : memref<128x128xf32, #tpu.memory_space<vmem>>, vector<128x128xf32>
    tpu.vector_store %arg6[%c0_6, %c0_7], %7 {strides = array<i32>} : memref<128x128xf32, #tpu.memory_space<vmem>>, vector<128x128xf32>,
    %c1_i32 = arith.constant 1 : i32
    %9 = arith.cmpi eq, %arg1, %c1_i32 : i32
    %10 = arith.extui %9 : i1 to i32
    %c0_i32_8 = arith.constant 0 : i32
    %11 = arith.cmpi ne, %10, %c0_i32_8 : i32
    scf.if %11 {
      %c0_9 = arith.constant 0 : index
      %c0_10 = arith.constant 0 : index
      %12 = vector.load %arg6[%c0_9, %c0_10] : memref<128x128xf32, #tpu.memory_space<vmem>>, vector<128x128xf32>
      %13 = arith.truncf %12 : vector<128x128xf32> to vector<128x128xbf16>
      %c0_11 = arith.constant 0 : index
      %c0_12 = arith.constant 0 : index
      %14 = vector.load %arg4[%c0_11, %c0_12] : memref<128x128xbf16, #tpu.memory_space<vmem>>, vector<128x128xbf16>
      %cst_13 = arith.constant dense<0.000000e+00> : vector<128x128xf32>
      %15 = tpu.matmul %13, %14, %cst_13 {dimension_numbers = #tpu.dot_dimension_numbers<[1], [0], [0], [1], [0, 0, 1, 1], [], []>} : vector<128x128xbf16>, vector<128x128xbf16>, vector<128x128xf32> -> vector<128x128xf32>
      %c0_14 = arith.constant 0 : index
      %c0_15 = arith.constant 0 : index
      %16 = vector.load %arg5[%c0_14, %c0_15] : memref<128x128xf32, #tpu.memory_space<vmem>>, vector<128x128xf32>
      tpu.vector_store %arg5[%c0_14, %c0_15], %15 {strides = array<i32>} : memref<128x128xf32, #tpu.memory_space<vmem>>, vector<128x128xf32>,
    } else {
    }
    return
  }
  func.func @transform_0(%arg0: i32, %arg1: i32) -> (i32, i32) {
    %c0_i32 = arith.constant 0 : i32
    return %arg1, %arg0 : i32, i32
  }
  func.func @transform_1(%arg0: i32, %arg1: i32) -> (i32, i32) {
    %c0_i32 = arith.constant 0 : i32
    %c0_i32_0 = arith.constant 0 : i32
    return %arg1, %c0_i32 : i32, i32
  }
  func.func @transform_2(%arg0: i32, %arg1: i32) -> (i32, i32) {
    %c0_i32 = arith.constant 0 : i32
    %c0_i32_0 = arith.constant 0 : i32
    %c0_i32_1 = arith.constant 0 : i32
    return %c0_i32, %c0_i32_0 : i32, i32
  }
  func.func @transform_3(%arg0: i32, %arg1: i32) -> (i32, i32) {
    %c0_i32 = arith.constant 0 : i32
    %c0_i32_0 = arith.constant 0 : i32
    return %arg0, %c0_i32 : i32, i32
  }
}

module attributes {stable_mosaic.version = 11 : i64} {
  func.func @_matmul_scale_project_kernel(%arg0: i32, %arg1: i32, %arg2: i32, %arg3: memref<1x128x128xbf16, #tpu.memory_space<vmem>>, %arg4: memref<128x128xbf16, #tpu.memory_space<vmem>>, %arg5: memref<1x128x1xf32, #tpu.memory_space<vmem>>, %arg6: memref<1x128x128xbf16, #tpu.memory_space<vmem>>, %arg7: memref<1x128x128xf32, #tpu.memory_space<vmem>>, %arg8: memref<128x128xf32, #tpu.memory_space<vmem>>) attributes {dimension_semantics = [#tpu.dimension_semantics<parallel>, #tpu.dimension_semantics<parallel>, #tpu.dimension_semantics<arbitrary>], iteration_bounds = array<i64: 2, 4, 4>, scalar_prefetch = 0 : i64, scratch_operands = 1 : i64, tpu.core_type = #tpu.core_type<tc>, window_params = [{transform_indices = @transform_0, window_bounds = array<i64: 1, 128, 128>}, {transform_indices = @transform_1, window_bounds = array<i64: 128, 128>}, {transform_indices = @transform_2, window_bounds = array<i64: 1, 128, 1>}, {transform_indices = @transform_3, window_bounds = array<i64: 1, 128, 128>}, {transform_indices = @transform_4, window_bounds = array<i64: 1, 128, 128>}]} {
    %c0_i32 = arith.constant 0 : i32
    %0 = arith.cmpi eq, %arg2, %c0_i32 : i32
    %1 = arith.extui %0 : i1 to i32
    %c0_i32_0 = arith.constant 0 : i32
    %2 = arith.cmpi ne, %1, %c0_i32_0 : i32
    scf.if %2 {
      %cst_10 = arith.constant 0.000000e+00 : f32
      %13 = vector.broadcast %cst_10 : f32 to vector<128x128xf32>
      %c0_11 = arith.constant 0 : index
      %c0_12 = arith.constant 0 : index
      %14 = vector.load %arg8[%c0_11, %c0_12] : memref<128x128xf32, #tpu.memory_space<vmem>>, vector<128x128xf32>
      tpu.vector_store %arg8[%c0_11, %c0_12], %13 {strides = array<i32>} : memref<128x128xf32, #tpu.memory_space<vmem>>, vector<128x128xf32>,
    } else {
    }
    %c0 = arith.constant 0 : index
    %c0_1 = arith.constant 0 : index
    %3 = vector.load %arg8[%c0, %c0_1] : memref<128x128xf32, #tpu.memory_space<vmem>>, vector<128x128xf32>
    %c0_2 = arith.constant 0 : index
    %c0_3 = arith.constant 0 : index
    %c0_4 = arith.constant 0 : index
    %4 = vector.load %arg3[%c0_2, %c0_3, %c0_4] : memref<1x128x128xbf16, #tpu.memory_space<vmem>>, vector<1x128x128xbf16>
    %5 = vector.shape_cast %4 : vector<1x128x128xbf16> to vector<128x128xbf16>
    %c0_5 = arith.constant 0 : index
    %c0_6 = arith.constant 0 : index
    %6 = vector.load %arg4[%c0_5, %c0_6] : memref<128x128xbf16, #tpu.memory_space<vmem>>, vector<128x128xbf16>
    %cst = arith.constant dense<0.000000e+00> : vector<128x128xf32>
    %7 = tpu.matmul %5, %6, %cst {dimension_numbers = #tpu.dot_dimension_numbers<[1], [0], [0], [1], [0, 0, 1, 1], [], []>} : vector<128x128xbf16>, vector<128x128xbf16>, vector<128x128xf32> -> vector<128x128xf32>
    %8 = arith.addf %3, %7 : vector<128x128xf32>
    %c0_7 = arith.constant 0 : index
    %c0_8 = arith.constant 0 : index
    %9 = vector.load %arg8[%c0_7, %c0_8] : memref<128x128xf32, #tpu.memory_space<vmem>>, vector<128x128xf32>
    tpu.vector_store %arg8[%c0_7, %c0_8], %8 {strides = array<i32>} : memref<128x128xf32, #tpu.memory_space<vmem>>, vector<128x128xf32>,
    %c3_i32 = arith.constant 3 : i32
    %10 = arith.cmpi eq, %arg2, %c3_i32 : i32
    %11 = arith.extui %10 : i1 to i32
    %c0_i32_9 = arith.constant 0 : i32
    %12 = arith.cmpi ne, %11, %c0_i32_9 : i32
    scf.if %12 {
      %c0_10 = arith.constant 0 : index
      %c0_11 = arith.constant 0 : index
      %13 = vector.load %arg8[%c0_10, %c0_11] : memref<128x128xf32, #tpu.memory_space<vmem>>, vector<128x128xf32>
      %c0_12 = arith.constant 0 : index
      %c0_13 = arith.constant 0 : index
      %c0_14 = arith.constant 0 : index
      %14 = vector.load %arg5[%c0_12, %c0_13, %c0_14] : memref<1x128x1xf32, #tpu.memory_space<vmem>>, vector<1x128x1xf32>
      %15 = vector.shape_cast %14 : vector<1x128x1xf32> to vector<128x1xf32>
      %cst_15 = arith.constant 9.99999993E-9 : f32
      %16 = vector.broadcast %cst_15 : f32 to vector<128x1xf32>
      %17 = arith.addf %15, %16 : vector<128x1xf32>
      %18 = vector.broadcast %17 : vector<128x1xf32> to vector<128x128xf32>
      %19 = arith.divf %13, %18 : vector<128x128xf32>
      %20 = arith.truncf %19 : vector<128x128xf32> to vector<128x128xbf16>
      %c0_16 = arith.constant 0 : index
      %c0_17 = arith.constant 0 : index
      %c0_18 = arith.constant 0 : index
      %21 = vector.load %arg6[%c0_16, %c0_17, %c0_18] : memref<1x128x128xbf16, #tpu.memory_space<vmem>>, vector<1x128x128xbf16>
      %22 = vector.shape_cast %21 : vector<1x128x128xbf16> to vector<128x128xbf16>
      %cst_19 = arith.constant dense<0.000000e+00> : vector<128x128xf32>
      %23 = tpu.matmul %20, %22, %cst_19 {dimension_numbers = #tpu.dot_dimension_numbers<[1], [0], [0], [1], [0, 0, 1, 1], [], []>} : vector<128x128xbf16>, vector<128x128xbf16>, vector<128x128xf32> -> vector<128x128xf32>
      %c0_20 = arith.constant 0 : index
      %c0_21 = arith.constant 0 : index
      %c0_22 = arith.constant 0 : index
      %24 = vector.load %arg7[%c0_20, %c0_21, %c0_22] : memref<1x128x128xf32, #tpu.memory_space<vmem>>, vector<1x128x128xf32>
      %25 = vector.shape_cast %24 : vector<1x128x128xf32> to vector<128x128xf32>
      %26 = vector.shape_cast %23 : vector<128x128xf32> to vector<1x128x128xf32>
      tpu.vector_store %arg7[%c0_20, %c0_21, %c0_22], %26 {strides = array<i32>} : memref<1x128x128xf32, #tpu.memory_space<vmem>>, vector<1x128x128xf32>,
    } else {
    }
    return
  }
  func.func @transform_0(%arg0: i32, %arg1: i32, %arg2: i32) -> (i32, i32, i32) {
    %c0_i32 = arith.constant 0 : i32
    return %arg0, %arg1, %arg2 : i32, i32, i32
  }
  func.func @transform_1(%arg0: i32, %arg1: i32, %arg2: i32) -> (i32, i32) {
    %c0_i32 = arith.constant 0 : i32
    %c0_i32_0 = arith.constant 0 : i32
    return %arg2, %c0_i32 : i32, i32
  }
  func.func @transform_2(%arg0: i32, %arg1: i32, %arg2: i32) -> (i32, i32, i32) {
    %c0_i32 = arith.constant 0 : i32
    %c0_i32_0 = arith.constant 0 : i32
    return %arg0, %arg1, %c0_i32 : i32, i32, i32
  }
  func.func @transform_3(%arg0: i32, %arg1: i32, %arg2: i32) -> (i32, i32, i32) {
    %c0_i32 = arith.constant 0 : i32
    %c0_i32_0 = arith.constant 0 : i32
    %c0_i32_1 = arith.constant 0 : i32
    return %arg0, %c0_i32, %c0_i32_0 : i32, i32, i32
  }
  func.func @transform_4(%arg0: i32, %arg1: i32, %arg2: i32) -> (i32, i32, i32) {
    %c0_i32 = arith.constant 0 : i32
    %c0_i32_0 = arith.constant 0 : i32
    return %arg0, %arg1, %c0_i32 : i32, i32, i32
  }
}

module attributes {stable_mosaic.version = 11 : i64} {
  func.func @_matmul_scale_project_kernel(%arg0: i32, %arg1: i32, %arg2: i32, %arg3: memref<1x128x128xbf16, #tpu.memory_space<vmem>>, %arg4: memref<1x128x256xbf16, #tpu.memory_space<vmem>>, %arg5: memref<1x128x1xf32, #tpu.memory_space<vmem>>, %arg6: memref<1x256x256xbf16, #tpu.memory_space<vmem>>, %arg7: memref<1x128x256xf32, #tpu.memory_space<vmem>>, %arg8: memref<128x256xf32, #tpu.memory_space<vmem>>) attributes {dimension_semantics = [#tpu.dimension_semantics<parallel>, #tpu.dimension_semantics<parallel>, #tpu.dimension_semantics<arbitrary>], iteration_bounds = array<i64: 2, 2, 4>, scalar_prefetch = 0 : i64, scratch_operands = 1 : i64, tpu.core_type = #tpu.core_type<tc>, window_params = [{transform_indices = @transform_0, window_bounds = array<i64: 1, 128, 128>}, {transform_indices = @transform_1, window_bounds = array<i64: 1, 128, 256>}, {transform_indices = @transform_2, window_bounds = array<i64: 1, 128, 1>}, {transform_indices = @transform_3, window_bounds = array<i64: 1, 256, 256>}, {transform_indices = @transform_4, window_bounds = array<i64: 1, 128, 256>}]} {
    %c0_i32 = arith.constant 0 : i32
    %0 = arith.cmpi eq, %arg2, %c0_i32 : i32
    %1 = arith.extui %0 : i1 to i32
    %c0_i32_0 = arith.constant 0 : i32
    %2 = arith.cmpi ne, %1, %c0_i32_0 : i32
    scf.if %2 {
      %cst_11 = arith.constant 0.000000e+00 : f32
      %14 = vector.broadcast %cst_11 : f32 to vector<128x256xf32>
      %c0_12 = arith.constant 0 : index
      %c0_13 = arith.constant 0 : index
      %15 = vector.load %arg8[%c0_12, %c0_13] : memref<128x256xf32, #tpu.memory_space<vmem>>, vector<128x256xf32>
      tpu.vector_store %arg8[%c0_12, %c0_13], %14 {strides = array<i32>} : memref<128x256xf32, #tpu.memory_space<vmem>>, vector<128x256xf32>,
    } else {
    }
    %c0 = arith.constant 0 : index
    %c0_1 = arith.constant 0 : index
    %3 = vector.load %arg8[%c0, %c0_1] : memref<128x256xf32, #tpu.memory_space<vmem>>, vector<128x256xf32>
    %c0_2 = arith.constant 0 : index
    %c0_3 = arith.constant 0 : index
    %c0_4 = arith.constant 0 : index
    %4 = vector.load %arg3[%c0_2, %c0_3, %c0_4] : memref<1x128x128xbf16, #tpu.memory_space<vmem>>, vector<1x128x128xbf16>
    %5 = vector.shape_cast %4 : vector<1x128x128xbf16> to vector<128x128xbf16>
    %c0_5 = arith.constant 0 : index
    %c0_6 = arith.constant 0 : index
    %c0_7 = arith.constant 0 : index
    %6 = vector.load %arg4[%c0_5, %c0_6, %c0_7] : memref<1x128x256xbf16, #tpu.memory_space<vmem>>, vector<1x128x256xbf16>
    %7 = vector.shape_cast %6 : vector<1x128x256xbf16> to vector<128x256xbf16>
    %cst = arith.constant dense<0.000000e+00> : vector<128x256xf32>
    %8 = tpu.matmul %5, %7, %cst {dimension_numbers = #tpu.dot_dimension_numbers<[1], [0], [0], [1], [0, 0, 1, 1], [], []>} : vector<128x128xbf16>, vector<128x256xbf16>, vector<128x256xf32> -> vector<128x256xf32>
    %9 = arith.addf %3, %8 : vector<128x256xf32>
    %c0_8 = arith.constant 0 : index
    %c0_9 = arith.constant 0 : index
    %10 = vector.load %arg8[%c0_8, %c0_9] : memref<128x256xf32, #tpu.memory_space<vmem>>, vector<128x256xf32>
    tpu.vector_store %arg8[%c0_8, %c0_9], %9 {strides = array<i32>} : memref<128x256xf32, #tpu.memory_space<vmem>>, vector<128x256xf32>,
    %c3_i32 = arith.constant 3 : i32
    %11 = arith.cmpi eq, %arg2, %c3_i32 : i32
    %12 = arith.extui %11 : i1 to i32
    %c0_i32_10 = arith.constant 0 : i32
    %13 = arith.cmpi ne, %12, %c0_i32_10 : i32
    scf.if %13 {
      %c0_11 = arith.constant 0 : index
      %c0_12 = arith.constant 0 : index
      %14 = vector.load %arg8[%c0_11, %c0_12] : memref<128x256xf32, #tpu.memory_space<vmem>>, vector<128x256xf32>
      %c0_13 = arith.constant 0 : index
      %c0_14 = arith.constant 0 : index
      %c0_15 = arith.constant 0 : index
      %15 = vector.load %arg5[%c0_13, %c0_14, %c0_15] : memref<1x128x1xf32, #tpu.memory_space<vmem>>, vector<1x128x1xf32>
      %16 = vector.shape_cast %15 : vector<1x128x1xf32> to vector<128x1xf32>
      %cst_16 = arith.constant 9.99999993E-9 : f32
      %17 = vector.broadcast %cst_16 : f32 to vector<128x1xf32>
      %18 = arith.addf %16, %17 : vector<128x1xf32>
      %19 = vector.broadcast %18 : vector<128x1xf32> to vector<128x256xf32>
      %20 = arith.divf %14, %19 : vector<128x256xf32>
      %21 = arith.truncf %20 : vector<128x256xf32> to vector<128x256xbf16>
      %c0_17 = arith.constant 0 : index
      %c0_18 = arith.constant 0 : index
      %c0_19 = arith.constant 0 : index
      %22 = vector.load %arg6[%c0_17, %c0_18, %c0_19] : memref<1x256x256xbf16, #tpu.memory_space<vmem>>, vector<1x256x256xbf16>
      %23 = vector.shape_cast %22 : vector<1x256x256xbf16> to vector<256x256xbf16>
      %cst_20 = arith.constant dense<0.000000e+00> : vector<128x256xf32>
      %24 = tpu.matmul %21, %23, %cst_20 {dimension_numbers = #tpu.dot_dimension_numbers<[1], [0], [0], [1], [0, 0, 1, 1], [], []>} : vector<128x256xbf16>, vector<256x256xbf16>, vector<128x256xf32> -> vector<128x256xf32>
      %c0_21 = arith.constant 0 : index
      %c0_22 = arith.constant 0 : index
      %c0_23 = arith.constant 0 : index
      %25 = vector.load %arg7[%c0_21, %c0_22, %c0_23] : memref<1x128x256xf32, #tpu.memory_space<vmem>>, vector<1x128x256xf32>
      %26 = vector.shape_cast %25 : vector<1x128x256xf32> to vector<128x256xf32>
      %27 = vector.shape_cast %24 : vector<128x256xf32> to vector<1x128x256xf32>
      tpu.vector_store %arg7[%c0_21, %c0_22, %c0_23], %27 {strides = array<i32>} : memref<1x128x256xf32, #tpu.memory_space<vmem>>, vector<1x128x256xf32>,
    } else {
    }
    return
  }
  func.func @transform_0(%arg0: i32, %arg1: i32, %arg2: i32) -> (i32, i32, i32) {
    %c0_i32 = arith.constant 0 : i32
    return %arg0, %arg1, %arg2 : i32, i32, i32
  }
  func.func @transform_1(%arg0: i32, %arg1: i32, %arg2: i32) -> (i32, i32, i32) {
    %c0_i32 = arith.constant 0 : i32
    %c0_i32_0 = arith.constant 0 : i32
    return %arg0, %arg2, %c0_i32 : i32, i32, i32
  }
  func.func @transform_2(%arg0: i32, %arg1: i32, %arg2: i32) -> (i32, i32, i32) {
    %c0_i32 = arith.constant 0 : i32
    %c0_i32_0 = arith.constant 0 : i32
    return %arg0, %arg1, %c0_i32 : i32, i32, i32
  }
  func.func @transform_3(%arg0: i32, %arg1: i32, %arg2: i32) -> (i32, i32, i32) {
    %c0_i32 = arith.constant 0 : i32
    %c0_i32_0 = arith.constant 0 : i32
    %c0_i32_1 = arith.constant 0 : i32
    return %arg0, %c0_i32, %c0_i32_0 : i32, i32, i32
  }
  func.func @transform_4(%arg0: i32, %arg1: i32, %arg2: i32) -> (i32, i32, i32) {
    %c0_i32 = arith.constant 0 : i32
    %c0_i32_0 = arith.constant 0 : i32
    return %arg0, %arg1, %c0_i32 : i32, i32, i32
  }
}

module attributes {stable_mosaic.version = 11 : i64} {
  func.func @_sumsq_kernel(%arg0: i32, %arg1: memref<8x256xf32, #tpu.memory_space<vmem>>, %arg2: memref<1x1xf32, #tpu.memory_space<vmem>>) attributes {dimension_semantics = [#tpu.dimension_semantics<arbitrary>], iteration_bounds = array<i64: 1>, scalar_prefetch = 0 : i64, scratch_operands = 0 : i64, tpu.core_type = #tpu.core_type<tc>, window_params = [{transform_indices = @transform_0, window_bounds = array<i64: 8, 256>}, {pipeline_mode = #tpu.pipeline_mode<synchronous>, transform_indices = @transform_1, window_bounds = array<i64: 1, 1>}]} {
    %c0_i32 = arith.constant 0 : i32
    %0 = arith.cmpi eq, %arg0, %c0_i32 : i32
    %1 = arith.extui %0 : i1 to i32
    %c0_i32_0 = arith.constant 0 : i32
    %2 = arith.cmpi ne, %1, %c0_i32_0 : i32
    scf.if %2 {
      %cst_6 = arith.constant 0.000000e+00 : f32
      %13 = vector.broadcast %cst_6 : f32 to vector<1x1xf32>
      %c0_7 = arith.constant 0 : index
      %c0_8 = arith.constant 0 : index
      %14 = vector.load %arg2[%c0_7, %c0_8] : memref<1x1xf32, #tpu.memory_space<vmem>>, vector<1x1xf32>
      tpu.vector_store %arg2[%c0_7, %c0_8], %13 {strides = array<i32>} : memref<1x1xf32, #tpu.memory_space<vmem>>, vector<1x1xf32>,
    } else {
    }
    %c0 = arith.constant 0 : index
    %c0_1 = arith.constant 0 : index
    %3 = vector.load %arg1[%c0, %c0_1] : memref<8x256xf32, #tpu.memory_space<vmem>>, vector<8x256xf32>
    %c0_2 = arith.constant 0 : index
    %c0_3 = arith.constant 0 : index
    %4 = vector.load %arg2[%c0_2, %c0_3] : memref<1x1xf32, #tpu.memory_space<vmem>>, vector<1x1xf32>
    %5 = arith.mulf %3, %3 : vector<8x256xf32>
    %6 = vector.shape_cast %5 : vector<8x256xf32> to vector<1x8x256xf32>
    %cst = arith.constant dense<0.000000e+00> : vector<1xf32>
    %7 = vector.multi_reduction <add>, %6, %cst [1, 2] : vector<1x8x256xf32> to vector<1xf32>
    %8 = vector.shape_cast %7 : vector<1xf32> to vector<1x1x1xf32>
    %9 = vector.extract %8[0, 0, 0] : f32 from vector<1x1x1xf32>
    %10 = vector.broadcast %9 : f32 to vector<1x1xf32>
    %11 = arith.addf %4, %10 : vector<1x1xf32>
    %c0_4 = arith.constant 0 : index
    %c0_5 = arith.constant 0 : index
    %12 = vector.load %arg2[%c0_4, %c0_5] : memref<1x1xf32, #tpu.memory_space<vmem>>, vector<1x1xf32>
    tpu.vector_store %arg2[%c0_4, %c0_5], %11 {strides = array<i32>} : memref<1x1xf32, #tpu.memory_space<vmem>>, vector<1x1xf32>,
    return
  }
  func.func @transform_0(%arg0: i32) -> (i32, i32) {
    %c0_i32 = arith.constant 0 : i32
    %c0_i32_0 = arith.constant 0 : i32
    return %arg0, %c0_i32 : i32, i32
  }
  func.func @transform_1(%arg0: i32) -> (i32, i32) {
    %c0_i32 = arith.constant 0 : i32
    %c0_i32_0 = arith.constant 0 : i32
    %c0_i32_1 = arith.constant 0 : i32
    return %c0_i32, %c0_i32_0 : i32, i32
  }
}

module attributes {stable_mosaic.version = 11 : i64} {
  func.func @_scores_kernel(%arg0: i32, %arg1: i32, %arg2: memref<8x256xf32, #tpu.memory_space<vmem>>, %arg3: memref<8x16x256xf32, #tpu.memory_space<vmem>>, %arg4: memref<1x8x256xf32, #tpu.memory_space<vmem>>, %arg5: memref<1x8x16x256xf32, #tpu.memory_space<vmem>>, %arg6: memref<8x16xf32, #tpu.memory_space<vmem>>, %arg7: memref<8x16xf32, #tpu.memory_space<vmem>>) attributes {dimension_semantics = [#tpu.dimension_semantics<parallel>, #tpu.dimension_semantics<arbitrary>], iteration_bounds = array<i64: 1, 2>, scalar_prefetch = 0 : i64, scratch_operands = 1 : i64, tpu.core_type = #tpu.core_type<tc>, window_params = [{transform_indices = @transform_0, window_bounds = array<i64: 8, 256>}, {transform_indices = @transform_1, window_bounds = array<i64: 8, 16, 256>}, {transform_indices = @transform_2, window_bounds = array<i64: 1, 8, 256>}, {transform_indices = @transform_3, window_bounds = array<i64: 1, 8, 16, 256>}, {transform_indices = @transform_4, window_bounds = array<i64: 8, 16>}]} {
    %c0_i32 = arith.constant 0 : i32
    %0 = arith.cmpi eq, %arg1, %c0_i32 : i32
    %1 = arith.extui %0 : i1 to i32
    %c0_i32_0 = arith.constant 0 : i32
    %2 = arith.cmpi ne, %1, %c0_i32_0 : i32
    scf.if %2 {
      %c0_13 = arith.constant 0 : index
      %c0_14 = arith.constant 0 : index
      %19 = vector.load %arg2[%c0_13, %c0_14] : memref<8x256xf32, #tpu.memory_space<vmem>>, vector<8x256xf32>
      %c0_15 = arith.constant 0 : index
      %c0_16 = arith.constant 0 : index
      %c0_17 = arith.constant 0 : index
      %20 = vector.load %arg3[%c0_15, %c0_16, %c0_17] : memref<8x16x256xf32, #tpu.memory_space<vmem>>, vector<8x16x256xf32>
      %21 = vector.shape_cast %19 : vector<8x256xf32> to vector<8x1x256xf32>
      %22 = vector.broadcast %21 : vector<8x1x256xf32> to vector<8x16x256xf32>
      %23 = arith.mulf %22, %20 : vector<8x16x256xf32>
      %cst_18 = arith.constant dense<0.000000e+00> : vector<8x16xf32>
      %24 = vector.multi_reduction <add>, %23, %cst_18 [2] : vector<8x16x256xf32> to vector<8x16xf32>
      %c0_19 = arith.constant 0 : index
      %c0_20 = arith.constant 0 : index
      %25 = vector.load %arg7[%c0_19, %c0_20] : memref<8x16xf32, #tpu.memory_space<vmem>>, vector<8x16xf32>
      tpu.vector_store %arg7[%c0_19, %c0_20], %24 {strides = array<i32>} : memref<8x16xf32, #tpu.memory_space<vmem>>, vector<8x16xf32>,
    } else {
    }
    %c0 = arith.constant 0 : index
    %c0_1 = arith.constant 0 : index
    %c0_2 = arith.constant 0 : index
    %3 = vector.load %arg4[%c0, %c0_1, %c0_2] : memref<1x8x256xf32, #tpu.memory_space<vmem>>, vector<1x8x256xf32>
    %4 = vector.shape_cast %3 : vector<1x8x256xf32> to vector<8x256xf32>
    %c0_3 = arith.constant 0 : index
    %c0_4 = arith.constant 0 : index
    %c0_5 = arith.constant 0 : index
    %c0_6 = arith.constant 0 : index
    %5 = vector.load %arg5[%c0_3, %c0_4, %c0_5, %c0_6] : memref<1x8x16x256xf32, #tpu.memory_space<vmem>>, vector<1x8x16x256xf32>
    %6 = vector.shape_cast %5 : vector<1x8x16x256xf32> to vector<8x16x256xf32>
    %c0_7 = arith.constant 0 : index
    %c0_8 = arith.constant 0 : index
    %7 = vector.load %arg7[%c0_7, %c0_8] : memref<8x16xf32, #tpu.memory_space<vmem>>, vector<8x16xf32>
    %8 = vector.shape_cast %4 : vector<8x256xf32> to vector<8x1x256xf32>
    %9 = vector.broadcast %8 : vector<8x1x256xf32> to vector<8x16x256xf32>
    %10 = arith.mulf %9, %6 : vector<8x16x256xf32>
    %cst = arith.constant dense<0.000000e+00> : vector<8x16xf32>
    %11 = vector.multi_reduction <add>, %10, %cst [2] : vector<8x16x256xf32> to vector<8x16xf32>
    %cst_9 = arith.constant 2.500000e-01 : f32
    %12 = vector.broadcast %cst_9 : f32 to vector<8x16xf32>
    %13 = arith.mulf %12, %11 : vector<8x16xf32>
    %14 = arith.addf %7, %13 : vector<8x16xf32>
    %c0_10 = arith.constant 0 : index
    %c0_11 = arith.constant 0 : index
    %15 = vector.load %arg7[%c0_10, %c0_11] : memref<8x16xf32, #tpu.memory_space<vmem>>, vector<8x16xf32>
    tpu.vector_store %arg7[%c0_10, %c0_11], %14 {strides = array<i32>} : memref<8x16xf32, #tpu.memory_space<vmem>>, vector<8x16xf32>,
    %c1_i32 = arith.constant 1 : i32
    %16 = arith.cmpi eq, %arg1, %c1_i32 : i32
    %17 = arith.extui %16 : i1 to i32
    %c0_i32_12 = arith.constant 0 : i32
    %18 = arith.cmpi ne, %17, %c0_i32_12 : i32
    scf.if %18 {
      %c0_13 = arith.constant 0 : index
      %c0_14 = arith.constant 0 : index
      %19 = vector.load %arg7[%c0_13, %c0_14] : memref<8x16xf32, #tpu.memory_space<vmem>>, vector<8x16xf32>
      %c0_15 = arith.constant 0 : index
      %c0_16 = arith.constant 0 : index
      %20 = vector.load %arg6[%c0_15, %c0_16] : memref<8x16xf32, #tpu.memory_space<vmem>>, vector<8x16xf32>
      tpu.vector_store %arg6[%c0_15, %c0_16], %19 {strides = array<i32>} : memref<8x16xf32, #tpu.memory_space<vmem>>, vector<8x16xf32>,
    } else {
    }
    return
  }
  func.func @transform_0(%arg0: i32, %arg1: i32) -> (i32, i32) {
    %c0_i32 = arith.constant 0 : i32
    %c0_i32_0 = arith.constant 0 : i32
    return %arg0, %c0_i32 : i32, i32
  }
  func.func @transform_1(%arg0: i32, %arg1: i32) -> (i32, i32, i32) {
    %c0_i32 = arith.constant 0 : i32
    %c0_i32_0 = arith.constant 0 : i32
    %c0_i32_1 = arith.constant 0 : i32
    return %arg0, %c0_i32, %c0_i32_0 : i32, i32, i32
  }
  func.func @transform_2(%arg0: i32, %arg1: i32) -> (i32, i32, i32) {
    %c0_i32 = arith.constant 0 : i32
    %c0_i32_0 = arith.constant 0 : i32
    return %arg1, %arg0, %c0_i32 : i32, i32, i32
  }
  func.func @transform_3(%arg0: i32, %arg1: i32) -> (i32, i32, i32, i32) {
    %c0_i32 = arith.constant 0 : i32
    %c0_i32_0 = arith.constant 0 : i32
    %c0_i32_1 = arith.constant 0 : i32
    return %arg1, %arg0, %c0_i32, %c0_i32_0 : i32, i32, i32, i32
  }
  func.func @transform_4(%arg0: i32, %arg1: i32) -> (i32, i32) {
    %c0_i32 = arith.constant 0 : i32
    %c0_i32_0 = arith.constant 0 : i32
    return %arg0, %c0_i32 : i32, i32
  }
}

module attributes {stable_mosaic.version = 11 : i64} {
  func.func @_sumsq_kernel(%arg0: i32, %arg1: memref<64x256xf32, #tpu.memory_space<vmem>>, %arg2: memref<1x1xf32, #tpu.memory_space<vmem>>) attributes {dimension_semantics = [#tpu.dimension_semantics<arbitrary>], iteration_bounds = array<i64: 2>, scalar_prefetch = 0 : i64, scratch_operands = 0 : i64, tpu.core_type = #tpu.core_type<tc>, window_params = [{transform_indices = @transform_0, window_bounds = array<i64: 64, 256>}, {pipeline_mode = #tpu.pipeline_mode<synchronous>, transform_indices = @transform_1, window_bounds = array<i64: 1, 1>}]} {
    %c0_i32 = arith.constant 0 : i32
    %0 = arith.cmpi eq, %arg0, %c0_i32 : i32
    %1 = arith.extui %0 : i1 to i32
    %c0_i32_0 = arith.constant 0 : i32
    %2 = arith.cmpi ne, %1, %c0_i32_0 : i32
    scf.if %2 {
      %cst_6 = arith.constant 0.000000e+00 : f32
      %13 = vector.broadcast %cst_6 : f32 to vector<1x1xf32>
      %c0_7 = arith.constant 0 : index
      %c0_8 = arith.constant 0 : index
      %14 = vector.load %arg2[%c0_7, %c0_8] : memref<1x1xf32, #tpu.memory_space<vmem>>, vector<1x1xf32>
      tpu.vector_store %arg2[%c0_7, %c0_8], %13 {strides = array<i32>} : memref<1x1xf32, #tpu.memory_space<vmem>>, vector<1x1xf32>,
    } else {
    }
    %c0 = arith.constant 0 : index
    %c0_1 = arith.constant 0 : index
    %3 = vector.load %arg1[%c0, %c0_1] : memref<64x256xf32, #tpu.memory_space<vmem>>, vector<64x256xf32>
    %c0_2 = arith.constant 0 : index
    %c0_3 = arith.constant 0 : index
    %4 = vector.load %arg2[%c0_2, %c0_3] : memref<1x1xf32, #tpu.memory_space<vmem>>, vector<1x1xf32>
    %5 = arith.mulf %3, %3 : vector<64x256xf32>
    %6 = vector.shape_cast %5 : vector<64x256xf32> to vector<1x64x256xf32>
    %cst = arith.constant dense<0.000000e+00> : vector<1xf32>
    %7 = vector.multi_reduction <add>, %6, %cst [1, 2] : vector<1x64x256xf32> to vector<1xf32>
    %8 = vector.shape_cast %7 : vector<1xf32> to vector<1x1x1xf32>
    %9 = vector.extract %8[0, 0, 0] : f32 from vector<1x1x1xf32>
    %10 = vector.broadcast %9 : f32 to vector<1x1xf32>
    %11 = arith.addf %4, %10 : vector<1x1xf32>
    %c0_4 = arith.constant 0 : index
    %c0_5 = arith.constant 0 : index
    %12 = vector.load %arg2[%c0_4, %c0_5] : memref<1x1xf32, #tpu.memory_space<vmem>>, vector<1x1xf32>
    tpu.vector_store %arg2[%c0_4, %c0_5], %11 {strides = array<i32>} : memref<1x1xf32, #tpu.memory_space<vmem>>, vector<1x1xf32>,
    return
  }
  func.func @transform_0(%arg0: i32) -> (i32, i32) {
    %c0_i32 = arith.constant 0 : i32
    %c0_i32_0 = arith.constant 0 : i32
    return %arg0, %c0_i32 : i32, i32
  }
  func.func @transform_1(%arg0: i32) -> (i32, i32) {
    %c0_i32 = arith.constant 0 : i32
    %c0_i32_0 = arith.constant 0 : i32
    %c0_i32_1 = arith.constant 0 : i32
    return %c0_i32, %c0_i32_0 : i32, i32
  }
}

</mosaic_0001>

<bundles_post_ra>
// kernel: mbgcn_forward.8
= control target key start
LH: loop header
LB: loop body
LE: loop exit
PB: predicated region body
PF: predicated region fallthrough
CT: control target
= control target key end

     0   :  { %s1726_s0 = inlined_call_operand.hbm [shape: bf16[2,256,512], index: 0, kind: input, shape index: {}]   ;;  %s1727_s1 = inlined_call_operand.vmem [shape: bf16[512,128], index: 1, kind: input, shape index: {}]   ;;  %s1728_s2 = inlined_call_operand.vmem [shape: f32[2,256,1], index: 2, kind: input, shape index: {}]   ;;  %s1729_s3 = inlined_call_operand.vmem [shape: bf16[128,128], index: 3, kind: input, shape index: {}]   ;;  %s1730_s4 = inlined_call_operand.vmem [shape: f32[256,128], index: 4, kind: output, shape index: {}]  }
   0x1   :  { %1735 = sst [smem:[#allocation9_spill]] %s1728_s2 }
   0x2   :  { %1736 = sst [smem:[#allocation10_spill]] %s1729_s3 }
   0x3   :  { %1737 = sst [smem:[#allocation11_spill]] %s1730_s4 }
   0x4   :  { %9 = vsyncpa [#allocation4], 0 }
   0x5   :  { %11 = vsyncpa [#allocation4 + $0x1], 0  ;;  %s1473_s15 = smov 0   ;;  %s1475_s16 = smov 0  }
   0x6   :  { %s1477_s17 = smov 0   ;;  %s1479_s18 = smov 0  }
   0x7   :  { %s1481_s19 = smov 0   ;;  %s1483_s20 = smov 0  }
   0x8   :  { %s1485_s21 = smov 0   ;;  %s1487_s22 = smov 0  }
   0x9   :  { %s1489_s23 = smov 0   ;;  %s1491_s24 = smov 0  }
   0xa LB: > { %s1039_s25 = sadd.s32 4294967295, %s1440_s24   ;;  %s29_s26 = sadd.s32 1, %s1428_s21  ;;  %s1440_s24 = sphi %s1491_s24, %s17_s24   ;;  %s1436_s23 = sphi %s1489_s23, %s1759_s23   ;;  %s1432_s22 = sphi %s1487_s22, %s1758_s22   ;;  %s1428_s21 = sphi %s1485_s21, %s1757_s21   ;;  %s1424_s20 = sphi %s1483_s20, %s1756_s20   ;;  %s1420_s19 = sphi %s1481_s19, %s1755_s19   ;;  %s1416_s18 = sphi %s1479_s18, %s1754_s18   ;;  %s1412_s17 = sphi %s1477_s17, %s1753_s17   ;;  %s1408_s16 = sphi %s1475_s16, %s1752_s16   ;;  %s1404_s15 = sphi %s1473_s15, %s1751_s15  }
   0xb   : > { %p30_p0 = scmp.ge.s32.totalorder %s29_s26, 4  ;;  %s32_s27 = sadd.s32 1, %s1432_s22 }
   0xc   : > { %s36_s28 = sadd.s32 1, %s1436_s23  ;;  %s47_s29 = sadd.s32 1, %s1412_s17 }
   0xd   : > { %s1761_s26 = smov (%p30_p0, %s29_s26), 0  ;;  %s1763_s27 = smov (!%p30_p0, %s32_s27), %s1432_s22 }
   0xe   : > { %1738 = sst [smem:[#allocation6_spill]] %s1761_s26  ;;  %s43_s30 = ssub.s32 %s1428_s21, %s1761_s26 }
   0xf   : > { %p54_p1 = scmp.ne.s32.totalorder %s1412_s17, %s1408_s16  ;;  %p34_p2 = scmp.ge.s32.totalorder %s1763_s27, 2 }
  0x10   : > { %p55_p3 = scmp.eq.s32.totalorder %s1440_s24, 0  ;;  %p60_p4 = scmp.ne.s32.totalorder %s1408_s16, %s1404_s15 }
  0x11   : > { %p61_p5 = scmp.eq.s32.totalorder %s1039_s25, 0  ;;  %s1765_s27 = smov (%p34_p2, %s1763_s27), 0 }
  0x12   : > { %1739 = sst [smem:[#allocation7_spill]] %s1765_s27  ;;  %s1767_s28 = smov (!%p34_p2, %s36_s28), %s1436_s23 }
  0x13   : > { %s40_s5 = ssub.s32 %s1432_s22, %s1765_s27  ;;  %p1540_p6 = por %p55_p3, %p54_p1 }
  0x14   : > { %p38_p7 = scmp.ge.s32.totalorder %s1767_s28, 2  ;;  %p1544_p8 = por %p61_p5, %p60_p4 }
  0x15   : > { %p1218_p9 = scmp.lt.s32.totalorder %s1440_s24, 16  ;;  %s188_s8 = sand.u32 1, %s1412_s17  }
  0x16   : > { %s1769_s28 = smov (%p38_p7, %s1767_s28), 0  ;;  %s1083_s9 = sshll.u32 %s1436_s23, 6 }
  0x17   : > { %1742 = sst [smem:[#allocation8_spill]] %s1769_s28  ;;  %s41_s10 = ssub.s32 %s1436_s23, %s1769_s28 }
  0x18   : > { %s42_s11 = sor.u32 %s41_s10, %s40_s5  ;;  %s1043_s12 = sshll.u32 %s188_s8, 6 }
  0x19   : > { %s44_s13 = sor.u32 %s43_s30, %s42_s11  ;;  %s198_s14 = sadd.s32 %s1428_s21, %s1083_s9 }
  0x1a   : > { %p45_p10 = scmp.eq.s32.totalorder %s44_s13, 0  ;;  %s1046_s15 = sshll.u32 %s1432_s22, 7 }
  0x1b   : > { %s192_s25 = scalar_lea.vmem [#allocation3], %s1043_s12  ;;  %s200_s3 = sadd.s32 %s1046_s15, %s198_s14 }
  0x1c   : > { %s203_s27 = sshll.u32 %s192_s25, 4  ;;  %s1047_s2 = sshll.u32 %s200_s3, 6  ;;  %s204_s27 = int_to_ptr.vmem [resolvable:$true] %s203_s27 }
  0x1d   : > { %s1558_s26 = scalar_select %p45_p10, %s1412_s17, %s47_s29  }
  0x1e   : > { %p1564_p11 = pnand %p1218_p9, %p1540_p6  ;;  %s202_s30 = scalar_lea.hbm %s1726_s0, %s1047_s2 }
  0x1f   : > { %p1048_p12 = scmp.ge.s32.totalorder %s1440_s24, 1  ;;  %s189_s9 = scalar_lea.sflag [#allocation4], %s188_s8 }
  0x20   : > { %p1332_p13 = pneg %p1564_p11  ;;  %s1343_s29 = scalar_lea.vmem %s204_s27, 1024 }
  0x21   : > { %p1344_p0 = scmp.ne.s32.totalorder %s204_s27, %s1343_s29  ;;  %s1442_s3 = smov [#allocation3]  }
  0x22   : > { %s1348_s6 = sshll.u32 %s1442_s3, 4  ;;  %s1349_s6 = int_to_ptr.vmem [resolvable:$false] %s1348_s6 }
  0x23   : > { %p1346_p1 = pnand %p1344_p0, %p1332_p13  ;;  %s1350_s10 = scalar_lea.vmem %s1349_s6, 2048 }
  0x24   : > { %p1351_p3 = scmp.lt.s32.totalorder %s204_s27, %s1349_s6  ;;  %p1352_p4 = scmp.lt.s32.totalorder %s1350_s10, %s1343_s29 }
  0x25   : > { %p1347_p2 = pneg %p1346_p1 }
  0x26   : > { %p1353_p5 = por %p1352_p4, %p1351_p3 }
  0x28   : > { %p1354_p6 = pnand %p1353_p5, %p1347_p2 }
  0x2a   : > { %1357 = shalt.err (!%p1354_p6)
}
  0x2b   : > { %s1443_s28 = smov 256   ;;  %s1444_s2 = smov 64  }
  0x2c   : > { %s1445_s8 = smov 4   ;;  %p233_p7 = scmp.lt.s32.totalorder %s1440_s24, 17 }
  0x2d   : > { %1217 = dma.hbm_to_vmem [thread:$0]  (!%p1564_p11), %s202_s30, 1024, %s204_s27, %s189_s9, %s1443_s28, %s1444_s2, %s1445_s8  }
  0x2e   : > { %p234_p9 = pnand %p1048_p12, %p233_p7 }
  0x2f   : > { %s239_s11 = sand.u32 (!%p234_p9), 1, %s1408_s16  }
  0x30   : > { %237 = sbr.rel (%p234_p9) target bundleno = 567 (0x237), region = 36  ;;  %s1049_s12 = sshll.u32 (!%p234_p9), %s239_s11, 6 }
  0x31   : > { %s240_s13 = scalar_lea.sflag (!%p234_p9), [#allocation4], %s239_s11  ;;  %s1580_s14 = scalar_lea.vmem (!%p234_p9), [#allocation3], %s1049_s12 }
  0x35   : > { %1399 = dma.done.wait (%p1544_p8), %s240_s13, 1024  }
  0x36   : > { %1401 = vsyncadd (%p1544_p8), %s240_s13, 4294966272  ;;  %s1050_s4 = sshll.u32 %s1416_s18, 4  ;;  %s1052_s27 = sshll.u32 %s1424_s20, 4 }
  0x37   : > { %p284_p10 = scmp.lt.s32.totalorder %s1050_s4, 63  ;;  %p290_p11 = scmp.lt.s32.totalorder %s1420_s19, 1 }
  0x38   : > { %p292_p12 = scmp.lt.s32.totalorder %s1052_s27, 31  ;;  %p306_p13 = scmp.eq.s32.totalorder %s1420_s19, 0 }
  0x39   : > { %s1771_s4 = smov (!%p284_p10, %s1050_s4), 63  ;;  %p307_p0 = scmp.eq.s32.totalorder %s1416_s18, 0 }
  0x3a   : > { %s291_s15 = scalar_select %p290_p11, %s1420_s19, 1 }
  0x3b   : > { %s1051_s25 = sshll.u32 %s1771_s4, 2  ;;  %s1773_s27 = smov (!%p292_p12, %s1052_s27), 31 }
  0x3c   : > { %s1595_s7 = scalar_lea.vmem %s1727_s1, %s1051_s25  ;;  %s1053_s9 = sshll.u32 %s291_s15, 5 }
  0x3d   : > { %p308_p8 = pnand %p307_p0, %p306_p13  ;;  %s295_s29 = sadd.s32 %s1053_s9, %s1773_s27 }
  0x3e   : > { %s1056_s3 = sshll.u32 %s1773_s27, 3  ;;  %s1054_s6 = sshll.u32 %s295_s29, 3 }
  0x3f   : > { %s1744_s28 = sld [smem:[#allocation11_spill]] }
  0x40   : > { %s1745_s12 = sld [smem:[#allocation9_spill]] }
  0x42   : > { %311 = sbr.rel (%p308_p8) target bundleno = 80 (0x50), region = 44 }
  0x45   : > { %s1600_s2 = scalar_lea.vmem %s1744_s28, %s1056_s3 }
  0x46   : > { %s1605_s13 = scalar_lea.vmem %s1745_s12, %s1054_s6 }
  0x47   : > { %v1446_v0 = vmov 0.0  }
  0x48   : > { %312 = vst [vmem:[#allocation2 + $0x30] sm:$0xff] %v1446_v0  ;;  %313 = vst [vmem:[#allocation2] sm:$0xff] %v1446_v0 }
  0x49   : > { %314 = vst [vmem:[#allocation2 + $0x58] sm:$0xff] %v1446_v0  ;;  %315 = vst [vmem:[#allocation2 + $0x18] sm:$0xff] %v1446_v0 }
  0x4a   : > { %316 = vst [vmem:[#allocation2 + $0x50] sm:$0xff] %v1446_v0  ;;  %317 = vst [vmem:[#allocation2 + $0x68] sm:$0xff] %v1446_v0 }
  0x4b   : > { %318 = vst [vmem:[#allocation2 + $0x8] sm:$0xff] %v1446_v0  ;;  %319 = vst [vmem:[#allocation2 + $0x48] sm:$0xff] %v1446_v0 }
  0x4c   : > { %320 = vst [vmem:[#allocation2 + $0x40] sm:$0xff] %v1446_v0  ;;  %321 = vst [vmem:[#allocation2 + $0x20] sm:$0xff] %v1446_v0 }
  0x4d   : > { %322 = vst [vmem:[#allocation2 + $0x10] sm:$0xff] %v1446_v0  ;;  %323 = vst [vmem:[#allocation2 + $0x38] sm:$0xff] %v1446_v0 }
  0x4e   : > { %324 = vst [vmem:[#allocation2 + $0x60] sm:$0xff] %v1446_v0  ;;  %325 = vst [vmem:[#allocation2 + $0x70] sm:$0xff] %v1446_v0 }
  0x4f   : > { %326 = vst [vmem:[#allocation2 + $0x78] sm:$0xff] %v1446_v0  ;;  %327 = vst [vmem:[#allocation2 + $0x28] sm:$0xff] %v1446_v0 }
  0x50 PF: > { %v1306_v1 = vld [vmem:[%s1595_s7 + $0x38] sm:$0xff]   ;;  %v1307_v2 = vld [vmem:[%s1595_s7 + $0x30] sm:$0xff]   ;;  %v1447_v3 = vmov 0   ;;  %v1308_v4 = vld [vmem:[%s1595_s7 + $0x28] sm:$0xff]   ;;  %p713_p1 = scmp.eq.s32.totalorder %s1420_s19, 1  ;;  %p714_p2 = scmp.eq.s32.totalorder %s1416_s18, 3 }
  0x51   : > { %1305 = vset.pattern.permute.xlu1 %v1447_v3  ;;  %1304 = vset.pattern.permute.xlu0 %v1447_v3  ;;  %v1309_v5 = vld [vmem:[%s1595_s7 + $0x20] sm:$0xff]   ;;  %v1310_v8 = vld [vmem:[%s1595_s7 + $0x18] sm:$0xff]   ;;  %v1311_v9 = vld [vmem:[%s1595_s7 + $0x10] sm:$0xff]  }
  0x52   : > { %1116 = vmatprep.subr.bf16.mxu0 %v1306_v1  ;;  %1180 = vmatprep.subr.bf16.mxu1 %v1306_v1  ;;  %v1314_v6 = vld [vmem:[%s1580_s14] sm:$0xff]   ;;  %v571_v10 = vld [vmem:[%s1605_s13 + $0x10] sm:$0xff]  ;;  %v572_v12 = vld [vmem:[%s1605_s13 + $0x18] sm:$0xff]  ;;  %p1641_p3 = pnand %p714_p2, %p713_p1 }
  0x53   : > { %1117 = vmatpush3.bf16.msra.mxu0 %v1306_v1  ;;  %1188 = vmatpush3.bf16.msra.mxu1 %v1306_v1  ;;  %v1315_v7 = vld [vmem:[%s1580_s14 + $0x20] sm:$0xff]   ;;  %v570_v13 = vld [vmem:[%s1605_s13 + $0x8] sm:$0xff]  ;;  %v576_v18 = vld [vmem:[%s1605_s13 + $0x38] sm:$0xff] }
  0x54   : > { %1118 = vmatprep.subr.bf16.mxu0 %v1307_v2  ;;  %1181 = vmatprep.subr.bf16.mxu1 %v1307_v2  ;;  %v569_v11 = vld [vmem:[%s1605_s13] sm:$0xff]  ;;  %v1312_v14 = vld [vmem:[%s1595_s7 + $0x8] sm:$0xff]   ;;  %v575_v19 = vld [vmem:[%s1605_s13 + $0x30] sm:$0xff] }
  0x55   : > { %1132 = vmatprep.mubr.bf16.mxu0 %v1314_v6  ;;  %1140 = vmatprep.mubr.bf16.mxu1 %v1315_v7  ;;  %v574_v15 = vld [vmem:[%s1605_s13 + $0x28] sm:$0xff]  ;;  %v573_v16 = vld [vmem:[%s1605_s13 + $0x20] sm:$0xff]  ;;  %v1318_v24 = vld [vmem:[%s1580_s14 + $0x10] sm:$0xff]  }
  0x56   : > { %597 = vperm.xlu1 %1305, %v571_v10   ;;  %587 = vperm.xlu0 %1304, %v569_v11   ;;  %v1313_v17 = vld [vmem:[%s1595_s7] sm:$0xff]   ;;  %v1316_v20 = vld [vmem:[%s1580_s14 + $0x8] sm:$0xff]   ;;  %v1319_v25 = vld [vmem:[%s1580_s14 + $0x30] sm:$0xff]  }
  0x57   : > { %1119 = vmatpush3.bf16.msra.mxu0 %v1307_v2  ;;  %1189 = vmatpush3.bf16.msra.mxu1 %v1307_v2  ;;  %v1317_v21 = vld [vmem:[%s1580_s14 + $0x28] sm:$0xff]   ;;  %v577_v23 = vld [vmem:[%s1605_s13 + $0x40] sm:$0xff]  ;;  %v580_v26 = vld [vmem:[%s1605_s13 + $0x58] sm:$0xff] }
  0x58   : > { %1120 = vmatprep.subr.bf16.mxu0 %v1308_v4  ;;  %1182 = vmatprep.subr.bf16.mxu1 %v1308_v4  ;;  %v578_v22 = vld [vmem:[%s1605_s13 + $0x48] sm:$0xff]  ;;  %v579_v27 = vld [vmem:[%s1605_s13 + $0x50] sm:$0xff]  ;;  %v1320_v28 = vld [vmem:[%s1580_s14 + $0x18] sm:$0xff]  }
  0x59   : > { %v1321_v29 = vld [vmem:[%s1580_s14 + $0x38] sm:$0xff]   ;;  %v582_v30 = vld [vmem:[%s1605_s13 + $0x68] sm:$0xff]  ;;  %v581_v31 = vld [vmem:[%s1605_s13 + $0x60] sm:$0xff]  ;;  %s1747_s14 = sld [smem:[#allocation10_spill]] (!%p1641_p3) }
  0x5a   : > { %602 = vperm.xlu1 %1305, %v572_v12   ;;  %592 = vperm.xlu0 %1304, %v570_v13   ;;  %v584_v32 = vld [vmem:[%s1605_s13 + $0x78] sm:$0xff]  ;;  %v583_v33 = vld [vmem:[%s1605_s13 + $0x70] sm:$0xff]  ;;  %v561_v56 = vld [vmem:[#allocation2 + $0x40] sm:$0xff] }
  0x5b   : > { %1121 = vmatpush3.bf16.msra.mxu0 %v1308_v4  ;;  %1190 = vmatpush3.bf16.msra.mxu1 %v1308_v4  ;;  %v555_v47 = vld [vmem:[#allocation2 + $0x58] sm:$0xff]  ;;  %v563_v49 = vld [vmem:[#allocation2 + $0x10] sm:$0xff]  ;;  %v554_v7 = vld [vmem:[#allocation2] sm:$0xff] }
  0x5c   : > { %1122 = vmatprep.subr.bf16.mxu0 %v1309_v5  ;;  %1183 = vmatprep.subr.bf16.mxu1 %v1309_v5  ;;  %v553_v54 = vld [vmem:[#allocation2 + $0x30] sm:$0xff]  ;;  %v556_v62 = vld [vmem:[#allocation2 + $0x18] sm:$0xff] }
  0x5d   : > { %v564_v0 = vld [vmem:[#allocation2 + $0x38] sm:$0xff] }
  0x5e   : > { %612 = vperm.xlu1 %1305, %v574_v15   ;;  %607 = vperm.xlu0 %1304, %v573_v16   ;;  %v559_v16 = vld [vmem:[#allocation2 + $0x8] sm:$0xff] }
  0x5f   : > { %1123 = vmatpush3.bf16.msra.mxu0 %v1309_v5  ;;  %1191 = vmatpush3.bf16.msra.mxu1 %v1309_v5 }
  0x60   : > { %1124 = vmatprep.subr.bf16.mxu0 %v1310_v8  ;;  %1184 = vmatprep.subr.bf16.mxu1 %v1310_v8 }
  0x62   : > { %622 = vperm.xlu1 %1305, %v576_v18   ;;  %617 = vperm.xlu0 %1304, %v575_v19   ;;  %v567_v18 = vld [vmem:[#allocation2 + $0x78] sm:$0xff] }
  0x63   : > { %1125 = vmatpush3.bf16.msra.mxu0 %v1310_v8  ;;  %1192 = vmatpush3.bf16.msra.mxu1 %v1310_v8 }
  0x64   : > { %1126 = vmatprep.subr.bf16.mxu0 %v1311_v9  ;;  %1185 = vmatprep.subr.bf16.mxu1 %v1311_v9 }
  0x66   : > { %632 = vperm.xlu1 %1305, %v578_v22   ;;  %627 = vperm.xlu0 %1304, %v577_v23  }
  0x67   : > { %1127 = vmatpush3.bf16.msra.mxu0 %v1311_v9  ;;  %1193 = vmatpush3.bf16.msra.mxu1 %v1311_v9  ;;  %v562_v9 = vld [vmem:[#allocation2 + $0x20] sm:$0xff] }
  0x68   : > { %1128 = vmatprep.subr.bf16.mxu0 %v1312_v14  ;;  %1186 = vmatprep.subr.bf16.mxu1 %v1312_v14 }
  0x6a   : > { %642 = vperm.xlu1 %1305, %v580_v26   ;;  %637 = vperm.xlu0 %1304, %v579_v27   ;;  %v565_v26 = vld [vmem:[#allocation2 + $0x60] sm:$0xff] }
  0x6b   : > { %1129 = vmatpush3.bf16.msra.mxu0 %v1312_v14  ;;  %1194 = vmatpush3.bf16.msra.mxu1 %v1312_v14 }
  0x6c   : > { %1130 = vmatprep.subr.bf16.mxu0 %v1313_v17  ;;  %1187 = vmatprep.subr.bf16.mxu1 %v1313_v17 }
  0x6e   : > { %652 = vperm.xlu1 %1305, %v582_v30   ;;  %647 = vperm.xlu0 %1304, %v581_v31  }
  0x6f   : > { %1131 = vmatpush3.bf16.msra.mxu0 %v1313_v17  ;;  %1195 = vmatpush3.bf16.msra.mxu1 %v1313_v17 }
  0x72   : > { %1133 = vmatmul.mubr.bf16.vlgmr.msra.gmra.mxu0 %v1316_v20  ;;  %1141 = vmatmul.mubr.bf16.vlgmr.msra.gmra.mxu1 %v1317_v21 }
  0x73   : > { %1136 = vmatprep.mubr.bf16.mxu0 %v1318_v24  ;;  %1144 = vmatprep.mubr.bf16.mxu1 %v1319_v25  ;;  %v557_v24 = vld [vmem:[#allocation2 + $0x50] sm:$0xff] }
  0x74   : > { %662 = vperm.xlu1 %1305, %v584_v32   ;;  %657 = vperm.xlu0 %1304, %v583_v33   ;;  %v560_v33 = vld [vmem:[#allocation2 + $0x48] sm:$0xff] }
  0x7a   : > { %1137 = vmatmul.mubr.bf16.gmra.mxu0 %v1320_v28  ;;  %1145 = vmatmul.mubr.bf16.gmra.mxu1 %v1321_v29 }
  0xd1   : > { %v588_v34 = vpop.permute.xlu0 %587  ;;  %v598_v35 = vpop.permute.xlu1 %597 }
  0xd5   : > { %v593_v36 = vpop.permute.xlu0 %592  ;;  %v603_v37 = vpop.permute.xlu1 %602 }
  0xd9   : > { %v1645_v38 = vpop.permute.xlu0 %607  ;;  %v1647_v39 = vpop.permute.xlu1 %612 }
  0xdd   : > { %v618_v40 = vpop.permute.xlu0 %617  ;;  %v1649_v41 = vpop.permute.xlu1 %622 }
  0xe1   : > { %v628_v42 = vpop.permute.xlu0 %627  ;;  %v633_v43 = vpop.permute.xlu1 %632 }
  0xe5   : > { %v638_v44 = vpop.permute.xlu0 %637  ;;  %v643_v45 = vpop.permute.xlu1 %642 }
  0xe9   : > { %v648_v50 = vpop.permute.xlu0 %647  ;;  %v653_v1 = vpop.permute.xlu1 %652 }
  0xef   : > { %v658_v10 = vpop.permute.xlu0 %657  ;;  %v663_v27 = vpop.permute.xlu1 %662 }
 0x132   : > { %v1134_v46 = vpop.f32.mrf.mxu0  ;;  %v1142_v48 = vpop.f32.mrf.mxu1 }
 0x133   : > { %v667_v51 = vmul.f32 %v1134_v46, %v598_v35  ;;  %v675_v52 = vmul.f32 %v1142_v48, %v638_v44  ;;  %v568_v35 = vld [vmem:[#allocation2 + $0x28] sm:$0xff]  ;;  %v566_v46 = vld [vmem:[#allocation2 + $0x70] sm:$0xff] }
 0x134   : > { %v490_v53 = vpop.f32.mrf.mxu0  ;;  %v522_v55 = vpop.f32.mrf.mxu1  ;;  %v558_v44 = vld [vmem:[#allocation2 + $0x68] sm:$0xff] }
 0x135   : > { %v683_v57 = vadd.f32 %v667_v51, %v555_v47  ;;  %v691_v58 = vadd.f32 %v675_v52, %v563_v49  ;;  %v665_v59 = vmul.f32 %v588_v34, %v490_v53  ;;  %v673_v60 = vmul.f32 %v628_v42, %v522_v55 }
 0x136   : > { %v1135_v61 = vpop.f32.mrf.mxu0  ;;  %v1143_v63 = vpop.f32.mrf.mxu1 }
 0x137   : > { %699 = vst [vmem:[#allocation2 + $0x58] sm:$0xff] %v683_v57  ;;  %707 = vst [vmem:[#allocation2 + $0x10] sm:$0xff] %v691_v58  ;;  %v681_v2 = vadd.f32 %v665_v59, %v553_v54  ;;  %v689_v3 = vadd.f32 %v673_v60, %v561_v56  ;;  %v668_v4 = vmul.f32 %v1135_v61, %v603_v37 }
 0x138   : > { %v676_v5 = vmul.f32 %v1143_v63, %v643_v45  ;;  %v493_v6 = vpop.f32.mrf.mxu0  ;;  %v525_v8 = vpop.f32.mrf.mxu1 }
 0x139   : > { %697 = vst [vmem:[#allocation2 + $0x30] sm:$0xff] %v681_v2  ;;  %705 = vst [vmem:[#allocation2 + $0x40] sm:$0xff] %v689_v3  ;;  %v684_v11 = vadd.f32 %v668_v4, %v556_v62  ;;  %v666_v13 = vmul.f32 %v593_v36, %v493_v6  ;;  %v674_v14 = vmul.f32 %v633_v43, %v525_v8 }
 0x13a   : > { %v692_v12 = vadd.f32 %v676_v5, %v564_v0  ;;  %v1138_v15 = vpop.f32.mrf.mxu0  ;;  %v1146_v17 = vpop.f32.mrf.mxu1 }
 0x13b   : > { %700 = vst [vmem:[#allocation2 + $0x18] sm:$0xff] %v684_v11  ;;  %v682_v19 = vadd.f32 %v666_v13, %v554_v7  ;;  %v690_v20 = vadd.f32 %v674_v14, %v562_v9  ;;  %v671_v21 = vmul.f32 %v1138_v15, %v618_v40  ;;  %v679_v22 = vmul.f32 %v1146_v17, %v658_v10 }
 0x13c   : > { %708 = vst [vmem:[#allocation2 + $0x38] sm:$0xff] %v692_v12  ;;  %v506_v23 = vpop.f32.mrf.mxu0  ;;  %v538_v25 = vpop.f32.mrf.mxu1 }
 0x13d   : > { %698 = vst [vmem:[#allocation2] sm:$0xff] %v682_v19  ;;  %706 = vst [vmem:[#allocation2 + $0x20] sm:$0xff] %v690_v20  ;;  %v687_v28 = vadd.f32 %v671_v21, %v559_v16  ;;  %v695_v29 = vadd.f32 %v679_v22, %v567_v18  ;;  %v669_v30 = vmul.f32 %v1645_v38, %v506_v23 }
 0x13e   : > { %v677_v31 = vmul.f32 %v648_v50, %v538_v25  ;;  %v1139_v32 = vpop.f32.mrf.mxu0  ;;  %v1147_v34 = vpop.f32.mrf.mxu1 }
 0x13f   : > { %703 = vst [vmem:[#allocation2 + $0x8] sm:$0xff] %v687_v28  ;;  %711 = vst [vmem:[#allocation2 + $0x78] sm:$0xff] %v695_v29  ;;  %v685_v36 = vadd.f32 %v669_v30, %v557_v24  ;;  %v672_v40 = vmul.f32 %v1139_v32, %v1649_v41  ;;  %v680_v42 = vmul.f32 %v1147_v34, %v663_v27 }
 0x140   : > { %v693_v37 = vadd.f32 %v677_v31, %v565_v26  ;;  %v509_v43 = vpop.f32.mrf.mxu0  ;;  %v541_v45 = vpop.f32.mrf.mxu1 }
 0x141   : > { %701 = vst [vmem:[#allocation2 + $0x50] sm:$0xff] %v685_v36  ;;  %v688_v47 = vadd.f32 %v672_v40, %v560_v33  ;;  %v696_v38 = vadd.f32 %v680_v42, %v568_v35  ;;  %v670_v48 = vmul.f32 %v1647_v39, %v509_v43  ;;  %v678_v49 = vmul.f32 %v653_v1, %v541_v45  ;;  %718 = sbr.rel (%p1641_p3) target bundleno = 567 (0x237), region = 48 }
 0x142   : > { %709 = vst [vmem:[#allocation2 + $0x60] sm:$0xff] %v693_v37 }
 0x143   : > { %704 = vst [vmem:[#allocation2 + $0x48] sm:$0xff] %v688_v47  ;;  %712 = vst [vmem:[#allocation2 + $0x28] sm:$0xff] %v696_v38  ;;  %v686_v50 = vadd.f32 %v670_v48, %v558_v44  ;;  %v694_v51 = vadd.f32 %v678_v49, %v566_v46 }
 0x145   : > { %702 = vst [vmem:[#allocation2 + $0x68] sm:$0xff] %v686_v50  ;;  %710 = vst [vmem:[#allocation2 + $0x70] sm:$0xff] %v694_v51 }
 0x146   : > { %v1322_v41 = vld [vmem:[%s1747_s14 + $0x38] sm:$0xff]   ;;  %v1323_v52 = vld [vmem:[%s1747_s14 + $0x30] sm:$0xff]   ;;  %v1324_v39 = vld [vmem:[%s1747_s14 + $0x28] sm:$0xff]  }
 0x147   : > { %1148 = vmatprep.subr.bf16.mxu0 %v1322_v41  ;;  %1196 = vmatprep.subr.bf16.mxu1 %v1322_v41  ;;  %v1325_v53 = vld [vmem:[%s1747_s14 + $0x20] sm:$0xff]   ;;  %v719_v54 = vld [vmem:[#allocation2 + $0x30] sm:$0xff]  ;;  %v1326_v60 = vld [vmem:[%s1747_s14 + $0x18] sm:$0xff]  }
 0x148   : > { %1149 = vmatpush3.bf16.msra.mxu0 %v1322_v41  ;;  %1204 = vmatpush3.bf16.msra.mxu1 %v1322_v41  ;;  %v720_v55 = vld [vmem:[#allocation2] sm:$0xff]  ;;  %v1327_v61 = vld [vmem:[%s1747_s14 + $0x10] sm:$0xff]   ;;  %v1328_v62 = vld [vmem:[%s1747_s14 + $0x8] sm:$0xff]  }
 0x149   : > { %1150 = vmatprep.subr.bf16.mxu0 %v1323_v52  ;;  %1197 = vmatprep.subr.bf16.mxu1 %v1323_v52  ;;  %v727_v56 = vld [vmem:[#allocation2 + $0x40] sm:$0xff]  ;;  %v735_v57 = vpack.c.bf16 %v720_v55, %v719_v54  ;;  %v721_v0 = vld [vmem:[#allocation2 + $0x58] sm:$0xff]  ;;  %v729_v2 = vld [vmem:[#allocation2 + $0x10] sm:$0xff] }
 0x14a   : > { %v728_v58 = vld [vmem:[#allocation2 + $0x20] sm:$0xff]  ;;  %v722_v1 = vld [vmem:[#allocation2 + $0x18] sm:$0xff]  ;;  %v723_v4 = vld [vmem:[#allocation2 + $0x50] sm:$0xff] }
 0x14b   : > { %v739_v59 = vpack.c.bf16 %v728_v58, %v727_v56  ;;  %1164 = vmatprep.mubr.bf16.mxu0 %v735_v57  ;;  %v1329_v63 = vld [vmem:[%s1747_s14] sm:$0xff]   ;;  %v730_v3 = vld [vmem:[#allocation2 + $0x38] sm:$0xff]  ;;  %v736_v8 = vpack.c.bf16 %v722_v1, %v721_v0  ;;  %v725_v12 = vld [vmem:[#allocation2 + $0x8] sm:$0xff] }
 0x14c   : > { %1151 = vmatpush3.bf16.msra.mxu0 %v1323_v52  ;;  %1205 = vmatpush3.bf16.msra.mxu1 %v1323_v52  ;;  %v724_v5 = vld [vmem:[#allocation2 + $0x68] sm:$0xff]  ;;  %v731_v6 = vld [vmem:[#allocation2 + $0x60] sm:$0xff]  ;;  %v732_v7 = vld [vmem:[#allocation2 + $0x70] sm:$0xff]  ;;  %v740_v9 = vpack.c.bf16 %v730_v3, %v729_v2 }
 0x14d   : > { %1152 = vmatprep.subr.bf16.mxu0 %v1324_v39  ;;  %1198 = vmatprep.subr.bf16.mxu1 %v1324_v39  ;;  %v737_v10 = vpack.c.bf16 %v724_v5, %v723_v4  ;;  %v741_v11 = vpack.c.bf16 %v732_v7, %v731_v6  ;;  %v726_v13 = vld [vmem:[#allocation2 + $0x48] sm:$0xff]  ;;  %v733_v14 = vld [vmem:[#allocation2 + $0x78] sm:$0xff] }
 0x14e   : > { %1172 = vmatprep.mubr.bf16.mxu1 %v739_v59  ;;  %v734_v15 = vld [vmem:[#allocation2 + $0x28] sm:$0xff]  ;;  %v738_v16 = vpack.c.bf16 %v726_v13, %v725_v12 }
 0x14f   : > { %v742_v17 = vpack.c.bf16 %v734_v15, %v733_v14 }
 0x150   : > { %1153 = vmatpush3.bf16.msra.mxu0 %v1324_v39  ;;  %1206 = vmatpush3.bf16.msra.mxu1 %v1324_v39 }
 0x151   : > { %1154 = vmatprep.subr.bf16.mxu0 %v1325_v53  ;;  %1199 = vmatprep.subr.bf16.mxu1 %v1325_v53 }
 0x154   : > { %1155 = vmatpush3.bf16.msra.mxu0 %v1325_v53  ;;  %1207 = vmatpush3.bf16.msra.mxu1 %v1325_v53 }
 0x155   : > { %1156 = vmatprep.subr.bf16.mxu0 %v1326_v60  ;;  %1200 = vmatprep.subr.bf16.mxu1 %v1326_v60 }
 0x158   : > { %1157 = vmatpush3.bf16.msra.mxu0 %v1326_v60  ;;  %1208 = vmatpush3.bf16.msra.mxu1 %v1326_v60 }
 0x159   : > { %1158 = vmatprep.subr.bf16.mxu0 %v1327_v61  ;;  %1201 = vmatprep.subr.bf16.mxu1 %v1327_v61 }
 0x15c   : > { %1159 = vmatpush3.bf16.msra.mxu0 %v1327_v61  ;;  %1209 = vmatpush3.bf16.msra.mxu1 %v1327_v61 }
 0x15d   : > { %1160 = vmatprep.subr.bf16.mxu0 %v1328_v62  ;;  %1202 = vmatprep.subr.bf16.mxu1 %v1328_v62 }
 0x160   : > { %1161 = vmatpush3.bf16.msra.mxu0 %v1328_v62  ;;  %1210 = vmatpush3.bf16.msra.mxu1 %v1328_v62 }
 0x161   : > { %1162 = vmatprep.subr.bf16.mxu0 %v1329_v63  ;;  %1203 = vmatprep.subr.bf16.mxu1 %v1329_v63 }
 0x164   : > { %1163 = vmatpush3.bf16.msra.mxu0 %v1329_v63  ;;  %1211 = vmatpush3.bf16.msra.mxu1 %v1329_v63 }
 0x167   : > { %1165 = vmatmul.mubr.bf16.vlgmr.msra.gmra.mxu0 %v736_v8  ;;  %1173 = vmatmul.mubr.bf16.vlgmr.msra.gmra.mxu1 %v740_v9 }
 0x168   : > { %1168 = vmatprep.mubr.bf16.mxu0 %v737_v10  ;;  %1176 = vmatprep.mubr.bf16.mxu1 %v741_v11 }
 0x16f   : > { %1169 = vmatmul.mubr.bf16.gmra.mxu0 %v738_v16  ;;  %1177 = vmatmul.mubr.bf16.gmra.mxu1 %v742_v17 }
 0x227   : > { %v1166_v18 = vpop.f32.mrf.mxu0  ;;  %v1174_v19 = vpop.f32.mrf.mxu1 }
 0x228   : > { %906 = vst [vmem:[%s1600_s2 + $0x10] sm:$0xff] %v1166_v18  ;;  %914 = vst [vmem:[%s1600_s2 + $0x50] sm:$0xff] %v1174_v19 }
 0x229   : > { %v841_v20 = vpop.f32.mrf.mxu0  ;;  %v873_v21 = vpop.f32.mrf.mxu1 }
 0x22a   : > { %904 = vst [vmem:[%s1600_s2] sm:$0xff] %v841_v20  ;;  %912 = vst [vmem:[%s1600_s2 + $0x40] sm:$0xff] %v873_v21 }
 0x22b   : > { %v1167_v22 = vpop.f32.mrf.mxu0  ;;  %v1175_v23 = vpop.f32.mrf.mxu1 }
 0x22c   : > { %907 = vst [vmem:[%s1600_s2 + $0x18] sm:$0xff] %v1167_v22  ;;  %915 = vst [vmem:[%s1600_s2 + $0x58] sm:$0xff] %v1175_v23 }
 0x22d   : > { %v844_v24 = vpop.f32.mrf.mxu0  ;;  %v876_v25 = vpop.f32.mrf.mxu1 }
 0x22e   : > { %905 = vst [vmem:[%s1600_s2 + $0x8] sm:$0xff] %v844_v24  ;;  %913 = vst [vmem:[%s1600_s2 + $0x48] sm:$0xff] %v876_v25 }
 0x22f   : > { %v1170_v26 = vpop.f32.mrf.mxu0  ;;  %v1178_v27 = vpop.f32.mrf.mxu1 }
 0x230   : > { %910 = vst [vmem:[%s1600_s2 + $0x30] sm:$0xff] %v1170_v26  ;;  %918 = vst [vmem:[%s1600_s2 + $0x70] sm:$0xff] %v1178_v27 }
 0x231   : > { %v857_v28 = vpop.f32.mrf.mxu0  ;;  %v889_v29 = vpop.f32.mrf.mxu1 }
 0x232   : > { %908 = vst [vmem:[%s1600_s2 + $0x20] sm:$0xff] %v857_v28  ;;  %916 = vst [vmem:[%s1600_s2 + $0x60] sm:$0xff] %v889_v29 }
 0x233   : > { %v1171_v30 = vpop.f32.mrf.mxu0  ;;  %v1179_v31 = vpop.f32.mrf.mxu1 }
 0x234   : > { %911 = vst [vmem:[%s1600_s2 + $0x38] sm:$0xff] %v1171_v30  ;;  %919 = vst [vmem:[%s1600_s2 + $0x78] sm:$0xff] %v1179_v31 }
 0x235   : > { %v860_v32 = vpop.f32.mrf.mxu0  ;;  %v892_v33 = vpop.f32.mrf.mxu1 }
 0x236   : > { %909 = vst [vmem:[%s1600_s2 + $0x28] sm:$0xff] %v860_v32  ;;  %917 = vst [vmem:[%s1600_s2 + $0x68] sm:$0xff] %v892_v33 }
 0x237 PF: > { %s17_s24 = sadd.s32 1, %s1440_s24   ;;  %s1748_s11 = sld [smem:[#allocation6_spill]] }
 0x238   : > { %p14_p4 = scmp.ge.s32.totalorder %s17_s24, 18   ;;  %s1749_s12 = sld [smem:[#allocation7_spill]] }
 0x239   : > { %s1750_s13 = sld [smem:[#allocation8_spill]]  ;;  %s1751_s15 = smov %s1408_s16 }
 0x23a   : > { %s1752_s16 = smov %s1412_s17  ;;  %s1753_s17 = smov %s1558_s26 }
 0x23b   : > { %s1754_s18 = smov %s1428_s21  ;;  %s1755_s19 = smov %s1432_s22 }
 0x23c   : > { %s1756_s20 = smov %s1436_s23  ;;  %16 = sbr.rel (!%p14_p4) target bundleno = 10 (0xa), region = 90 }
 0x23d   : > { %s1757_s21 = smov %s1748_s11 }
 0x23e   : > { %s1758_s22 = smov %s1749_s12 }
 0x23f   : > { %s1759_s23 = smov %s1750_s13 }
 0x241   :  { %942 = vsyncpa [#allocation4], 1 }
 0x242   :  { %944 = vsyncpa [#allocation4 + $0x1], 1 }

// kernel: mbgcn_forward.10
= control target key start
LH: loop header
LB: loop body
LE: loop exit
PB: predicated region body
PF: predicated region fallthrough
CT: control target
= control target key end

     0   :  { %s1247_s12 = smov 0   ;;  %s1249_s13 = smov 0   ;;  %s1421_s0 = inlined_call_operand.vmem [shape: bf16[256,512], index: 0, kind: input, shape index: {}]   ;;  %s1422_s1 = inlined_call_operand.vmem [shape: bf16[256,128], index: 1, kind: input, shape index: {}]   ;;  %s1423_s2 = inlined_call_operand.vmem [shape: bf16[128,128], index: 2, kind: input, shape index: {}]   ;;  %s1424_s3 = inlined_call_operand.vmem [shape: f32[512,128], index: 3, kind: output, shape index: {}]  }
   0x1   :  { %s1251_s14 = smov 0   ;;  %s1253_s15 = smov 0  }
   0x2   :  { %s1255_s16 = smov 0   ;;  %s1257_s17 = smov 0  }
   0x3   :  { %s1259_s18 = smov 0  }
   0x4 LB: > { %s22_s19 = sadd.s32 1, %s1216_s16  ;;  %s25_s20 = sadd.s32 1, %s1220_s17  ;;  %s1224_s18 = sphi %s1259_s18, %s13_s18   ;;  %s1220_s17 = sphi %s1257_s17, %s1430_s17   ;;  %s1216_s16 = sphi %s1255_s16, %s1429_s16   ;;  %s1212_s15 = sphi %s1253_s15, %s1428_s15   ;;  %s1208_s14 = sphi %s1251_s14, %s1427_s14   ;;  %s1204_s13 = sphi %s1249_s13, %s1426_s13   ;;  %s1200_s12 = sphi %s1247_s12, %s1425_s12  }
   0x5   : > { %p23_p0 = scmp.ge.s32.totalorder %s22_s19, 2  ;;  %p41_p1 = scmp.ne.s32.totalorder %s1204_s13, %s1200_s12 }
   0x6   : > { %p42_p2 = scmp.eq.s32.totalorder %s1224_s18, 0  ;;  %s34_s24 = sadd.s32 1, %s1204_s13 }
   0x7   : > { %s1432_s19 = smov (%p23_p0, %s22_s19), 0  ;;  %s1434_s20 = smov (!%p23_p0, %s25_s20), %s1220_s17 }
   0x8   : > { %p43_p3 = por %p42_p2, %p41_p1  ;;  %p27_p4 = scmp.ge.s32.totalorder %s1434_s20, 4 }
   0x9   : > { %s29_s21 = ssub.s32 %s1216_s16, %s1432_s19  ;;  %p921_p6 = scmp.ge.s32.totalorder %s1224_s18, 8 }
   0xa   : > { %s1436_s20 = smov (%p27_p4, %s1434_s20), 0 }
   0xb   : > { %s30_s22 = ssub.s32 %s1220_s17, %s1436_s20  ;;  %143 = sbr.rel (%p921_p6) target bundleno = 33 (0x21), region = 20 }
   0xc   : > { %s31_s23 = sor.u32 %s30_s22, %s29_s21 }
   0xd   : > { %p32_p5 = scmp.eq.s32.totalorder %s31_s23, 0 }
   0xf   : > { %s1298_s25 = scalar_select %p32_p5, %s1204_s13, %s34_s24  }
  0x10   : > { %146 = sbr.rel (!%p43_p3) target bundleno = 33 (0x21), region = 24  ;;  %s148_s26 = sand.u32 (%p43_p3), 1, %s1204_s13  }
  0x11   : > { %s960_s27 = sshll.u32 (%p43_p3), %s1216_s16, 6  ;;  %s922_s28 = sshll.u32 (%p43_p3), %s148_s26, 6 }
  0x12   : > { %s153_s29 = sadd.s32 (%p43_p3), %s1220_s17, %s960_s27  ;;  %s150_s7 = scalar_lea.vmem (%p43_p3), [#allocation3], %s922_s28 }
  0x13   : > { %s925_s30 = sshll.u32 (%p43_p3), %s153_s29, 2 }
  0x14   : > { %s1307_s6 = scalar_lea.vmem (%p43_p3), %s1421_s0, %s925_s30 }
  0x15   : > { %v172_v0 = vld [vmem:[%s1307_s6] sm:$0xf]  ;;  %v174_v1 = vld [vmem:[%s1307_s6 + $0x10] sm:$0xf] }
  0x16   : > { %v176_v2 = vld [vmem:[%s1307_s6 + $0x20] sm:$0xf]  ;;  %173 = vst [vmem:[%s150_s7] sm:$0xf] %v172_v0  ;;  %175 = vst [vmem:[%s150_s7 + $0x4] sm:$0xf] %v174_v1 }
  0x17   : > { %177 = vst [vmem:[%s150_s7 + $0x8] sm:$0xf] %v176_v2  ;;  %v178_v3 = vld [vmem:[%s1307_s6 + $0x30] sm:$0xf]  ;;  %v180_v4 = vld [vmem:[%s1307_s6 + $0x40] sm:$0xf] }
  0x18   : > { %v182_v5 = vld [vmem:[%s1307_s6 + $0x50] sm:$0xf]  ;;  %179 = vst [vmem:[%s150_s7 + $0xc] sm:$0xf] %v178_v3  ;;  %181 = vst [vmem:[%s150_s7 + $0x10] sm:$0xf] %v180_v4 }
  0x19   : > { %183 = vst [vmem:[%s150_s7 + $0x14] sm:$0xf] %v182_v5  ;;  %v184_v6 = vld [vmem:[%s1307_s6 + $0x60] sm:$0xf]  ;;  %v186_v7 = vld [vmem:[%s1307_s6 + $0x70] sm:$0xf] }
  0x1a   : > { %v188_v8 = vld [vmem:[%s1307_s6 + $0x80] sm:$0xf]  ;;  %185 = vst [vmem:[%s150_s7 + $0x18] sm:$0xf] %v184_v6  ;;  %187 = vst [vmem:[%s150_s7 + $0x1c] sm:$0xf] %v186_v7 }
  0x1b   : > { %189 = vst [vmem:[%s150_s7 + $0x20] sm:$0xf] %v188_v8  ;;  %v190_v9 = vld [vmem:[%s1307_s6 + $0x90] sm:$0xf]  ;;  %v192_v10 = vld [vmem:[%s1307_s6 + $0xa0] sm:$0xf] }
  0x1c   : > { %v194_v11 = vld [vmem:[%s1307_s6 + $0xb0] sm:$0xf]  ;;  %191 = vst [vmem:[%s150_s7 + $0x24] sm:$0xf] %v190_v9  ;;  %193 = vst [vmem:[%s150_s7 + $0x28] sm:$0xf] %v192_v10 }
  0x1d   : > { %195 = vst [vmem:[%s150_s7 + $0x2c] sm:$0xf] %v194_v11  ;;  %v196_v12 = vld [vmem:[%s1307_s6 + $0xc0] sm:$0xf]  ;;  %v198_v13 = vld [vmem:[%s1307_s6 + $0xd0] sm:$0xf] }
  0x1e   : > { %v200_v14 = vld [vmem:[%s1307_s6 + $0xe0] sm:$0xf]  ;;  %197 = vst [vmem:[%s150_s7 + $0x30] sm:$0xf] %v196_v12  ;;  %199 = vst [vmem:[%s150_s7 + $0x34] sm:$0xf] %v198_v13 }
  0x1f   : > { %201 = vst [vmem:[%s150_s7 + $0x38] sm:$0xf] %v200_v14  ;;  %v202_v15 = vld [vmem:[%s1307_s6 + $0xf0] sm:$0xf] }
  0x20   : > { %203 = vst [vmem:[%s150_s7 + $0x3c] sm:$0xf] %v202_v15 }
  0x21 PF: > { %p926_p7 = scmp.ge.s32.totalorder %s1224_s18, 1  ;;  %p267_p8 = scmp.lt.s32.totalorder %s1224_s18, 9 }
  0x23   : > { %p268_p9 = pnand %p926_p7, %p267_p8 }
  0x24   : > { %s274_s8 = sand.u32 (!%p268_p9), 1, %s1200_s12   ;;  %s928_s9 = sshll.u32 (!%p268_p9), %s1208_s14, 4 }
  0x25   : > { %271 = sbr.rel (%p268_p9) target bundleno = 630 (0x276), region = 69  ;;  %s927_s10 = sshll.u32 (!%p268_p9), %s274_s8, 6 }
  0x26   : > { %p304_p10 = scmp.lt.s32.totalorder (!%p268_p9), %s928_s9, 31  ;;  %s930_s11 = sshll.u32 (!%p268_p9), %s1212_s15, 4 }
  0x27   : > { %p310_p11 = scmp.lt.s32.totalorder (!%p268_p9), %s930_s11, 63  ;;  %s1340_s12 = scalar_lea.vmem (!%p268_p9), [#allocation3], %s927_s10 }
  0x28   : > { %p932_p12 = scmp.ne.s32.totalorder (!%p268_p9), %s1208_s14, 0 }
  0x2a   : > { %s1438_s9 = smov (!%p304_p10, %s928_s9), 31  ;;  %s1440_s11 = smov (!%p310_p11, %s930_s11), 63 }
  0x2b   : > { %s929_s21 = sshll.u32 %s1438_s9, 2  ;;  %s931_s26 = sshll.u32 %s1440_s11, 3 }
  0x2c   : > { %s1333_s24 = scalar_lea.vmem %s1422_s1, %s929_s21  ;;  %s1338_s29 = scalar_lea.vmem %s1424_s3, %s931_s26 }
  0x2d   : > { %319 = sbr.rel (%p932_p12) target bundleno = 59 (0x3b), region = 77 }
  0x32   : > { %v1226_v16 = vmov 0.0  }
  0x33   : > { %320 = vst [vmem:[#allocation2 + $0x30] sm:$0xff] %v1226_v16  ;;  %321 = vst [vmem:[#allocation2] sm:$0xff] %v1226_v16 }
  0x34   : > { %322 = vst [vmem:[#allocation2 + $0x58] sm:$0xff] %v1226_v16  ;;  %323 = vst [vmem:[#allocation2 + $0x18] sm:$0xff] %v1226_v16 }
  0x35   : > { %324 = vst [vmem:[#allocation2 + $0x50] sm:$0xff] %v1226_v16  ;;  %325 = vst [vmem:[#allocation2 + $0x68] sm:$0xff] %v1226_v16 }
  0x36   : > { %326 = vst [vmem:[#allocation2 + $0x8] sm:$0xff] %v1226_v16  ;;  %327 = vst [vmem:[#allocation2 + $0x48] sm:$0xff] %v1226_v16 }
  0x37   : > { %328 = vst [vmem:[#allocation2 + $0x40] sm:$0xff] %v1226_v16  ;;  %329 = vst [vmem:[#allocation2 + $0x20] sm:$0xff] %v1226_v16 }
  0x38   : > { %330 = vst [vmem:[#allocation2 + $0x10] sm:$0xff] %v1226_v16  ;;  %331 = vst [vmem:[#allocation2 + $0x38] sm:$0xff] %v1226_v16 }
  0x39   : > { %332 = vst [vmem:[#allocation2 + $0x60] sm:$0xff] %v1226_v16  ;;  %333 = vst [vmem:[#allocation2 + $0x70] sm:$0xff] %v1226_v16 }
  0x3a   : > { %334 = vst [vmem:[#allocation2 + $0x78] sm:$0xff] %v1226_v16  ;;  %335 = vst [vmem:[#allocation2 + $0x28] sm:$0xff] %v1226_v16 }
  0x3b PF: > { %v1146_v17 = vld [vmem:[%s1340_s12] sm:$0xff]   ;;  %v1147_v18 = vld [vmem:[%s1340_s12 + $0x8] sm:$0xff]   ;;  %v1148_v19 = vld [vmem:[%s1340_s12 + $0x10] sm:$0xff]   ;;  %p949_p13 = scmp.ne.s32.totalorder %s1208_s14, 1 }
  0x3c   : > { %432 = vxpose.xlu0.c.b16.start [1/8] %v1146_v17, 128  ;;  %v1154_v20 = vld [vmem:[%s1333_s24 + $0x38] sm:$0xff]   ;;  %v1155_v21 = vld [vmem:[%s1333_s24 + $0x30] sm:$0xff]   ;;  %v1156_v23 = vld [vmem:[%s1333_s24 + $0x28] sm:$0xff]  }
  0x3d   : > { %v1149_v22 = vld [vmem:[%s1340_s12 + $0x18] sm:$0xff]   ;;  %993 = vmatprep.subr.bf16.mxu0 %v1154_v20  ;;  %1057 = vmatprep.subr.bf16.mxu1 %v1154_v20  ;;  %v1150_v24 = vld [vmem:[%s1340_s12 + $0x20] sm:$0xff]   ;;  %v1151_v26 = vld [vmem:[%s1340_s12 + $0x28] sm:$0xff]  }
  0x3e   : > { %994 = vmatpush3.bf16.msra.mxu0 %v1154_v20  ;;  %1065 = vmatpush3.bf16.msra.mxu1 %v1154_v20  ;;  %v1157_v25 = vld [vmem:[%s1333_s24 + $0x20] sm:$0xff]   ;;  %v1158_v27 = vld [vmem:[%s1333_s24 + $0x18] sm:$0xff]   ;;  %v1152_v28 = vld [vmem:[%s1340_s12 + $0x30] sm:$0xff]  }
  0x3f   : > { %995 = vmatprep.subr.bf16.mxu0 %v1155_v21  ;;  %1058 = vmatprep.subr.bf16.mxu1 %v1155_v21  ;;  %v1159_v29 = vld [vmem:[%s1333_s24 + $0x10] sm:$0xff]   ;;  %v1153_v30 = vld [vmem:[%s1340_s12 + $0x38] sm:$0xff]   ;;  %v1160_v31 = vld [vmem:[%s1333_s24 + $0x8] sm:$0xff]  }
  0x40   : > { %433 = vxpose.xlu0.c.b16.cont [2/8] %v1147_v18, 128  ;;  %v1161_v32 = vld [vmem:[%s1333_s24] sm:$0xff]   ;;  %v338_v41 = vld [vmem:[#allocation2 + $0x58] sm:$0xff]  ;;  %v336_v43 = vld [vmem:[#allocation2 + $0x30] sm:$0xff] }
  0x41   : > { %v339_v46 = vld [vmem:[#allocation2 + $0x18] sm:$0xff]  ;;  %v337_v49 = vld [vmem:[#allocation2] sm:$0xff]  ;;  %v342_v52 = vld [vmem:[#allocation2 + $0x8] sm:$0xff] }
  0x42   : > { %996 = vmatpush3.bf16.msra.mxu0 %v1155_v21  ;;  %1066 = vmatpush3.bf16.msra.mxu1 %v1155_v21  ;;  %v340_v55 = vld [vmem:[#allocation2 + $0x50] sm:$0xff]  ;;  %v343_v58 = vld [vmem:[#allocation2 + $0x48] sm:$0xff]  ;;  %v344_v3 = vld [vmem:[#allocation2 + $0x40] sm:$0xff] }
  0x43   : > { %997 = vmatprep.subr.bf16.mxu0 %v1156_v23  ;;  %1059 = vmatprep.subr.bf16.mxu1 %v1156_v23  ;;  %v341_v61 = vld [vmem:[#allocation2 + $0x68] sm:$0xff]  ;;  %v346_v0 = vld [vmem:[#allocation2 + $0x10] sm:$0xff]  ;;  %v347_v6 = vld [vmem:[#allocation2 + $0x38] sm:$0xff] }
  0x44   : > { %434 = vxpose.xlu0.c.b16.cont [3/8] %v1148_v19, 128  ;;  %v345_v9 = vld [vmem:[#allocation2 + $0x20] sm:$0xff]  ;;  %v350_v12 = vld [vmem:[#allocation2 + $0x78] sm:$0xff]  ;;  %v351_v18 = vld [vmem:[#allocation2 + $0x28] sm:$0xff] }
  0x45   : > { %v348_v15 = vld [vmem:[#allocation2 + $0x60] sm:$0xff]  ;;  %v349_v21 = vld [vmem:[#allocation2 + $0x70] sm:$0xff] }
  0x46   : > { %998 = vmatpush3.bf16.msra.mxu0 %v1156_v23  ;;  %1067 = vmatpush3.bf16.msra.mxu1 %v1156_v23 }
  0x47   : > { %999 = vmatprep.subr.bf16.mxu0 %v1157_v25  ;;  %1060 = vmatprep.subr.bf16.mxu1 %v1157_v25 }
  0x48   : > { %435 = vxpose.xlu0.c.b16.cont [4/8] %v1149_v22, 128 }
  0x4a   : > { %1000 = vmatpush3.bf16.msra.mxu0 %v1157_v25  ;;  %1068 = vmatpush3.bf16.msra.mxu1 %v1157_v25 }
  0x4b   : > { %1001 = vmatprep.subr.bf16.mxu0 %v1158_v27  ;;  %1061 = vmatprep.subr.bf16.mxu1 %v1158_v27 }
  0x4c   : > { %436 = vxpose.xlu0.c.b16.cont [5/8] %v1150_v24, 128 }
  0x4e   : > { %1002 = vmatpush3.bf16.msra.mxu0 %v1158_v27  ;;  %1069 = vmatpush3.bf16.msra.mxu1 %v1158_v27 }
  0x4f   : > { %1003 = vmatprep.subr.bf16.mxu0 %v1159_v29  ;;  %1062 = vmatprep.subr.bf16.mxu1 %v1159_v29 }
  0x50   : > { %437 = vxpose.xlu0.c.b16.cont [6/8] %v1151_v26, 128 }
  0x52   : > { %1004 = vmatpush3.bf16.msra.mxu0 %v1159_v29  ;;  %1070 = vmatpush3.bf16.msra.mxu1 %v1159_v29 }
  0x53   : > { %1005 = vmatprep.subr.bf16.mxu0 %v1160_v31  ;;  %1063 = vmatprep.subr.bf16.mxu1 %v1160_v31 }
  0x54   : > { %438 = vxpose.xlu0.c.b16.cont [7/8] %v1152_v28, 128 }
  0x56   : > { %1006 = vmatpush3.bf16.msra.mxu0 %v1160_v31  ;;  %1071 = vmatpush3.bf16.msra.mxu1 %v1160_v31 }
  0x57   : > { %1007 = vmatprep.subr.bf16.mxu0 %v1161_v32  ;;  %1064 = vmatprep.subr.bf16.mxu1 %v1161_v32 }
  0x58   : > { %439 = vxpose.xlu0.c.b16.end [8/8] %v1153_v30, 128 }
  0x5a   : > { %1008 = vmatpush3.bf16.msra.mxu0 %v1161_v32  ;;  %1072 = vmatpush3.bf16.msra.mxu1 %v1161_v32 }
  0x9e   : > { %v440_v33 = vpop.trf.xlu0 }
  0x9f   : > { %1009 = vmatprep.mubr.bf16.mxu0 %v440_v33 }
  0xa2   : > { %v441_v34 = vpop.trf.xlu0 }
  0xa3   : > { %1010 = vmatmul.mubr.bf16.vlgmr.msra.gmra.mxu0 %v441_v34 }
  0xa6   : > { %v442_v35 = vpop.trf.xlu0 }
  0xa7   : > { %1013 = vmatprep.mubr.bf16.mxu0 %v442_v35 }
  0xaa   : > { %v443_v36 = vpop.trf.xlu0 }
  0xab   : > { %1014 = vmatmul.mubr.bf16.gmra.mxu0 %v443_v36 }
  0xae   : > { %v444_v37 = vpop.trf.xlu0 }
  0xaf   : > { %1017 = vmatprep.mubr.bf16.mxu1 %v444_v37 }
  0xb2   : > { %v445_v38 = vpop.trf.xlu0 }
  0xb3   : > { %1018 = vmatmul.mubr.bf16.vlgmr.msra.gmra.mxu1 %v445_v38 }
  0xb6   : > { %v446_v39 = vpop.trf.xlu0 }
  0xb7   : > { %1021 = vmatprep.mubr.bf16.mxu1 %v446_v39 }
  0xba   : > { %v447_v40 = vpop.trf.xlu0 }
  0xbb   : > { %1022 = vmatmul.mubr.bf16.gmra.mxu1 %v447_v40 }
 0x163   : > { %v1011_v42 = vpop.f32.mrf.mxu0 }
 0x164   : > { %v595_v44 = vadd.f32 %v1011_v42, %v338_v41 }
 0x165   : > { %v530_v45 = vpop.f32.mrf.mxu0 }
 0x166   : > { %611 = vst [vmem:[#allocation2 + $0x58] sm:$0xff] %v595_v44  ;;  %v593_v47 = vadd.f32 %v530_v45, %v336_v43 }
 0x167   : > { %v1012_v48 = vpop.f32.mrf.mxu0 }
 0x168   : > { %609 = vst [vmem:[#allocation2 + $0x30] sm:$0xff] %v593_v47  ;;  %v596_v50 = vadd.f32 %v1012_v48, %v339_v46 }
 0x169   : > { %v533_v51 = vpop.f32.mrf.mxu0 }
 0x16a   : > { %612 = vst [vmem:[#allocation2 + $0x18] sm:$0xff] %v596_v50  ;;  %v594_v53 = vadd.f32 %v533_v51, %v337_v49 }
 0x16b   : > { %v1015_v54 = vpop.f32.mrf.mxu0 }
 0x16c   : > { %610 = vst [vmem:[#allocation2] sm:$0xff] %v594_v53  ;;  %v599_v56 = vadd.f32 %v1015_v54, %v342_v52 }
 0x16d   : > { %v546_v57 = vpop.f32.mrf.mxu0 }
 0x16e   : > { %615 = vst [vmem:[#allocation2 + $0x8] sm:$0xff] %v599_v56  ;;  %v597_v59 = vadd.f32 %v546_v57, %v340_v55 }
 0x16f   : > { %v1016_v60 = vpop.f32.mrf.mxu0 }
 0x170   : > { %613 = vst [vmem:[#allocation2 + $0x50] sm:$0xff] %v597_v59  ;;  %v600_v62 = vadd.f32 %v1016_v60, %v343_v58 }
 0x171   : > { %v549_v63 = vpop.f32.mrf.mxu0 }
 0x172   : > { %616 = vst [vmem:[#allocation2 + $0x48] sm:$0xff] %v600_v62  ;;  %v598_v1 = vadd.f32 %v549_v63, %v341_v61 }
 0x173   : > { %v1019_v2 = vpop.f32.mrf.mxu1 }
 0x174   : > { %614 = vst [vmem:[#allocation2 + $0x68] sm:$0xff] %v598_v1  ;;  %v603_v4 = vadd.f32 %v1019_v2, %v346_v0 }
 0x175   : > { %v562_v5 = vpop.f32.mrf.mxu1 }
 0x176   : > { %619 = vst [vmem:[#allocation2 + $0x10] sm:$0xff] %v603_v4  ;;  %v601_v7 = vadd.f32 %v562_v5, %v344_v3 }
 0x177   : > { %v1020_v8 = vpop.f32.mrf.mxu1 }
 0x178   : > { %617 = vst [vmem:[#allocation2 + $0x40] sm:$0xff] %v601_v7  ;;  %v604_v10 = vadd.f32 %v1020_v8, %v347_v6 }
 0x179   : > { %v565_v11 = vpop.f32.mrf.mxu1 }
 0x17a   : > { %620 = vst [vmem:[#allocation2 + $0x38] sm:$0xff] %v604_v10  ;;  %v602_v13 = vadd.f32 %v565_v11, %v345_v9 }
 0x17b   : > { %v1023_v14 = vpop.f32.mrf.mxu1 }
 0x17c   : > { %618 = vst [vmem:[#allocation2 + $0x20] sm:$0xff] %v602_v13  ;;  %v607_v16 = vadd.f32 %v1023_v14, %v350_v12 }
 0x17d   : > { %v578_v17 = vpop.f32.mrf.mxu1 }
 0x17e   : > { %623 = vst [vmem:[#allocation2 + $0x78] sm:$0xff] %v607_v16  ;;  %v605_v19 = vadd.f32 %v578_v17, %v348_v15 }
 0x17f   : > { %v1024_v20 = vpop.f32.mrf.mxu1 }
 0x180   : > { %621 = vst [vmem:[#allocation2 + $0x60] sm:$0xff] %v605_v19  ;;  %v608_v22 = vadd.f32 %v1024_v20, %v351_v18  ;;  %628 = sbr.rel (%p949_p13) target bundleno = 630 (0x276), region = 81 }
 0x181   : > { %v581_v23 = vpop.f32.mrf.mxu1 }
 0x182   : > { %624 = vst [vmem:[#allocation2 + $0x28] sm:$0xff] %v608_v22  ;;  %v606_v24 = vadd.f32 %v581_v23, %v349_v21 }
 0x184   : > { %622 = vst [vmem:[#allocation2 + $0x70] sm:$0xff] %v606_v24 }
 0x185   : > { %v1162_v25 = vld [vmem:[%s1423_s2 + $0x38] sm:$0xff]   ;;  %v1163_v26 = vld [vmem:[%s1423_s2 + $0x30] sm:$0xff]   ;;  %v1164_v27 = vld [vmem:[%s1423_s2 + $0x28] sm:$0xff]  }
 0x186   : > { %1025 = vmatprep.subr.bf16.mxu0 %v1162_v25  ;;  %1073 = vmatprep.subr.bf16.mxu1 %v1162_v25  ;;  %v1165_v28 = vld [vmem:[%s1423_s2 + $0x20] sm:$0xff]   ;;  %v629_v29 = vld [vmem:[#allocation2 + $0x30] sm:$0xff]  ;;  %v1166_v35 = vld [vmem:[%s1423_s2 + $0x18] sm:$0xff]  }
 0x187   : > { %1026 = vmatpush3.bf16.msra.mxu0 %v1162_v25  ;;  %1081 = vmatpush3.bf16.msra.mxu1 %v1162_v25  ;;  %v630_v30 = vld [vmem:[#allocation2] sm:$0xff]  ;;  %v1167_v36 = vld [vmem:[%s1423_s2 + $0x10] sm:$0xff]   ;;  %v1168_v37 = vld [vmem:[%s1423_s2 + $0x8] sm:$0xff]  }
 0x188   : > { %1027 = vmatprep.subr.bf16.mxu0 %v1163_v26  ;;  %1074 = vmatprep.subr.bf16.mxu1 %v1163_v26  ;;  %v637_v31 = vld [vmem:[#allocation2 + $0x40] sm:$0xff]  ;;  %v645_v32 = vpack.c.bf16 %v630_v30, %v629_v29  ;;  %v631_v39 = vld [vmem:[#allocation2 + $0x58] sm:$0xff]  ;;  %v639_v41 = vld [vmem:[#allocation2 + $0x10] sm:$0xff] }
 0x189   : > { %v638_v33 = vld [vmem:[#allocation2 + $0x20] sm:$0xff]  ;;  %v632_v40 = vld [vmem:[#allocation2 + $0x18] sm:$0xff]  ;;  %v633_v43 = vld [vmem:[#allocation2 + $0x50] sm:$0xff] }
 0x18a   : > { %v649_v34 = vpack.c.bf16 %v638_v33, %v637_v31  ;;  %1041 = vmatprep.mubr.bf16.mxu0 %v645_v32  ;;  %v1169_v38 = vld [vmem:[%s1423_s2] sm:$0xff]   ;;  %v640_v42 = vld [vmem:[#allocation2 + $0x38] sm:$0xff]  ;;  %v634_v44 = vld [vmem:[#allocation2 + $0x68] sm:$0xff]  ;;  %v646_v47 = vpack.c.bf16 %v632_v40, %v631_v39 }
 0x18b   : > { %1028 = vmatpush3.bf16.msra.mxu0 %v1163_v26  ;;  %1082 = vmatpush3.bf16.msra.mxu1 %v1163_v26  ;;  %v641_v45 = vld [vmem:[#allocation2 + $0x60] sm:$0xff]  ;;  %v642_v46 = vld [vmem:[#allocation2 + $0x70] sm:$0xff]  ;;  %v650_v48 = vpack.c.bf16 %v640_v42, %v639_v41  ;;  %v647_v49 = vpack.c.bf16 %v634_v44, %v633_v43  ;;  %v635_v51 = vld [vmem:[#allocation2 + $0x8] sm:$0xff] }
 0x18c   : > { %1029 = vmatprep.subr.bf16.mxu0 %v1164_v27  ;;  %1075 = vmatprep.subr.bf16.mxu1 %v1164_v27  ;;  %v651_v50 = vpack.c.bf16 %v642_v46, %v641_v45  ;;  %v636_v52 = vld [vmem:[#allocation2 + $0x48] sm:$0xff]  ;;  %v643_v53 = vld [vmem:[#allocation2 + $0x78] sm:$0xff] }
 0x18d   : > { %1049 = vmatprep.mubr.bf16.mxu1 %v649_v34  ;;  %v644_v54 = vld [vmem:[#allocation2 + $0x28] sm:$0xff]  ;;  %v648_v55 = vpack.c.bf16 %v636_v52, %v635_v51 }
 0x18e   : > { %v652_v56 = vpack.c.bf16 %v644_v54, %v643_v53 }
 0x18f   : > { %1030 = vmatpush3.bf16.msra.mxu0 %v1164_v27  ;;  %1083 = vmatpush3.bf16.msra.mxu1 %v1164_v27 }
 0x190   : > { %1031 = vmatprep.subr.bf16.mxu0 %v1165_v28  ;;  %1076 = vmatprep.subr.bf16.mxu1 %v1165_v28 }
 0x193   : > { %1032 = vmatpush3.bf16.msra.mxu0 %v1165_v28  ;;  %1084 = vmatpush3.bf16.msra.mxu1 %v1165_v28 }
 0x194   : > { %1033 = vmatprep.subr.bf16.mxu0 %v1166_v35  ;;  %1077 = vmatprep.subr.bf16.mxu1 %v1166_v35 }
 0x197   : > { %1034 = vmatpush3.bf16.msra.mxu0 %v1166_v35  ;;  %1085 = vmatpush3.bf16.msra.mxu1 %v1166_v35 }
 0x198   : > { %1035 = vmatprep.subr.bf16.mxu0 %v1167_v36  ;;  %1078 = vmatprep.subr.bf16.mxu1 %v1167_v36 }
 0x19b   : > { %1036 = vmatpush3.bf16.msra.mxu0 %v1167_v36  ;;  %1086 = vmatpush3.bf16.msra.mxu1 %v1167_v36 }
 0x19c   : > { %1037 = vmatprep.subr.bf16.mxu0 %v1168_v37  ;;  %1079 = vmatprep.subr.bf16.mxu1 %v1168_v37 }
 0x19f   : > { %1038 = vmatpush3.bf16.msra.mxu0 %v1168_v37  ;;  %1087 = vmatpush3.bf16.msra.mxu1 %v1168_v37 }
 0x1a0   : > { %1039 = vmatprep.subr.bf16.mxu0 %v1169_v38  ;;  %1080 = vmatprep.subr.bf16.mxu1 %v1169_v38 }
 0x1a3   : > { %1040 = vmatpush3.bf16.msra.mxu0 %v1169_v38  ;;  %1088 = vmatpush3.bf16.msra.mxu1 %v1169_v38 }
 0x1a6   : > { %1042 = vmatmul.mubr.bf16.vlgmr.msra.gmra.mxu0 %v646_v47  ;;  %1050 = vmatmul.mubr.bf16.vlgmr.msra.gmra.mxu1 %v650_v48 }
 0x1a7   : > { %1045 = vmatprep.mubr.bf16.mxu0 %v647_v49  ;;  %1053 = vmatprep.mubr.bf16.mxu1 %v651_v50 }
 0x1ae   : > { %1046 = vmatmul.mubr.bf16.gmra.mxu0 %v648_v55  ;;  %1054 = vmatmul.mubr.bf16.gmra.mxu1 %v652_v56 }
 0x266   : > { %v1043_v57 = vpop.f32.mrf.mxu0  ;;  %v1051_v58 = vpop.f32.mrf.mxu1 }
 0x267   : > { %816 = vst [vmem:[%s1338_s29 + $0x10] sm:$0xff] %v1043_v57  ;;  %824 = vst [vmem:[%s1338_s29 + $0x50] sm:$0xff] %v1051_v58 }
 0x268   : > { %v751_v59 = vpop.f32.mrf.mxu0  ;;  %v783_v60 = vpop.f32.mrf.mxu1 }
 0x269   : > { %814 = vst [vmem:[%s1338_s29] sm:$0xff] %v751_v59  ;;  %822 = vst [vmem:[%s1338_s29 + $0x40] sm:$0xff] %v783_v60 }
 0x26a   : > { %v1044_v61 = vpop.f32.mrf.mxu0  ;;  %v1052_v62 = vpop.f32.mrf.mxu1 }
 0x26b   : > { %817 = vst [vmem:[%s1338_s29 + $0x18] sm:$0xff] %v1044_v61  ;;  %825 = vst [vmem:[%s1338_s29 + $0x58] sm:$0xff] %v1052_v62 }
 0x26c   : > { %v754_v63 = vpop.f32.mrf.mxu0  ;;  %v786_v0 = vpop.f32.mrf.mxu1 }
 0x26d   : > { %815 = vst [vmem:[%s1338_s29 + $0x8] sm:$0xff] %v754_v63  ;;  %823 = vst [vmem:[%s1338_s29 + $0x48] sm:$0xff] %v786_v0 }
 0x26e   : > { %v1047_v1 = vpop.f32.mrf.mxu0  ;;  %v1055_v2 = vpop.f32.mrf.mxu1 }
 0x26f   : > { %820 = vst [vmem:[%s1338_s29 + $0x30] sm:$0xff] %v1047_v1  ;;  %828 = vst [vmem:[%s1338_s29 + $0x70] sm:$0xff] %v1055_v2 }
 0x270   : > { %v767_v3 = vpop.f32.mrf.mxu0  ;;  %v799_v4 = vpop.f32.mrf.mxu1 }
 0x271   : > { %818 = vst [vmem:[%s1338_s29 + $0x20] sm:$0xff] %v767_v3  ;;  %826 = vst [vmem:[%s1338_s29 + $0x60] sm:$0xff] %v799_v4 }
 0x272   : > { %v1048_v5 = vpop.f32.mrf.mxu0  ;;  %v1056_v6 = vpop.f32.mrf.mxu1 }
 0x273   : > { %821 = vst [vmem:[%s1338_s29 + $0x38] sm:$0xff] %v1048_v5  ;;  %829 = vst [vmem:[%s1338_s29 + $0x78] sm:$0xff] %v1056_v6 }
 0x274   : > { %v770_v7 = vpop.f32.mrf.mxu0  ;;  %v802_v8 = vpop.f32.mrf.mxu1 }
 0x275   : > { %819 = vst [vmem:[%s1338_s29 + $0x28] sm:$0xff] %v770_v7  ;;  %827 = vst [vmem:[%s1338_s29 + $0x68] sm:$0xff] %v802_v8 }
 0x276 PF: > { %s13_s18 = sadd.s32 1, %s1224_s18   ;;  %s1425_s12 = smov %s1204_s13 }
 0x277   : > { %p10_p0 = scmp.ge.s32.totalorder %s13_s18, 10   ;;  %s1426_s13 = smov %s1298_s25 }
 0x278   : > { %s1427_s14 = smov %s1216_s16  ;;  %s1428_s15 = smov %s1220_s17 }
 0x279   : > { %s1429_s16 = smov %s1432_s19  ;;  %s1430_s17 = smov %s1436_s20 }
 0x27a   :  { %12 = sbr.rel (!%p10_p0) target bundleno = 4 (0x4), region = 119 }

// kernel: mbgcn_forward.7
= control target key start
LH: loop header
LB: loop body
LE: loop exit
PB: predicated region body
PF: predicated region fallthrough
CT: control target
= control target key end

     0   :  { %s1829_s0 = inlined_call_operand.vmem [shape: bf16[2,512,512], index: 0, kind: input, shape index: {}]   ;;  %s1830_s1 = inlined_call_operand.vmem [shape: bf16[512,128], index: 1, kind: input, shape index: {}]   ;;  %s1831_s2 = inlined_call_operand.vmem [shape: f32[2,512,1], index: 2, kind: input, shape index: {}]   ;;  %s1832_s3 = inlined_call_operand.vmem [shape: bf16[2,128,128], index: 3, kind: input, shape index: {}]   ;;  %s1833_s4 = inlined_call_operand.vmem [shape: f32[2,512,128], index: 4, kind: output, shape index: {}]  }
   0x1   :  { %1835 = sst [smem:[#allocation5_spill]] %s1829_s0 }
   0x2   :  { %s1614_s15 = smov 0   ;;  %s1616_s16 = smov 0  }
   0x3   :  { %s1618_s17 = smov 0   ;;  %s1620_s18 = smov 0  }
   0x4   :  { %s1622_s19 = smov 0   ;;  %s1624_s20 = smov 0  }
   0x5   :  { %s1626_s21 = smov 0   ;;  %s1628_s22 = smov 0  }
   0x6   :  { %s1630_s23 = smov 0  }
   0x7 LB: > { %s26_s24 = sadd.s32 1, %s1573_s20  ;;  %s29_s25 = sadd.s32 1, %s1577_s21  ;;  %s1585_s23 = sphi %s1630_s23, %s14_s23   ;;  %s1581_s22 = sphi %s1628_s22, %s1847_s22   ;;  %s1577_s21 = sphi %s1626_s21, %s1846_s21   ;;  %s1573_s20 = sphi %s1624_s20, %s1845_s20   ;;  %s1569_s19 = sphi %s1622_s19, %s1844_s19   ;;  %s1565_s18 = sphi %s1620_s18, %s1843_s18   ;;  %s1561_s17 = sphi %s1618_s17, %s1842_s17   ;;  %s1557_s16 = sphi %s1616_s16, %s1841_s16   ;;  %s1553_s15 = sphi %s1614_s15, %s1840_s15  }
   0x8   : > { %p27_p0 = scmp.ge.s32.totalorder %s26_s24, 4  ;;  %p51_p1 = scmp.ne.s32.totalorder %s1557_s16, %s1553_s15 }
   0x9   : > { %p52_p2 = scmp.eq.s32.totalorder %s1585_s23, 0  ;;  %s33_s26 = sadd.s32 1, %s1581_s22 }
   0xa   : > { %s1849_s25 = smov (!%p27_p0, %s29_s25), %s1577_s21  ;;  %s1855_s24 = smov (%p27_p0, %s26_s24), 0 }
   0xb   : > { %p31_p3 = scmp.ge.s32.totalorder %s1849_s25, 4  ;;  %p1666_p4 = por %p52_p2, %p51_p1 }
   0xc   : > { %s40_s29 = ssub.s32 %s1573_s20, %s1855_s24  ;;  %s44_s7 = sadd.s32 1, %s1557_s16 }
   0xd   : > { %s1851_s25 = smov (%p31_p3, %s1849_s25), 0  ;;  %s1853_s26 = smov (!%p31_p3, %s33_s26), %s1581_s22 }
   0xe   : > { %p35_p5 = scmp.ge.s32.totalorder %s1853_s26, 2  ;;  %s38_s28 = ssub.s32 %s1577_s21, %s1851_s25 }
   0xf   : > { %p1207_p7 = scmp.ge.s32.totalorder %s1585_s23, 32 }
  0x10   : > { %s1857_s26 = smov (%p35_p5, %s1853_s26), 0 }
  0x11   : > { %1837 = sst [smem:[#allocation4_spill]] %s1857_s26  ;;  %s37_s30 = ssub.s32 %s1581_s22, %s1857_s26 }
  0x12   : > { %s39_s5 = sor.u32 %s38_s28, %s37_s30  ;;  %185 = sbr.rel (%p1207_p7) target bundleno = 45 (0x2d), region = 16 }
  0x13   : > { %s41_s6 = sor.u32 %s40_s29, %s39_s5 }
  0x14   : > { %p42_p6 = scmp.eq.s32.totalorder %s41_s6, 0 }
  0x16   : > { %s1685_s8 = scalar_select %p42_p6, %s1557_s16, %s44_s7  }
  0x17   : > { %188 = sbr.rel (!%p1666_p4) target bundleno = 45 (0x2d), region = 20  ;;  %s190_s9 = sand.u32 (%p1666_p4), 1, %s1557_s16  }
  0x18   : > { %s1253_s10 = sshll.u32 (%p1666_p4), %s1577_s21, 6  ;;  %s1208_s11 = sshll.u32 (%p1666_p4), %s190_s9, 6 }
  0x19   : > { %s195_s12 = sadd.s32 (%p1666_p4), %s1573_s20, %s1253_s10  ;;  %s1211_s13 = sshll.u32 (%p1666_p4), %s1581_s22, 8 }
  0x1a   : > { %s197_s14 = sadd.s32 (%p1666_p4), %s1211_s13, %s195_s12  ;;  %s1838_s0 = sld [smem:[#allocation5_spill]] (%p1666_p4) }
  0x1b   : > { %s1212_s28 = sshll.u32 (%p1666_p4), %s197_s14, 2  ;;  %s192_s27 = scalar_lea.vmem (%p1666_p4), [#allocation3], %s1208_s11 }
  0x20   : > { %s1697_s5 = scalar_lea.vmem %s1838_s0, %s1212_s28 }
  0x21   : > { %v216_v0 = vld [vmem:[%s1697_s5] sm:$0xf]  ;;  %v218_v1 = vld [vmem:[%s1697_s5 + $0x10] sm:$0xf] }
  0x22   : > { %v220_v2 = vld [vmem:[%s1697_s5 + $0x20] sm:$0xf]  ;;  %217 = vst [vmem:[%s192_s27] sm:$0xf] %v216_v0  ;;  %219 = vst [vmem:[%s192_s27 + $0x4] sm:$0xf] %v218_v1 }
  0x23   : > { %221 = vst [vmem:[%s192_s27 + $0x8] sm:$0xf] %v220_v2  ;;  %v222_v3 = vld [vmem:[%s1697_s5 + $0x30] sm:$0xf]  ;;  %v224_v4 = vld [vmem:[%s1697_s5 + $0x40] sm:$0xf] }
  0x24   : > { %v226_v5 = vld [vmem:[%s1697_s5 + $0x50] sm:$0xf]  ;;  %223 = vst [vmem:[%s192_s27 + $0xc] sm:$0xf] %v222_v3  ;;  %225 = vst [vmem:[%s192_s27 + $0x10] sm:$0xf] %v224_v4 }
  0x25   : > { %227 = vst [vmem:[%s192_s27 + $0x14] sm:$0xf] %v226_v5  ;;  %v228_v6 = vld [vmem:[%s1697_s5 + $0x60] sm:$0xf]  ;;  %v230_v7 = vld [vmem:[%s1697_s5 + $0x70] sm:$0xf] }
  0x26   : > { %v232_v8 = vld [vmem:[%s1697_s5 + $0x80] sm:$0xf]  ;;  %229 = vst [vmem:[%s192_s27 + $0x18] sm:$0xf] %v228_v6  ;;  %231 = vst [vmem:[%s192_s27 + $0x1c] sm:$0xf] %v230_v7 }
  0x27   : > { %233 = vst [vmem:[%s192_s27 + $0x20] sm:$0xf] %v232_v8  ;;  %v234_v9 = vld [vmem:[%s1697_s5 + $0x90] sm:$0xf]  ;;  %v236_v10 = vld [vmem:[%s1697_s5 + $0xa0] sm:$0xf] }
  0x28   : > { %v238_v11 = vld [vmem:[%s1697_s5 + $0xb0] sm:$0xf]  ;;  %235 = vst [vmem:[%s192_s27 + $0x24] sm:$0xf] %v234_v9  ;;  %237 = vst [vmem:[%s192_s27 + $0x28] sm:$0xf] %v236_v10 }
  0x29   : > { %239 = vst [vmem:[%s192_s27 + $0x2c] sm:$0xf] %v238_v11  ;;  %v240_v12 = vld [vmem:[%s1697_s5 + $0xc0] sm:$0xf]  ;;  %v242_v13 = vld [vmem:[%s1697_s5 + $0xd0] sm:$0xf] }
  0x2a   : > { %v244_v14 = vld [vmem:[%s1697_s5 + $0xe0] sm:$0xf]  ;;  %241 = vst [vmem:[%s192_s27 + $0x30] sm:$0xf] %v240_v12  ;;  %243 = vst [vmem:[%s192_s27 + $0x34] sm:$0xf] %v242_v13 }
  0x2b   : > { %245 = vst [vmem:[%s192_s27 + $0x38] sm:$0xf] %v244_v14  ;;  %v246_v15 = vld [vmem:[%s1697_s5 + $0xf0] sm:$0xf] }
  0x2c   : > { %247 = vst [vmem:[%s192_s27 + $0x3c] sm:$0xf] %v246_v15 }
  0x2d PF: > { %p1213_p8 = scmp.ge.s32.totalorder %s1585_s23, 1  ;;  %p332_p9 = scmp.lt.s32.totalorder %s1585_s23, 33 }
  0x2f   : > { %p333_p10 = pnand %p1213_p8, %p332_p9 }
  0x30   : > { %s339_s6 = sand.u32 (!%p333_p10), 1, %s1553_s15   ;;  %s1215_s7 = sshll.u32 (!%p333_p10), %s1561_s17, 4 }
  0x31   : > { %336 = sbr.rel (%p333_p10) target bundleno = 689 (0x2b1), region = 73  ;;  %s1214_s9 = sshll.u32 (!%p333_p10), %s339_s6, 6 }
  0x32   : > { %p389_p11 = scmp.lt.s32.totalorder (!%p333_p10), %s1215_s7, 63  ;;  %s1217_s10 = sshll.u32 (!%p333_p10), %s1565_s18, 4 }
  0x33   : > { %p395_p12 = scmp.lt.s32.totalorder (!%p333_p10), %s1569_s19, 1  ;;  %p397_p13 = scmp.lt.s32.totalorder (!%p333_p10), %s1217_s10, 63 }
  0x34   : > { %s1742_s12 = scalar_lea.vmem (!%p333_p10), [#allocation3], %s1214_s9  ;;  %p1225_p0 = scmp.ne.s32.totalorder (!%p333_p10), %s1561_s17, 0 }
  0x36   : > { %s1859_s7 = smov (!%p389_p11, %s1215_s7), 63  ;;  %s1861_s19 = smov (!%p395_p12, %s1569_s19), 1 }
  0x37   : > { %s1216_s11 = sshll.u32 %s1859_s7, 2  ;;  %s1863_s10 = smov (!%p397_p13, %s1217_s10), 63 }
  0x38   : > { %s1724_s14 = scalar_lea.vmem %s1830_s1, %s1216_s11  ;;  %s1218_s28 = sshll.u32 %s1861_s19, 6 }
  0x39   : > { %s400_s29 = sadd.s32 %s1218_s28, %s1863_s10  ;;  %s1730_s15 = scalar_lea.vmem %s1832_s3, %s1218_s28 }
  0x3a   : > { %s1219_s27 = sshll.u32 %s400_s29, 3  ;;  %423 = sbr.rel (%p1225_p0) target bundleno = 72 (0x48), region = 81 }
  0x3b   : > { %s1735_s0 = scalar_lea.vmem %s1831_s2, %s1219_s27  ;;  %s1740_s11 = scalar_lea.vmem %s1833_s4, %s1219_s27 }
  0x3f   : > { %v1587_v16 = vmov 0.0  }
  0x40   : > { %424 = vst [vmem:[#allocation2 + $0x30] sm:$0xff] %v1587_v16  ;;  %425 = vst [vmem:[#allocation2] sm:$0xff] %v1587_v16 }
  0x41   : > { %426 = vst [vmem:[#allocation2 + $0x58] sm:$0xff] %v1587_v16  ;;  %427 = vst [vmem:[#allocation2 + $0x18] sm:$0xff] %v1587_v16 }
  0x42   : > { %428 = vst [vmem:[#allocation2 + $0x50] sm:$0xff] %v1587_v16  ;;  %429 = vst [vmem:[#allocation2 + $0x68] sm:$0xff] %v1587_v16 }
  0x43   : > { %430 = vst [vmem:[#allocation2 + $0x8] sm:$0xff] %v1587_v16  ;;  %431 = vst [vmem:[#allocation2 + $0x48] sm:$0xff] %v1587_v16 }
  0x44   : > { %432 = vst [vmem:[#allocation2 + $0x40] sm:$0xff] %v1587_v16  ;;  %433 = vst [vmem:[#allocation2 + $0x20] sm:$0xff] %v1587_v16 }
  0x45   : > { %434 = vst [vmem:[#allocation2 + $0x10] sm:$0xff] %v1587_v16  ;;  %435 = vst [vmem:[#allocation2 + $0x38] sm:$0xff] %v1587_v16 }
  0x46   : > { %436 = vst [vmem:[#allocation2 + $0x60] sm:$0xff] %v1587_v16  ;;  %437 = vst [vmem:[#allocation2 + $0x70] sm:$0xff] %v1587_v16 }
  0x47   : > { %438 = vst [vmem:[#allocation2 + $0x78] sm:$0xff] %v1587_v16  ;;  %439 = vst [vmem:[#allocation2 + $0x28] sm:$0xff] %v1587_v16 }
  0x48 PF: > { %v1457_v17 = vld [vmem:[%s1724_s14 + $0x38] sm:$0xff]   ;;  %v1458_v18 = vld [vmem:[%s1724_s14 + $0x30] sm:$0xff]   ;;  %v1459_v19 = vld [vmem:[%s1724_s14 + $0x28] sm:$0xff]   ;;  %p1242_p1 = scmp.ne.s32.totalorder %s1561_s17, 3 }
  0x49   : > { %1287 = vmatprep.subr.bf16.mxu0 %v1457_v17  ;;  %1351 = vmatprep.subr.bf16.mxu1 %v1457_v17  ;;  %v1460_v20 = vld [vmem:[%s1724_s14 + $0x20] sm:$0xff]   ;;  %v1461_v23 = vld [vmem:[%s1724_s14 + $0x18] sm:$0xff]   ;;  %v1462_v24 = vld [vmem:[%s1724_s14 + $0x10] sm:$0xff]  }
  0x4a   : > { %1288 = vmatpush3.bf16.msra.mxu0 %v1457_v17  ;;  %1359 = vmatpush3.bf16.msra.mxu1 %v1457_v17  ;;  %v1465_v21 = vld [vmem:[%s1742_s12] sm:$0xff]   ;;  %v1463_v25 = vld [vmem:[%s1724_s14 + $0x8] sm:$0xff]   ;;  %v1469_v29 = vld [vmem:[%s1742_s12 + $0x10] sm:$0xff]  }
  0x4b   : > { %1289 = vmatprep.subr.bf16.mxu0 %v1458_v18  ;;  %1352 = vmatprep.subr.bf16.mxu1 %v1458_v18  ;;  %v1466_v22 = vld [vmem:[%s1742_s12 + $0x20] sm:$0xff]   ;;  %v1467_v27 = vld [vmem:[%s1742_s12 + $0x8] sm:$0xff]   ;;  %v1470_v30 = vld [vmem:[%s1742_s12 + $0x30] sm:$0xff]  }
  0x4c   : > { %1303 = vmatprep.mubr.bf16.mxu0 %v1465_v21  ;;  %1311 = vmatprep.mubr.bf16.mxu1 %v1466_v22  ;;  %v1464_v26 = vld [vmem:[%s1724_s14] sm:$0xff]   ;;  %v1468_v28 = vld [vmem:[%s1742_s12 + $0x28] sm:$0xff]   ;;  %v1471_v31 = vld [vmem:[%s1742_s12 + $0x18] sm:$0xff]  }
  0x4d   : > { %v1472_v32 = vld [vmem:[%s1742_s12 + $0x38] sm:$0xff]   ;;  %v450_v34 = vld [vmem:[#allocation2 + $0x10] sm:$0xff]  ;;  %v448_v38 = vld [vmem:[#allocation2 + $0x40] sm:$0xff] }
  0x4e   : > { %1290 = vmatpush3.bf16.msra.mxu0 %v1458_v18  ;;  %1360 = vmatpush3.bf16.msra.mxu1 %v1458_v18  ;;  %v442_v33 = vld [vmem:[#allocation2 + $0x58] sm:$0xff]  ;;  %v440_v37 = vld [vmem:[#allocation2 + $0x30] sm:$0xff]  ;;  %v441_v49 = vld [vmem:[#allocation2] sm:$0xff] }
  0x4f   : > { %1291 = vmatprep.subr.bf16.mxu0 %v1459_v19  ;;  %1353 = vmatprep.subr.bf16.mxu1 %v1459_v19  ;;  %v443_v43 = vld [vmem:[#allocation2 + $0x18] sm:$0xff]  ;;  %v449_v50 = vld [vmem:[#allocation2 + $0x20] sm:$0xff]  ;;  %v446_v55 = vld [vmem:[#allocation2 + $0x8] sm:$0xff] }
  0x50   : > { %v451_v44 = vld [vmem:[#allocation2 + $0x38] sm:$0xff]  ;;  %v444_v61 = vld [vmem:[#allocation2 + $0x50] sm:$0xff]  ;;  %v452_v62 = vld [vmem:[#allocation2 + $0x60] sm:$0xff] }
  0x51   : > { %v454_v56 = vld [vmem:[#allocation2 + $0x78] sm:$0xff]  ;;  %v447_v3 = vld [vmem:[#allocation2 + $0x48] sm:$0xff]  ;;  %v453_v10 = vld [vmem:[#allocation2 + $0x70] sm:$0xff] }
  0x52   : > { %1292 = vmatpush3.bf16.msra.mxu0 %v1459_v19  ;;  %1361 = vmatpush3.bf16.msra.mxu1 %v1459_v19  ;;  %v455_v4 = vld [vmem:[#allocation2 + $0x28] sm:$0xff] }
  0x53   : > { %1293 = vmatprep.subr.bf16.mxu0 %v1460_v20  ;;  %1354 = vmatprep.subr.bf16.mxu1 %v1460_v20  ;;  %v445_v9 = vld [vmem:[#allocation2 + $0x68] sm:$0xff] }
  0x56   : > { %1294 = vmatpush3.bf16.msra.mxu0 %v1460_v20  ;;  %1362 = vmatpush3.bf16.msra.mxu1 %v1460_v20 }
  0x57   : > { %1295 = vmatprep.subr.bf16.mxu0 %v1461_v23  ;;  %1355 = vmatprep.subr.bf16.mxu1 %v1461_v23 }
  0x5a   : > { %1296 = vmatpush3.bf16.msra.mxu0 %v1461_v23  ;;  %1363 = vmatpush3.bf16.msra.mxu1 %v1461_v23 }
  0x5b   : > { %1297 = vmatprep.subr.bf16.mxu0 %v1462_v24  ;;  %1356 = vmatprep.subr.bf16.mxu1 %v1462_v24 }
  0x5e   : > { %1298 = vmatpush3.bf16.msra.mxu0 %v1462_v24  ;;  %1364 = vmatpush3.bf16.msra.mxu1 %v1462_v24 }
  0x5f   : > { %1299 = vmatprep.subr.bf16.mxu0 %v1463_v25  ;;  %1357 = vmatprep.subr.bf16.mxu1 %v1463_v25 }
  0x62   : > { %1300 = vmatpush3.bf16.msra.mxu0 %v1463_v25  ;;  %1365 = vmatpush3.bf16.msra.mxu1 %v1463_v25 }
  0x63   : > { %1301 = vmatprep.subr.bf16.mxu0 %v1464_v26  ;;  %1358 = vmatprep.subr.bf16.mxu1 %v1464_v26 }
  0x66   : > { %1302 = vmatpush3.bf16.msra.mxu0 %v1464_v26  ;;  %1366 = vmatpush3.bf16.msra.mxu1 %v1464_v26 }
  0x69   : > { %1304 = vmatmul.mubr.bf16.vlgmr.msra.gmra.mxu0 %v1467_v27  ;;  %1312 = vmatmul.mubr.bf16.vlgmr.msra.gmra.mxu1 %v1468_v28 }
  0x6a   : > { %1307 = vmatprep.mubr.bf16.mxu0 %v1469_v29  ;;  %1315 = vmatprep.mubr.bf16.mxu1 %v1470_v30 }
  0x71   : > { %1308 = vmatmul.mubr.bf16.gmra.mxu0 %v1471_v31  ;;  %1316 = vmatmul.mubr.bf16.gmra.mxu1 %v1472_v32 }
 0x129   : > { %v1305_v35 = vpop.f32.mrf.mxu0  ;;  %v1313_v36 = vpop.f32.mrf.mxu1 }
 0x12a   : > { %v683_v39 = vadd.f32 %v1305_v35, %v442_v33  ;;  %v691_v40 = vadd.f32 %v1313_v36, %v450_v34 }
 0x12b   : > { %v618_v41 = vpop.f32.mrf.mxu0  ;;  %v650_v42 = vpop.f32.mrf.mxu1 }
 0x12c   : > { %699 = vst [vmem:[#allocation2 + $0x58] sm:$0xff] %v683_v39  ;;  %707 = vst [vmem:[#allocation2 + $0x10] sm:$0xff] %v691_v40  ;;  %v681_v45 = vadd.f32 %v618_v41, %v440_v37  ;;  %v689_v46 = vadd.f32 %v650_v42, %v448_v38 }
 0x12d   : > { %v1306_v47 = vpop.f32.mrf.mxu0  ;;  %v1314_v48 = vpop.f32.mrf.mxu1 }
 0x12e   : > { %697 = vst [vmem:[#allocation2 + $0x30] sm:$0xff] %v681_v45  ;;  %705 = vst [vmem:[#allocation2 + $0x40] sm:$0xff] %v689_v46  ;;  %v684_v51 = vadd.f32 %v1306_v47, %v443_v43  ;;  %v692_v52 = vadd.f32 %v1314_v48, %v451_v44 }
 0x12f   : > { %v621_v53 = vpop.f32.mrf.mxu0  ;;  %v653_v54 = vpop.f32.mrf.mxu1 }
 0x130   : > { %700 = vst [vmem:[#allocation2 + $0x18] sm:$0xff] %v684_v51  ;;  %708 = vst [vmem:[#allocation2 + $0x38] sm:$0xff] %v692_v52  ;;  %v682_v57 = vadd.f32 %v621_v53, %v441_v49  ;;  %v690_v58 = vadd.f32 %v653_v54, %v449_v50 }
 0x131   : > { %v1309_v59 = vpop.f32.mrf.mxu0  ;;  %v1317_v60 = vpop.f32.mrf.mxu1 }
 0x132   : > { %698 = vst [vmem:[#allocation2] sm:$0xff] %v682_v57  ;;  %706 = vst [vmem:[#allocation2 + $0x20] sm:$0xff] %v690_v58  ;;  %v687_v63 = vadd.f32 %v1309_v59, %v446_v55  ;;  %v695_v0 = vadd.f32 %v1317_v60, %v454_v56 }
 0x133   : > { %v634_v1 = vpop.f32.mrf.mxu0  ;;  %v666_v2 = vpop.f32.mrf.mxu1 }
 0x134   : > { %703 = vst [vmem:[#allocation2 + $0x8] sm:$0xff] %v687_v63  ;;  %711 = vst [vmem:[#allocation2 + $0x78] sm:$0xff] %v695_v0  ;;  %v685_v5 = vadd.f32 %v634_v1, %v444_v61  ;;  %v693_v6 = vadd.f32 %v666_v2, %v452_v62 }
 0x135   : > { %v1310_v7 = vpop.f32.mrf.mxu0  ;;  %v1318_v8 = vpop.f32.mrf.mxu1 }
 0x136   : > { %701 = vst [vmem:[#allocation2 + $0x50] sm:$0xff] %v685_v5  ;;  %709 = vst [vmem:[#allocation2 + $0x60] sm:$0xff] %v693_v6  ;;  %v688_v11 = vadd.f32 %v1310_v7, %v447_v3  ;;  %v696_v12 = vadd.f32 %v1318_v8, %v455_v4  ;;  %716 = sbr.rel (%p1242_p1) target bundleno = 689 (0x2b1), region = 85 }
 0x137   : > { %v637_v13 = vpop.f32.mrf.mxu0  ;;  %v669_v14 = vpop.f32.mrf.mxu1 }
 0x138   : > { %704 = vst [vmem:[#allocation2 + $0x48] sm:$0xff] %v688_v11  ;;  %712 = vst [vmem:[#allocation2 + $0x28] sm:$0xff] %v696_v12  ;;  %v686_v15 = vadd.f32 %v637_v13, %v445_v9  ;;  %v694_v16 = vadd.f32 %v669_v14, %v453_v10 }
 0x13a   : > { %702 = vst [vmem:[#allocation2 + $0x68] sm:$0xff] %v686_v15  ;;  %710 = vst [vmem:[#allocation2 + $0x70] sm:$0xff] %v694_v16 }
 0x13b   : > { %v741_v17 = vld [vmem:[%s1735_s0 + $0x40] sm:$0xff]  ;;  %v742_v19 = vld [vmem:[%s1735_s0 + $0x48] sm:$0xff]  ;;  %v1588_v20 = vmov 0   ;;  %v736_v26 = vld [vmem:[%s1735_s0 + $0x18] sm:$0xff] }
 0x13c   : > { %v733_v18 = vld [vmem:[%s1735_s0] sm:$0xff]  ;;  %1474 = vset.pattern.permute.xlu1 %v1588_v20  ;;  %1473 = vset.pattern.permute.xlu0 %v1588_v20  ;;  %v757_v21 = vadd.f32 1e-08, %v741_v17  ;;  %v734_v23 = vld [vmem:[%s1735_s0 + $0x8] sm:$0xff]  ;;  %v758_v24 = vadd.f32 1e-08, %v742_v19 }
 0x13d   : > { %v749_v22 = vadd.f32 1e-08, %v733_v18  ;;  %v750_v25 = vadd.f32 1e-08, %v734_v23  ;;  %v735_v27 = vld [vmem:[%s1735_s0 + $0x10] sm:$0xff]  ;;  %v744_v28 = vld [vmem:[%s1735_s0 + $0x58] sm:$0xff] }
 0x13e   : > { %807 = vperm.xlu1 %1474, %v757_v21   ;;  %v752_v29 = vadd.f32 1e-08, %v736_v26  ;;  %v751_v30 = vadd.f32 1e-08, %v735_v27  ;;  %v743_v31 = vld [vmem:[%s1735_s0 + $0x50] sm:$0xff]  ;;  %v738_v33 = vld [vmem:[%s1735_s0 + $0x28] sm:$0xff] }
 0x13f   : > { %767 = vperm.xlu0 %1473, %v749_v22   ;;  %v760_v32 = vadd.f32 1e-08, %v744_v28  ;;  %v737_v34 = vld [vmem:[%s1735_s0 + $0x20] sm:$0xff]  ;;  %v759_v35 = vadd.f32 1e-08, %v743_v31  ;;  %v1475_v36 = vld [vmem:[%s1730_s15 + $0x38] sm:$0xff]  }
 0x140   : > { %v1476_v37 = vld [vmem:[%s1730_s15 + $0x30] sm:$0xff]   ;;  %v754_v38 = vadd.f32 1e-08, %v738_v33  ;;  %1319 = vmatprep.subr.bf16.mxu0 %v1475_v36  ;;  %1367 = vmatprep.subr.bf16.mxu1 %v1475_v36  ;;  %v746_v39 = vld [vmem:[%s1735_s0 + $0x68] sm:$0xff]  ;;  %v745_v40 = vld [vmem:[%s1735_s0 + $0x60] sm:$0xff] }
 0x141   : > { %1320 = vmatpush3.bf16.msra.mxu0 %v1475_v36  ;;  %1375 = vmatpush3.bf16.msra.mxu1 %v1475_v36  ;;  %v753_v41 = vadd.f32 1e-08, %v737_v34  ;;  %v1477_v42 = vld [vmem:[%s1730_s15 + $0x28] sm:$0xff]   ;;  %v762_v43 = vadd.f32 1e-08, %v746_v39  ;;  %v740_v45 = vld [vmem:[%s1735_s0 + $0x38] sm:$0xff] }
 0x142   : > { %812 = vperm.xlu1 %1474, %v758_v24   ;;  %1321 = vmatprep.subr.bf16.mxu0 %v1476_v37  ;;  %v761_v44 = vadd.f32 1e-08, %v745_v40  ;;  %v739_v46 = vld [vmem:[%s1735_s0 + $0x30] sm:$0xff]  ;;  %v1478_v47 = vld [vmem:[%s1730_s15 + $0x20] sm:$0xff]   ;;  %v756_v48 = vadd.f32 1e-08, %v740_v45 }
 0x143   : > { %772 = vperm.xlu0 %1473, %v750_v25   ;;  %1368 = vmatprep.subr.bf16.mxu1 %v1476_v37  ;;  %v755_v49 = vadd.f32 1e-08, %v739_v46  ;;  %v748_v50 = vld [vmem:[%s1735_s0 + $0x78] sm:$0xff]  ;;  %v747_v51 = vld [vmem:[%s1735_s0 + $0x70] sm:$0xff]  ;;  %v1481_v56 = vld [vmem:[%s1730_s15 + $0x8] sm:$0xff]  }
 0x144   : > { %v1479_v52 = vld [vmem:[%s1730_s15 + $0x18] sm:$0xff]   ;;  %v764_v53 = vadd.f32 1e-08, %v748_v50  ;;  %v763_v54 = vadd.f32 1e-08, %v747_v51  ;;  %v1480_v55 = vld [vmem:[%s1730_s15 + $0x10] sm:$0xff]  }
 0x145   : > { %1322 = vmatpush3.bf16.msra.mxu0 %v1476_v37  ;;  %1376 = vmatpush3.bf16.msra.mxu1 %v1476_v37  ;;  %v1482_v57 = vld [vmem:[%s1730_s15] sm:$0xff]   ;;  %v717_v8 = vld [vmem:[#allocation2 + $0x30] sm:$0xff]  ;;  %v720_v18 = vld [vmem:[#allocation2 + $0x18] sm:$0xff] }
 0x146   : > { %782 = vperm.xlu1 %1474, %v752_v29   ;;  %1323 = vmatprep.subr.bf16.mxu0 %v1477_v42  ;;  %v725_v5 = vld [vmem:[#allocation2 + $0x40] sm:$0xff]  ;;  %v719_v20 = vld [vmem:[#allocation2 + $0x58] sm:$0xff]  ;;  %v727_v29 = vld [vmem:[#allocation2 + $0x10] sm:$0xff] }
 0x147   : > { %777 = vperm.xlu0 %1473, %v751_v30   ;;  %1369 = vmatprep.subr.bf16.mxu1 %v1477_v42  ;;  %v726_v6 = vld [vmem:[#allocation2 + $0x20] sm:$0xff]  ;;  %v728_v28 = vld [vmem:[#allocation2 + $0x38] sm:$0xff]  ;;  %v722_v37 = vld [vmem:[#allocation2 + $0x68] sm:$0xff] }
 0x148   : > { %v718_v9 = vld [vmem:[#allocation2] sm:$0xff]  ;;  %v724_v51 = vld [vmem:[#allocation2 + $0x48] sm:$0xff] }
 0x149   : > { %1324 = vmatpush3.bf16.msra.mxu0 %v1477_v42  ;;  %1377 = vmatpush3.bf16.msra.mxu1 %v1477_v42  ;;  %v729_v45 = vld [vmem:[#allocation2 + $0x60] sm:$0xff] }
 0x14a   : > { %822 = vperm.xlu1 %1474, %v760_v32   ;;  %1325 = vmatprep.subr.bf16.mxu0 %v1478_v47 }
 0x14b   : > { %817 = vperm.xlu0 %1473, %v759_v35   ;;  %1370 = vmatprep.subr.bf16.mxu1 %v1478_v47 }
 0x14d   : > { %1326 = vmatpush3.bf16.msra.mxu0 %v1478_v47  ;;  %1378 = vmatpush3.bf16.msra.mxu1 %v1478_v47 }
 0x14e   : > { %792 = vperm.xlu1 %1474, %v754_v38   ;;  %1327 = vmatprep.subr.bf16.mxu0 %v1479_v52  ;;  %v721_v38 = vld [vmem:[#allocation2 + $0x50] sm:$0xff] }
 0x14f   : > { %787 = vperm.xlu0 %1473, %v753_v41   ;;  %1371 = vmatprep.subr.bf16.mxu1 %v1479_v52 }
 0x151   : > { %1328 = vmatpush3.bf16.msra.mxu0 %v1479_v52  ;;  %1379 = vmatpush3.bf16.msra.mxu1 %v1479_v52  ;;  %v723_v52 = vld [vmem:[#allocation2 + $0x8] sm:$0xff] }
 0x152   : > { %832 = vperm.xlu1 %1474, %v762_v43   ;;  %1329 = vmatprep.subr.bf16.mxu0 %v1480_v55 }
 0x153   : > { %827 = vperm.xlu0 %1473, %v761_v44   ;;  %1372 = vmatprep.subr.bf16.mxu1 %v1480_v55  ;;  %v730_v44 = vld [vmem:[#allocation2 + $0x70] sm:$0xff] }
 0x155   : > { %1330 = vmatpush3.bf16.msra.mxu0 %v1480_v55  ;;  %1380 = vmatpush3.bf16.msra.mxu1 %v1480_v55 }
 0x156   : > { %802 = vperm.xlu1 %1474, %v756_v48   ;;  %1331 = vmatprep.subr.bf16.mxu0 %v1481_v56 }
 0x157   : > { %797 = vperm.xlu0 %1473, %v755_v49   ;;  %1373 = vmatprep.subr.bf16.mxu1 %v1481_v56 }
 0x159   : > { %1332 = vmatpush3.bf16.msra.mxu0 %v1481_v56  ;;  %1381 = vmatpush3.bf16.msra.mxu1 %v1481_v56 }
 0x15a   : > { %842 = vperm.xlu1 %1474, %v764_v53   ;;  %1333 = vmatprep.subr.bf16.mxu0 %v1482_v57 }
 0x15b   : > { %837 = vperm.xlu0 %1473, %v763_v54   ;;  %1374 = vmatprep.subr.bf16.mxu1 %v1482_v57 }
 0x15d   : > { %1334 = vmatpush3.bf16.msra.mxu0 %v1482_v57  ;;  %1382 = vmatpush3.bf16.msra.mxu1 %v1482_v57 }
 0x1b9   : > { %v808_v58 = vpop.permute.xlu1 %807 }
 0x1ba   : > { %v768_v59 = vpop.permute.xlu0 %767  ;;  %1483 = vrcp.f32 %v808_v58  ;;  %v732_v58 = vld [vmem:[#allocation2 + $0x28] sm:$0xff] }
 0x1bb   : > { %1485 = vrcp.f32 %v768_v59  ;;  %v731_v59 = vld [vmem:[#allocation2 + $0x78] sm:$0xff] }
 0x1bd   : > { %v813_v60 = vpop.permute.xlu1 %812 }
 0x1be   : > { %v773_v61 = vpop.permute.xlu0 %772  ;;  %1487 = vrcp.f32 %v813_v60 }
 0x1bf   : > { %1489 = vrcp.f32 %v773_v61 }
 0x1c1   : > { %v783_v62 = vpop.permute.xlu1 %782 }
 0x1c2   : > { %v778_v63 = vpop.permute.xlu0 %777  ;;  %1491 = vrcp.f32 %v783_v62 }
 0x1c3   : > { %1493 = vrcp.f32 %v778_v63 }
 0x1c5   : > { %v823_v0 = vpop.permute.xlu1 %822 }
 0x1c6   : > { %v818_v1 = vpop.permute.xlu0 %817  ;;  %1495 = vrcp.f32 %v823_v0 }
 0x1c7   : > { %1497 = vrcp.f32 %v818_v1  ;;  %v1484_v2 = vpop.eup %1483 }
 0x1c8   : > { %v1486_v7 = vpop.eup %1485  ;;  %v862_v12 = vmul.f32 %v1484_v2, %v725_v5 }
 0x1c9   : > { %v793_v3 = vpop.permute.xlu1 %792  ;;  %v846_v16 = vmul.f32 %v1486_v7, %v717_v8 }
 0x1ca   : > { %v788_v4 = vpop.permute.xlu0 %787  ;;  %1499 = vrcp.f32 %v793_v3 }
 0x1cb   : > { %v1488_v10 = vpop.eup %1487  ;;  %1501 = vrcp.f32 %v788_v4 }
 0x1cc   : > { %v1490_v11 = vpop.eup %1489  ;;  %v864_v13 = vmul.f32 %v1488_v10, %v726_v6 }
 0x1cd   : > { %v833_v14 = vpop.permute.xlu1 %832  ;;  %v848_v17 = vmul.f32 %v1490_v11, %v718_v9 }
 0x1ce   : > { %v828_v15 = vpop.permute.xlu0 %827  ;;  %1503 = vrcp.f32 %v833_v14  ;;  %v881_v19 = vpack.c.bf16 %v864_v13, %v862_v12 }
 0x1cf   : > { %v1492_v21 = vpop.eup %1491  ;;  %1505 = vrcp.f32 %v828_v15  ;;  %v877_v22 = vpack.c.bf16 %v848_v17, %v846_v16 }
 0x1d0   : > { %v1494_v23 = vpop.eup %1493  ;;  %1343 = vmatprep.mubr.bf16.mxu1 %v881_v19  ;;  %v852_v24 = vmul.f32 %v1492_v21, %v720_v18 }
 0x1d1   : > { %1335 = vmatprep.mubr.bf16.mxu0 %v877_v22  ;;  %v803_v25 = vpop.permute.xlu1 %802  ;;  %v850_v27 = vmul.f32 %v1494_v23, %v719_v20 }
 0x1d2   : > { %v798_v26 = vpop.permute.xlu0 %797  ;;  %1507 = vrcp.f32 %v803_v25 }
 0x1d3   : > { %v1496_v30 = vpop.eup %1495  ;;  %1509 = vrcp.f32 %v798_v26  ;;  %v878_v31 = vpack.c.bf16 %v852_v24, %v850_v27 }
 0x1d4   : > { %v1498_v32 = vpop.eup %1497  ;;  %v868_v33 = vmul.f32 %v1496_v30, %v728_v28 }
 0x1d5   : > { %1336 = vmatmul.mubr.bf16.vlgmr.msra.gmra.mxu0 %v878_v31  ;;  %v843_v34 = vpop.permute.xlu1 %842  ;;  %v866_v36 = vmul.f32 %v1498_v32, %v727_v29 }
 0x1d6   : > { %v838_v35 = vpop.permute.xlu0 %837  ;;  %1511 = vrcp.f32 %v843_v34 }
 0x1d7   : > { %v1500_v39 = vpop.eup %1499  ;;  %1513 = vrcp.f32 %v838_v35  ;;  %v882_v40 = vpack.c.bf16 %v868_v33, %v866_v36 }
 0x1d8   : > { %v1502_v41 = vpop.eup %1501  ;;  %v856_v42 = vmul.f32 %v1500_v39, %v722_v37 }
 0x1d9   : > { %1344 = vmatmul.mubr.bf16.vlgmr.msra.gmra.mxu1 %v882_v40  ;;  %v854_v43 = vmul.f32 %v1502_v41, %v721_v38 }
 0x1db   : > { %v1504_v46 = vpop.eup %1503  ;;  %v879_v47 = vpack.c.bf16 %v856_v42, %v854_v43 }
 0x1dc   : > { %v1506_v48 = vpop.eup %1505  ;;  %v872_v49 = vmul.f32 %v1504_v46, %v730_v44 }
 0x1dd   : > { %1339 = vmatprep.mubr.bf16.mxu0 %v879_v47  ;;  %v870_v50 = vmul.f32 %v1506_v48, %v729_v45 }
 0x1df   : > { %v1508_v53 = vpop.eup %1507  ;;  %v883_v54 = vpack.c.bf16 %v872_v49, %v870_v50 }
 0x1e0   : > { %v1510_v55 = vpop.eup %1509  ;;  %v860_v56 = vmul.f32 %v1508_v53, %v724_v51 }
 0x1e1   : > { %1347 = vmatprep.mubr.bf16.mxu1 %v883_v54  ;;  %v858_v57 = vmul.f32 %v1510_v55, %v723_v52 }
 0x1e3   : > { %v1512_v60 = vpop.eup %1511  ;;  %v880_v61 = vpack.c.bf16 %v860_v56, %v858_v57 }
 0x1e4   : > { %v1514_v62 = vpop.eup %1513  ;;  %v876_v63 = vmul.f32 %v1512_v60, %v732_v58 }
 0x1e5   : > { %1340 = vmatmul.mubr.bf16.gmra.mxu0 %v880_v61  ;;  %v874_v0 = vmul.f32 %v1514_v62, %v731_v59 }
 0x1e7   : > { %v884_v1 = vpack.c.bf16 %v876_v63, %v874_v0 }
 0x1e9   : > { %1348 = vmatmul.mubr.bf16.gmra.mxu1 %v884_v1 }
 0x295   : > { %v1337_v2 = vpop.f32.mrf.mxu0 }
 0x296   : > { %1048 = vst [vmem:[%s1740_s11 + $0x10] sm:$0xff] %v1337_v2 }
 0x297   : > { %v983_v3 = vpop.f32.mrf.mxu0 }
 0x298   : > { %1046 = vst [vmem:[%s1740_s11] sm:$0xff] %v983_v3 }
 0x299   : > { %v1338_v4 = vpop.f32.mrf.mxu0  ;;  %v1345_v5 = vpop.f32.mrf.mxu1 }
 0x29a   : > { %1049 = vst [vmem:[%s1740_s11 + $0x18] sm:$0xff] %v1338_v4  ;;  %1056 = vst [vmem:[%s1740_s11 + $0x50] sm:$0xff] %v1345_v5 }
 0x29b   : > { %v986_v6 = vpop.f32.mrf.mxu0  ;;  %v1015_v7 = vpop.f32.mrf.mxu1 }
 0x29c   : > { %1047 = vst [vmem:[%s1740_s11 + $0x8] sm:$0xff] %v986_v6  ;;  %1054 = vst [vmem:[%s1740_s11 + $0x40] sm:$0xff] %v1015_v7 }
 0x29d   : > { %v1346_v8 = vpop.f32.mrf.mxu1 }
 0x29e   : > { %1057 = vst [vmem:[%s1740_s11 + $0x58] sm:$0xff] %v1346_v8 }
 0x29f   : > { %v1018_v9 = vpop.f32.mrf.mxu1 }
 0x2a0   : > { %1055 = vst [vmem:[%s1740_s11 + $0x48] sm:$0xff] %v1018_v9 }
 0x2a5   : > { %v1341_v10 = vpop.f32.mrf.mxu0 }
 0x2a6   : > { %1052 = vst [vmem:[%s1740_s11 + $0x30] sm:$0xff] %v1341_v10 }
 0x2a7   : > { %v999_v11 = vpop.f32.mrf.mxu0 }
 0x2a8   : > { %1050 = vst [vmem:[%s1740_s11 + $0x20] sm:$0xff] %v999_v11 }
 0x2a9   : > { %v1342_v12 = vpop.f32.mrf.mxu0  ;;  %v1349_v13 = vpop.f32.mrf.mxu1 }
 0x2aa   : > { %1053 = vst [vmem:[%s1740_s11 + $0x38] sm:$0xff] %v1342_v12  ;;  %1060 = vst [vmem:[%s1740_s11 + $0x70] sm:$0xff] %v1349_v13 }
 0x2ab   : > { %v1002_v14 = vpop.f32.mrf.mxu0  ;;  %v1031_v15 = vpop.f32.mrf.mxu1 }
 0x2ac   : > { %1051 = vst [vmem:[%s1740_s11 + $0x28] sm:$0xff] %v1002_v14  ;;  %1058 = vst [vmem:[%s1740_s11 + $0x60] sm:$0xff] %v1031_v15 }
 0x2ad   : > { %v1350_v16 = vpop.f32.mrf.mxu1 }
 0x2ae   : > { %1061 = vst [vmem:[%s1740_s11 + $0x78] sm:$0xff] %v1350_v16 }
 0x2af   : > { %v1034_v17 = vpop.f32.mrf.mxu1 }
 0x2b0   : > { %1059 = vst [vmem:[%s1740_s11 + $0x68] sm:$0xff] %v1034_v17 }
 0x2b1 PF: > { %s14_s23 = sadd.s32 1, %s1585_s23   ;;  %s1839_s0 = sld [smem:[#allocation4_spill]] }
 0x2b2   : > { %p11_p2 = scmp.ge.s32.totalorder %s14_s23, 34   ;;  %s1840_s15 = smov %s1557_s16 }
 0x2b3   : > { %s1841_s16 = smov %s1685_s8  ;;  %s1842_s17 = smov %s1573_s20 }
 0x2b4   : > { %s1843_s18 = smov %s1577_s21  ;;  %s1844_s19 = smov %s1581_s22 }
 0x2b5   : > { %s1845_s20 = smov %s1855_s24  ;;  %s1846_s21 = smov %s1851_s25 }
 0x2b6   :  { %13 = sbr.rel (!%p11_p2) target bundleno = 7 (0x7), region = 129 }
 0x2b7   : > { %s1847_s22 = smov %s1839_s0 }

// kernel: mbgcn_forward.9
= control target key start
LH: loop header
LB: loop body
LE: loop exit
PB: predicated region body
PF: predicated region fallthrough
CT: control target
= control target key end

     0   :  { %s2244_s0 = inlined_call_operand.vmem [shape: bf16[2,256,512], index: 0, kind: input, shape index: {}]   ;;  %s2245_s1 = inlined_call_operand.vmem [shape: bf16[2,512,256], index: 1, kind: input, shape index: {}]   ;;  %s2246_s2 = inlined_call_operand.vmem [shape: f32[2,256,1], index: 2, kind: input, shape index: {}]   ;;  %s2247_s3 = inlined_call_operand.vmem [shape: bf16[2,256,256], index: 3, kind: input, shape index: {}]   ;;  %s2248_s4 = inlined_call_operand.vmem [shape: f32[2,256,256], index: 4, kind: output, shape index: {}]  }
   0x1   :  { %2253 = sst [smem:[#allocation8_spill]] %s2244_s0 }
   0x2   :  { %s1973_s15 = smov 0   ;;  %s1975_s16 = smov 0  }
   0x3   :  { %s1977_s17 = smov 0   ;;  %s1979_s18 = smov 0  }
   0x4   :  { %s1981_s19 = smov 0   ;;  %s1983_s20 = smov 0  }
   0x5   :  { %s1985_s21 = smov 0   ;;  %s1987_s22 = smov 0  }
   0x6   :  { %s1989_s23 = smov 0  }
   0x7 LB: > { %2254 = sst [smem:[#allocation4_spill]] %s1939_s22  ;;  %s26_s24 = sadd.s32 1, %s1931_s20  ;;  %s1943_s23 = sphi %s1989_s23, %s14_s23   ;;  %s1939_s22 = sphi %s1987_s22, %s2270_s22   ;;  %s1935_s21 = sphi %s1985_s21, %s2269_s21   ;;  %s1931_s20 = sphi %s1983_s20, %s2268_s20   ;;  %s1927_s19 = sphi %s1981_s19, %s2260_s19   ;;  %s1923_s18 = sphi %s1979_s18, %s2267_s18   ;;  %s1919_s17 = sphi %s1977_s17, %s2266_s17   ;;  %s1915_s16 = sphi %s1975_s16, %s2265_s16   ;;  %s1911_s15 = sphi %s1973_s15, %s2264_s15  }
   0x8   : > { %p27_p0 = scmp.ge.s32.totalorder %s26_s24, 4  ;;  %s29_s25 = sadd.s32 1, %s1935_s21 }
   0x9   : > { %p51_p1 = scmp.ne.s32.totalorder %s1915_s16, %s1911_s15  ;;  %p52_p2 = scmp.eq.s32.totalorder %s1943_s23, 0 }
   0xa   : > { %s2272_s25 = smov (!%p27_p0, %s29_s25), %s1935_s21  ;;  %s33_s26 = sadd.s32 1, %s1939_s22 }
   0xb   : > { %p31_p3 = scmp.ge.s32.totalorder %s2272_s25, 2  ;;  %p2025_p4 = por %p52_p2, %p51_p1 }
   0xc   : > { %s2278_s24 = smov (%p27_p0, %s26_s24), 0  ;;  %s44_s7 = sadd.s32 1, %s1915_s16 }
   0xd   : > { %s2274_s25 = smov (%p31_p3, %s2272_s25), 0  ;;  %s2276_s26 = smov (!%p31_p3, %s33_s26), %s1939_s22 }
   0xe   : > { %2256 = sst [smem:[#allocation5_spill]] %s2274_s25  ;;  %p35_p5 = scmp.ge.s32.totalorder %s2276_s26, 2 }
   0xf   : > { %2257 = sst [smem:[#allocation6_spill]] %s2278_s24  ;;  %s38_s28 = ssub.s32 %s1935_s21, %s2274_s25 }
  0x10   : > { %s2280_s26 = smov (%p35_p5, %s2276_s26), 0  ;;  %s40_s29 = ssub.s32 %s1931_s20, %s2278_s24 }
  0x11   : > { %2258 = sst [smem:[#allocation7_spill]] %s2280_s26  ;;  %s37_s30 = ssub.s32 %s1939_s22, %s2280_s26 }
  0x12   : > { %s39_s5 = sor.u32 %s38_s28, %s37_s30  ;;  %p1553_p7 = scmp.ge.s32.totalorder %s1943_s23, 16 }
  0x13   : > { %s41_s6 = sor.u32 %s40_s29, %s39_s5 }
  0x14   : > { %p42_p6 = scmp.eq.s32.totalorder %s41_s6, 0  ;;  %187 = sbr.rel (%p1553_p7) target bundleno = 47 (0x2f), region = 16 }
  0x16   : > { %s2044_s8 = scalar_select %p42_p6, %s1915_s16, %s44_s7  }
  0x19   : > { %190 = sbr.rel (!%p2025_p4) target bundleno = 47 (0x2f), region = 20  ;;  %s192_s9 = sand.u32 (%p2025_p4), 1, %s1915_s16  }
  0x1a   : > { %s1634_s10 = sshll.u32 (%p2025_p4), %s1935_s21, 6  ;;  %s1554_s11 = sshll.u32 (%p2025_p4), %s192_s9, 6 }
  0x1b   : > { %s197_s12 = sadd.s32 (%p2025_p4), %s1931_s20, %s1634_s10  ;;  %s1557_s13 = sshll.u32 (%p2025_p4), %s1939_s22, 7 }
  0x1c   : > { %s199_s14 = sadd.s32 (%p2025_p4), %s1557_s13, %s197_s12  ;;  %s2259_s0 = sld [smem:[#allocation8_spill]] (%p2025_p4) }
  0x1d   : > { %s1558_s28 = sshll.u32 (%p2025_p4), %s199_s14, 2  ;;  %s194_s27 = scalar_lea.vmem (%p2025_p4), [#allocation3], %s1554_s11 }
  0x22   : > { %s2056_s5 = scalar_lea.vmem %s2259_s0, %s1558_s28 }
  0x23   : > { %v218_v0 = vld [vmem:[%s2056_s5] sm:$0xf]  ;;  %v220_v1 = vld [vmem:[%s2056_s5 + $0x10] sm:$0xf] }
  0x24   : > { %v222_v2 = vld [vmem:[%s2056_s5 + $0x20] sm:$0xf]  ;;  %219 = vst [vmem:[%s194_s27] sm:$0xf] %v218_v0  ;;  %221 = vst [vmem:[%s194_s27 + $0x4] sm:$0xf] %v220_v1 }
  0x25   : > { %223 = vst [vmem:[%s194_s27 + $0x8] sm:$0xf] %v222_v2  ;;  %v224_v3 = vld [vmem:[%s2056_s5 + $0x30] sm:$0xf]  ;;  %v226_v4 = vld [vmem:[%s2056_s5 + $0x40] sm:$0xf] }
  0x26   : > { %v228_v5 = vld [vmem:[%s2056_s5 + $0x50] sm:$0xf]  ;;  %225 = vst [vmem:[%s194_s27 + $0xc] sm:$0xf] %v224_v3  ;;  %227 = vst [vmem:[%s194_s27 + $0x10] sm:$0xf] %v226_v4 }
  0x27   : > { %229 = vst [vmem:[%s194_s27 + $0x14] sm:$0xf] %v228_v5  ;;  %v230_v6 = vld [vmem:[%s2056_s5 + $0x60] sm:$0xf]  ;;  %v232_v7 = vld [vmem:[%s2056_s5 + $0x70] sm:$0xf] }
  0x28   : > { %v234_v8 = vld [vmem:[%s2056_s5 + $0x80] sm:$0xf]  ;;  %231 = vst [vmem:[%s194_s27 + $0x18] sm:$0xf] %v230_v6  ;;  %233 = vst [vmem:[%s194_s27 + $0x1c] sm:$0xf] %v232_v7 }
  0x29   : > { %235 = vst [vmem:[%s194_s27 + $0x20] sm:$0xf] %v234_v8  ;;  %v236_v9 = vld [vmem:[%s2056_s5 + $0x90] sm:$0xf]  ;;  %v238_v10 = vld [vmem:[%s2056_s5 + $0xa0] sm:$0xf] }
  0x2a   : > { %v240_v11 = vld [vmem:[%s2056_s5 + $0xb0] sm:$0xf]  ;;  %237 = vst [vmem:[%s194_s27 + $0x24] sm:$0xf] %v236_v9  ;;  %239 = vst [vmem:[%s194_s27 + $0x28] sm:$0xf] %v238_v10 }
  0x2b   : > { %241 = vst [vmem:[%s194_s27 + $0x2c] sm:$0xf] %v240_v11  ;;  %v242_v12 = vld [vmem:[%s2056_s5 + $0xc0] sm:$0xf]  ;;  %v244_v13 = vld [vmem:[%s2056_s5 + $0xd0] sm:$0xf] }
  0x2c   : > { %v246_v14 = vld [vmem:[%s2056_s5 + $0xe0] sm:$0xf]  ;;  %243 = vst [vmem:[%s194_s27 + $0x30] sm:$0xf] %v242_v12  ;;  %245 = vst [vmem:[%s194_s27 + $0x34] sm:$0xf] %v244_v13 }
  0x2d   : > { %247 = vst [vmem:[%s194_s27 + $0x38] sm:$0xf] %v246_v14  ;;  %v248_v15 = vld [vmem:[%s2056_s5 + $0xf0] sm:$0xf] }
  0x2e   : > { %249 = vst [vmem:[%s194_s27 + $0x3c] sm:$0xf] %v248_v15 }
  0x2f PF: > { %p1559_p8 = scmp.ge.s32.totalorder %s1943_s23, 1  ;;  %p339_p9 = scmp.lt.s32.totalorder %s1943_s23, 17 }
  0x31   : > { %p340_p10 = pnand %p1559_p8, %p339_p9 }
  0x32   : > { %s346_s6 = sand.u32 (!%p340_p10), 1, %s1911_s15   ;;  %s1561_s7 = sshll.u32 (!%p340_p10), %s1919_s17, 4 }
  0x33   : > { %343 = sbr.rel (%p340_p10) target bundleno = 722 (0x2d2), region = 73  ;;  %s1560_s9 = sshll.u32 (!%p340_p10), %s346_s6, 6 }
  0x34   : > { %p402_p11 = scmp.lt.s32.totalorder (!%p340_p10), %s1927_s19, 1  ;;  %p404_p12 = scmp.lt.s32.totalorder (!%p340_p10), %s1561_s7, 63 }
  0x35   : > { %s1565_s11 = sshll.u32 (!%p340_p10), %s1923_s18, 4  ;;  %s2101_s0 = scalar_lea.vmem (!%p340_p10), [#allocation3], %s1560_s9 }
  0x36   : > { %p415_p13 = scmp.lt.s32.totalorder (!%p340_p10), %s1565_s11, 31  ;;  %p1574_p0 = scmp.ne.s32.totalorder (!%p340_p10), %s1919_s17, 0 }
  0x38   : > { %s2282_s19 = smov (!%p402_p11, %s1927_s19), 1  ;;  %s2284_s7 = smov (!%p404_p12, %s1561_s7), 63 }
  0x39   : > { %s1563_s10 = sshll.u32 %s2282_s19, 7  ;;  %s1562_s12 = sshll.u32 %s2284_s7, 1 }
  0x3a   : > { %s408_s13 = sadd.s32 %s1563_s10, %s1562_s12  ;;  %s1566_s14 = sshll.u32 %s2282_s19, 5 }
  0x3b   : > { %s1564_s28 = sshll.u32 %s408_s13, 2  ;;  %s1635_s29 = sshll.u32 %s2282_s19, 8 }
  0x3c   : > { %s2084_s27 = scalar_lea.vmem %s2245_s1, %s1564_s28  ;;  %s2089_s6 = scalar_lea.vmem %s2247_s3, %s1635_s29 }
  0x3d   : > { %s2286_s11 = smov (!%p415_p13, %s1565_s11), 31  ;;  %s1572_s26 = sshll.u32 %s2282_s19, 6 }
  0x3e   : > { %s418_s25 = sadd.s32 %s1566_s14, %s2286_s11  ;;  %s1571_s18 = sshll.u32 %s2286_s11, 1 }
  0x3f   : > { %s1567_s7 = sshll.u32 %s418_s25, 3  ;;  %s434_s24 = sadd.s32 %s1572_s26, %s1571_s18 }
  0x40   : > { %s2094_s13 = scalar_lea.vmem %s2246_s2, %s1567_s7  ;;  %s1573_s22 = sshll.u32 %s434_s24, 3 }
  0x41   : > { %s2099_s5 = scalar_lea.vmem %s2248_s4, %s1573_s22  ;;  %442 = sbr.rel (%p1574_p0) target bundleno = 87 (0x57), region = 81 }
  0x46   : > { %v1945_v16 = vmov 0.0  }
  0x47   : > { %443 = vst [vmem:[#allocation2 + $0xb0] sm:$0xff] %v1945_v16  ;;  %444 = vst [vmem:[#allocation2] sm:$0xff] %v1945_v16 }
  0x48   : > { %445 = vst [vmem:[#allocation2 + $0xd8] sm:$0xff] %v1945_v16  ;;  %446 = vst [vmem:[#allocation2 + $0x18] sm:$0xff] %v1945_v16 }
  0x49   : > { %447 = vst [vmem:[#allocation2 + $0x50] sm:$0xff] %v1945_v16  ;;  %448 = vst [vmem:[#allocation2 + $0x68] sm:$0xff] %v1945_v16 }
  0x4a   : > { %449 = vst [vmem:[#allocation2 + $0x30] sm:$0xff] %v1945_v16  ;;  %450 = vst [vmem:[#allocation2 + $0x48] sm:$0xff] %v1945_v16 }
  0x4b   : > { %451 = vst [vmem:[#allocation2 + $0x80] sm:$0xff] %v1945_v16  ;;  %452 = vst [vmem:[#allocation2 + $0x88] sm:$0xff] %v1945_v16 }
  0x4c   : > { %453 = vst [vmem:[#allocation2 + $0xe8] sm:$0xff] %v1945_v16  ;;  %454 = vst [vmem:[#allocation2 + $0xb8] sm:$0xff] %v1945_v16 }
  0x4d   : > { %455 = vst [vmem:[#allocation2 + $0x60] sm:$0xff] %v1945_v16  ;;  %456 = vst [vmem:[#allocation2 + $0xf0] sm:$0xff] %v1945_v16 }
  0x4e   : > { %457 = vst [vmem:[#allocation2 + $0x8] sm:$0xff] %v1945_v16  ;;  %458 = vst [vmem:[#allocation2 + $0x78] sm:$0xff] %v1945_v16 }
  0x4f   : > { %459 = vst [vmem:[#allocation2 + $0x38] sm:$0xff] %v1945_v16  ;;  %460 = vst [vmem:[#allocation2 + $0x58] sm:$0xff] %v1945_v16 }
  0x50   : > { %461 = vst [vmem:[#allocation2 + $0x40] sm:$0xff] %v1945_v16  ;;  %462 = vst [vmem:[#allocation2 + $0xc8] sm:$0xff] %v1945_v16 }
  0x51   : > { %463 = vst [vmem:[#allocation2 + $0xe0] sm:$0xff] %v1945_v16  ;;  %464 = vst [vmem:[#allocation2 + $0x90] sm:$0xff] %v1945_v16 }
  0x52   : > { %465 = vst [vmem:[#allocation2 + $0x70] sm:$0xff] %v1945_v16  ;;  %466 = vst [vmem:[#allocation2 + $0xc0] sm:$0xff] %v1945_v16 }
  0x53   : > { %467 = vst [vmem:[#allocation2 + $0xa8] sm:$0xff] %v1945_v16  ;;  %468 = vst [vmem:[#allocation2 + $0xd0] sm:$0xff] %v1945_v16 }
  0x54   : > { %469 = vst [vmem:[#allocation2 + $0x10] sm:$0xff] %v1945_v16  ;;  %470 = vst [vmem:[#allocation2 + $0x28] sm:$0xff] %v1945_v16 }
  0x55   : > { %471 = vst [vmem:[#allocation2 + $0xa0] sm:$0xff] %v1945_v16  ;;  %472 = vst [vmem:[#allocation2 + $0xf8] sm:$0xff] %v1945_v16 }
  0x56   : > { %473 = vst [vmem:[#allocation2 + $0x20] sm:$0xff] %v1945_v16  ;;  %474 = vst [vmem:[#allocation2 + $0x98] sm:$0xff] %v1945_v16 }
  0x57 PF: > { %v1759_v17 = vld [vmem:[%s2084_s27 + $0x74] ss:$8 sps:$4 sm:$0xff]   ;;  %v1761_v18 = vld [vmem:[%s2084_s27 + $0x70] ss:$8 sps:$4 sm:$0xff]   ;;  %v1946_v19 = vmov 0   ;;  %v1783_v34 = vld [vmem:[%s2101_s0] sm:$0xff]  }
  0x58   : > { %699 = vmatprep.mubr.bf16.mxu0 %v1946_v19  ;;  %739 = vmatprep.mubr.bf16.mxu1 %v1946_v19  ;;  %v1762_v20 = vld [vmem:[%s2084_s27 + $0x64] ss:$8 sps:$4 sm:$0xff]   ;;  %v1764_v21 = vld [vmem:[%s2084_s27 + $0x60] ss:$8 sps:$4 sm:$0xff]   ;;  %v1765_v22 = vld [vmem:[%s2084_s27 + $0x54] ss:$8 sps:$4 sm:$0xff]  }
  0x59   : > { %667 = vmatprep.subr.bf16.mxu0 %v1759_v17  ;;  %1636 = vmatprep.subr.bf16.mxu1 %v1759_v17  ;;  %v1767_v23 = vld [vmem:[%s2084_s27 + $0x50] ss:$8 sps:$4 sm:$0xff]   ;;  %v1768_v24 = vld [vmem:[%s2084_s27 + $0x44] ss:$8 sps:$4 sm:$0xff]   ;;  %v1770_v25 = vld [vmem:[%s2084_s27 + $0x40] ss:$8 sps:$4 sm:$0xff]  }
  0x5a   : > { %668 = vmatpush1.bf16.msra.mxu0 %v1761_v18  ;;  %1644 = vmatpush1.bf16.msra.mxu1 %v1761_v18  ;;  %v1771_v26 = vld [vmem:[%s2084_s27 + $0x34] ss:$8 sps:$4 sm:$0xff]   ;;  %v1773_v27 = vld [vmem:[%s2084_s27 + $0x30] ss:$8 sps:$4 sm:$0xff]   ;;  %v1774_v28 = vld [vmem:[%s2084_s27 + $0x24] ss:$8 sps:$4 sm:$0xff]  }
  0x5b   : > { %669 = vmatprep.subr.bf16.mxu0 %v1762_v20  ;;  %1637 = vmatprep.subr.bf16.mxu1 %v1762_v20  ;;  %v1776_v29 = vld [vmem:[%s2084_s27 + $0x20] ss:$8 sps:$4 sm:$0xff]   ;;  %v1777_v30 = vld [vmem:[%s2084_s27 + $0x14] ss:$8 sps:$4 sm:$0xff]   ;;  %v1779_v31 = vld [vmem:[%s2084_s27 + $0x10] ss:$8 sps:$4 sm:$0xff]  }
  0x5c   : > { %v1780_v32 = vld [vmem:[%s2084_s27 + $0x4] ss:$8 sps:$4 sm:$0xff]   ;;  %v1782_v33 = vld [vmem:[%s2084_s27] ss:$8 sps:$4 sm:$0xff]   ;;  %v1787_v38 = vld [vmem:[%s2101_s0 + $0x10] sm:$0xff]   ;;  %p1599_p1 = scmp.ne.s32.totalorder %s1919_s17, 3 }
  0x5d   : > { %v1784_v35 = vld [vmem:[%s2101_s0 + $0x20] sm:$0xff]   ;;  %v1785_v36 = vld [vmem:[%s2101_s0 + $0x8] sm:$0xff]   ;;  %v1788_v39 = vld [vmem:[%s2101_s0 + $0x30] sm:$0xff]  }
  0x5e   : > { %670 = vmatpush1.bf16.msra.mxu0 %v1764_v21  ;;  %1645 = vmatpush1.bf16.msra.mxu1 %v1764_v21  ;;  %v1786_v37 = vld [vmem:[%s2101_s0 + $0x28] sm:$0xff]   ;;  %v1789_v40 = vld [vmem:[%s2101_s0 + $0x18] sm:$0xff]   ;;  %v475_v42 = vld [vmem:[#allocation2 + $0xb0] sm:$0xff] }
  0x5f   : > { %671 = vmatprep.subr.bf16.mxu0 %v1765_v22  ;;  %1638 = vmatprep.subr.bf16.mxu1 %v1765_v22  ;;  %v1790_v41 = vld [vmem:[%s2101_s0 + $0x38] sm:$0xff]   ;;  %v476_v46 = vld [vmem:[#allocation2] sm:$0xff]  ;;  %v494_v59 = vld [vmem:[#allocation2 + $0xc8] sm:$0xff] }
  0x60   : > { %v491_v43 = vld [vmem:[#allocation2 + $0x38] sm:$0xff]  ;;  %v493_v53 = vld [vmem:[#allocation2 + $0x40] sm:$0xff]  ;;  %v479_v0 = vld [vmem:[#allocation2 + $0x50] sm:$0xff] }
  0x61   : > { %v492_v47 = vld [vmem:[#allocation2 + $0x58] sm:$0xff]  ;;  %v495_v1 = vld [vmem:[#allocation2 + $0xe0] sm:$0xff]  ;;  %v480_v6 = vld [vmem:[#allocation2 + $0x68] sm:$0xff] }
  0x62   : > { %672 = vmatpush1.bf16.msra.mxu0 %v1767_v23  ;;  %1646 = vmatpush1.bf16.msra.mxu1 %v1767_v23  ;;  %v477_v52 = vld [vmem:[#allocation2 + $0xd8] sm:$0xff]  ;;  %v496_v7 = vld [vmem:[#allocation2 + $0x90] sm:$0xff]  ;;  %v482_v18 = vld [vmem:[#allocation2 + $0x48] sm:$0xff] }
  0x63   : > { %673 = vmatprep.subr.bf16.mxu0 %v1768_v24  ;;  %1639 = vmatprep.subr.bf16.mxu1 %v1768_v24  ;;  %v478_v58 = vld [vmem:[#allocation2 + $0x18] sm:$0xff]  ;;  %v481_v12 = vld [vmem:[#allocation2 + $0x30] sm:$0xff]  ;;  %v483_v24 = vld [vmem:[#allocation2 + $0x80] sm:$0xff] }
  0x64   : > { %v497_v13 = vld [vmem:[#allocation2 + $0x70] sm:$0xff] }
  0x66   : > { %674 = vmatpush1.bf16.msra.mxu0 %v1770_v25  ;;  %1647 = vmatpush1.bf16.msra.mxu1 %v1770_v25  ;;  %v499_v25 = vld [vmem:[#allocation2 + $0xa8] sm:$0xff] }
  0x67   : > { %675 = vmatprep.subr.bf16.mxu0 %v1771_v26  ;;  %1640 = vmatprep.subr.bf16.mxu1 %v1771_v26 }
  0x6a   : > { %676 = vmatpush1.bf16.msra.mxu0 %v1773_v27  ;;  %1648 = vmatpush1.bf16.msra.mxu1 %v1773_v27 }
  0x6b   : > { %677 = vmatprep.subr.bf16.mxu0 %v1774_v28  ;;  %1641 = vmatprep.subr.bf16.mxu1 %v1774_v28 }
  0x6e   : > { %678 = vmatpush1.bf16.msra.mxu0 %v1776_v29  ;;  %1649 = vmatpush1.bf16.msra.mxu1 %v1776_v29 }
  0x6f   : > { %679 = vmatprep.subr.bf16.mxu0 %v1777_v30  ;;  %1642 = vmatprep.subr.bf16.mxu1 %v1777_v30  ;;  %v484_v30 = vld [vmem:[#allocation2 + $0x88] sm:$0xff] }
  0x72   : > { %680 = vmatpush1.bf16.msra.mxu0 %v1779_v31  ;;  %1650 = vmatpush1.bf16.msra.mxu1 %v1779_v31  ;;  %v500_v31 = vld [vmem:[#allocation2 + $0xd0] sm:$0xff] }
  0x73   : > { %681 = vmatprep.subr.bf16.mxu0 %v1780_v32  ;;  %1643 = vmatprep.subr.bf16.mxu1 %v1780_v32 }
  0x76   : > { %682 = vmatpush1.bf16.msra.mxu0 %v1782_v33  ;;  %1651 = vmatpush1.bf16.msra.mxu1 %v1782_v33 }
  0x79   : > { %700 = vmatmul.mubr.bf16.vlgmr.msra.gmra.mxu0 %v1783_v34  ;;  %740 = vmatmul.mubr.bf16.vlgmr.msra.gmra.mxu1 %v1784_v35 }
  0x7a   : > { %709 = vmatprep.mubr.bf16.mxu0 %v1946_v19  ;;  %749 = vmatprep.mubr.bf16.mxu1 %v1946_v19 }
  0x81   : > { %710 = vmatmul.mubr.bf16.gmra.mxu0 %v1785_v36  ;;  %750 = vmatmul.mubr.bf16.gmra.mxu1 %v1786_v37  ;;  %v485_v36 = vld [vmem:[#allocation2 + $0xe8] sm:$0xff]  ;;  %v501_v37 = vld [vmem:[#allocation2 + $0x10] sm:$0xff] }
  0x82   : > { %719 = vmatprep.mubr.bf16.mxu0 %v1946_v19  ;;  %759 = vmatprep.mubr.bf16.mxu1 %v1946_v19 }
  0x89   : > { %720 = vmatmul.mubr.bf16.gmra.mxu0 %v1787_v38  ;;  %760 = vmatmul.mubr.bf16.gmra.mxu1 %v1788_v39 }
  0x8a   : > { %729 = vmatprep.mubr.bf16.mxu0 %v1946_v19  ;;  %769 = vmatprep.mubr.bf16.mxu1 %v1946_v19  ;;  %v498_v19 = vld [vmem:[#allocation2 + $0xc0] sm:$0xff] }
  0x91   : > { %730 = vmatmul.mubr.bf16.gmra.mxu0 %v1789_v40  ;;  %770 = vmatmul.mubr.bf16.gmra.mxu1 %v1790_v41 }
 0x139   : > { %v701_v44 = vpop.f32.mrf.mxu0  ;;  %v741_v45 = vpop.f32.mrf.mxu1 }
 0x13a   : > { %v780_v48 = vadd.f32 %v701_v44, %v475_v42  ;;  %v796_v49 = vadd.f32 %v741_v45, %v491_v43  ;;  %v486_v42 = vld [vmem:[#allocation2 + $0xb8] sm:$0xff]  ;;  %v502_v43 = vld [vmem:[#allocation2 + $0x28] sm:$0xff] }
 0x13b   : > { %v703_v50 = vpop.f32.mrf.mxu0  ;;  %v743_v51 = vpop.f32.mrf.mxu1 }
 0x13c   : > { %812 = vst [vmem:[#allocation2 + $0xb0] sm:$0xff] %v780_v48  ;;  %828 = vst [vmem:[#allocation2 + $0x38] sm:$0xff] %v796_v49  ;;  %v781_v54 = vadd.f32 %v703_v50, %v476_v46  ;;  %v797_v55 = vadd.f32 %v743_v51, %v492_v47  ;;  %v487_v48 = vld [vmem:[#allocation2 + $0x60] sm:$0xff] }
 0x13d   : > { %v705_v56 = vpop.f32.mrf.mxu0  ;;  %v745_v57 = vpop.f32.mrf.mxu1  ;;  %v503_v49 = vld [vmem:[#allocation2 + $0xa0] sm:$0xff] }
 0x13e   : > { %813 = vst [vmem:[#allocation2] sm:$0xff] %v781_v54  ;;  %829 = vst [vmem:[#allocation2 + $0x58] sm:$0xff] %v797_v55  ;;  %v782_v60 = vadd.f32 %v705_v56, %v477_v52  ;;  %v798_v61 = vadd.f32 %v745_v57, %v493_v53  ;;  %v488_v54 = vld [vmem:[#allocation2 + $0xf0] sm:$0xff]  ;;  %v504_v55 = vld [vmem:[#allocation2 + $0xf8] sm:$0xff] }
 0x13f   : > { %v707_v62 = vpop.f32.mrf.mxu0  ;;  %v747_v63 = vpop.f32.mrf.mxu1 }
 0x140   : > { %814 = vst [vmem:[#allocation2 + $0xd8] sm:$0xff] %v782_v60  ;;  %830 = vst [vmem:[#allocation2 + $0x40] sm:$0xff] %v798_v61  ;;  %v783_v2 = vadd.f32 %v707_v62, %v478_v58  ;;  %v799_v3 = vadd.f32 %v747_v63, %v494_v59  ;;  %v489_v60 = vld [vmem:[#allocation2 + $0x8] sm:$0xff]  ;;  %v505_v61 = vld [vmem:[#allocation2 + $0x20] sm:$0xff] }
 0x141   : > { %v711_v4 = vpop.f32.mrf.mxu0  ;;  %v751_v5 = vpop.f32.mrf.mxu1 }
 0x142   : > { %815 = vst [vmem:[#allocation2 + $0x18] sm:$0xff] %v783_v2  ;;  %831 = vst [vmem:[#allocation2 + $0xc8] sm:$0xff] %v799_v3  ;;  %v784_v8 = vadd.f32 %v711_v4, %v479_v0  ;;  %v800_v9 = vadd.f32 %v751_v5, %v495_v1  ;;  %v490_v2 = vld [vmem:[#allocation2 + $0x78] sm:$0xff] }
 0x143   : > { %v713_v10 = vpop.f32.mrf.mxu0  ;;  %v753_v11 = vpop.f32.mrf.mxu1  ;;  %v506_v3 = vld [vmem:[#allocation2 + $0x98] sm:$0xff] }
 0x144   : > { %816 = vst [vmem:[#allocation2 + $0x50] sm:$0xff] %v784_v8  ;;  %832 = vst [vmem:[#allocation2 + $0xe0] sm:$0xff] %v800_v9  ;;  %v785_v14 = vadd.f32 %v713_v10, %v480_v6  ;;  %v801_v15 = vadd.f32 %v753_v11, %v496_v7 }
 0x145   : > { %v715_v16 = vpop.f32.mrf.mxu0  ;;  %v755_v17 = vpop.f32.mrf.mxu1 }
 0x146   : > { %817 = vst [vmem:[#allocation2 + $0x68] sm:$0xff] %v785_v14  ;;  %833 = vst [vmem:[#allocation2 + $0x90] sm:$0xff] %v801_v15  ;;  %v786_v20 = vadd.f32 %v715_v16, %v481_v12  ;;  %v802_v21 = vadd.f32 %v755_v17, %v497_v13 }
 0x147   : > { %v717_v22 = vpop.f32.mrf.mxu0  ;;  %v757_v23 = vpop.f32.mrf.mxu1 }
 0x148   : > { %818 = vst [vmem:[#allocation2 + $0x30] sm:$0xff] %v786_v20  ;;  %834 = vst [vmem:[#allocation2 + $0x70] sm:$0xff] %v802_v21  ;;  %v787_v26 = vadd.f32 %v717_v22, %v482_v18  ;;  %v803_v27 = vadd.f32 %v757_v23, %v498_v19 }
 0x149   : > { %v721_v28 = vpop.f32.mrf.mxu0  ;;  %v761_v29 = vpop.f32.mrf.mxu1 }
 0x14a   : > { %819 = vst [vmem:[#allocation2 + $0x48] sm:$0xff] %v787_v26  ;;  %835 = vst [vmem:[#allocation2 + $0xc0] sm:$0xff] %v803_v27  ;;  %v788_v32 = vadd.f32 %v721_v28, %v483_v24  ;;  %v804_v33 = vadd.f32 %v761_v29, %v499_v25 }
 0x14b   : > { %v723_v34 = vpop.f32.mrf.mxu0  ;;  %v763_v35 = vpop.f32.mrf.mxu1 }
 0x14c   : > { %820 = vst [vmem:[#allocation2 + $0x80] sm:$0xff] %v788_v32  ;;  %836 = vst [vmem:[#allocation2 + $0xa8] sm:$0xff] %v804_v33  ;;  %v789_v38 = vadd.f32 %v723_v34, %v484_v30  ;;  %v805_v39 = vadd.f32 %v763_v35, %v500_v31 }
 0x14d   : > { %v725_v40 = vpop.f32.mrf.mxu0  ;;  %v765_v41 = vpop.f32.mrf.mxu1 }
 0x14e   : > { %821 = vst [vmem:[#allocation2 + $0x88] sm:$0xff] %v789_v38  ;;  %837 = vst [vmem:[#allocation2 + $0xd0] sm:$0xff] %v805_v39  ;;  %v790_v44 = vadd.f32 %v725_v40, %v485_v36  ;;  %v806_v45 = vadd.f32 %v765_v41, %v501_v37 }
 0x14f   : > { %v727_v46 = vpop.f32.mrf.mxu0  ;;  %v767_v47 = vpop.f32.mrf.mxu1 }
 0x150   : > { %822 = vst [vmem:[#allocation2 + $0xe8] sm:$0xff] %v790_v44  ;;  %838 = vst [vmem:[#allocation2 + $0x10] sm:$0xff] %v806_v45  ;;  %v791_v50 = vadd.f32 %v727_v46, %v486_v42  ;;  %v807_v51 = vadd.f32 %v767_v47, %v502_v43 }
 0x151   : > { %v731_v52 = vpop.f32.mrf.mxu0  ;;  %v771_v53 = vpop.f32.mrf.mxu1 }
 0x152   : > { %823 = vst [vmem:[#allocation2 + $0xb8] sm:$0xff] %v791_v50  ;;  %839 = vst [vmem:[#allocation2 + $0x28] sm:$0xff] %v807_v51  ;;  %v792_v56 = vadd.f32 %v731_v52, %v487_v48  ;;  %v808_v57 = vadd.f32 %v771_v53, %v503_v49 }
 0x153   : > { %v733_v58 = vpop.f32.mrf.mxu0  ;;  %v773_v59 = vpop.f32.mrf.mxu1 }
 0x154   : > { %824 = vst [vmem:[#allocation2 + $0x60] sm:$0xff] %v792_v56  ;;  %840 = vst [vmem:[#allocation2 + $0xa0] sm:$0xff] %v808_v57  ;;  %v793_v62 = vadd.f32 %v733_v58, %v488_v54  ;;  %v809_v63 = vadd.f32 %v773_v59, %v504_v55 }
 0x155   : > { %v735_v0 = vpop.f32.mrf.mxu0  ;;  %v775_v1 = vpop.f32.mrf.mxu1 }
 0x156   : > { %825 = vst [vmem:[#allocation2 + $0xf0] sm:$0xff] %v793_v62  ;;  %841 = vst [vmem:[#allocation2 + $0xf8] sm:$0xff] %v809_v63  ;;  %v794_v4 = vadd.f32 %v735_v0, %v489_v60  ;;  %v810_v5 = vadd.f32 %v775_v1, %v505_v61  ;;  %847 = sbr.rel (%p1599_p1) target bundleno = 722 (0x2d2), region = 85 }
 0x157   : > { %v737_v6 = vpop.f32.mrf.mxu0  ;;  %v777_v7 = vpop.f32.mrf.mxu1 }
 0x158   : > { %826 = vst [vmem:[#allocation2 + $0x8] sm:$0xff] %v794_v4  ;;  %842 = vst [vmem:[#allocation2 + $0x20] sm:$0xff] %v810_v5  ;;  %v795_v8 = vadd.f32 %v737_v6, %v490_v2  ;;  %v811_v9 = vadd.f32 %v777_v7, %v506_v3 }
 0x15a   : > { %827 = vst [vmem:[#allocation2 + $0x78] sm:$0xff] %v795_v8  ;;  %843 = vst [vmem:[#allocation2 + $0x98] sm:$0xff] %v811_v9 }
 0x15b   : > { %v888_v10 = vld [vmem:[%s2094_s13 + $0x40] sm:$0xff]  ;;  %v889_v12 = vld [vmem:[%s2094_s13 + $0x48] sm:$0xff]  ;;  %v1947_v13 = vmov 0   ;;  %v883_v19 = vld [vmem:[%s2094_s13 + $0x18] sm:$0xff] }
 0x15c   : > { %v880_v11 = vld [vmem:[%s2094_s13] sm:$0xff]  ;;  %1792 = vset.pattern.permute.xlu1 %v1947_v13  ;;  %1791 = vset.pattern.permute.xlu0 %v1947_v13  ;;  %v904_v14 = vadd.f32 1e-08, %v888_v10  ;;  %v881_v16 = vld [vmem:[%s2094_s13 + $0x8] sm:$0xff]  ;;  %v905_v17 = vadd.f32 1e-08, %v889_v12 }
 0x15d   : > { %v896_v15 = vadd.f32 1e-08, %v880_v11  ;;  %v897_v18 = vadd.f32 1e-08, %v881_v16  ;;  %v882_v20 = vld [vmem:[%s2094_s13 + $0x10] sm:$0xff]  ;;  %v891_v23 = vld [vmem:[%s2094_s13 + $0x58] sm:$0xff] }
 0x15e   : > { %954 = vperm.xlu1 %1792, %v904_v14   ;;  %v899_v21 = vadd.f32 1e-08, %v883_v19  ;;  %v898_v22 = vadd.f32 1e-08, %v882_v20  ;;  %v890_v24 = vld [vmem:[%s2094_s13 + $0x50] sm:$0xff]  ;;  %v885_v25 = vld [vmem:[%s2094_s13 + $0x28] sm:$0xff] }
 0x15f   : > { %914 = vperm.xlu0 %1791, %v896_v15   ;;  %v907_v26 = vadd.f32 1e-08, %v891_v23  ;;  %v906_v27 = vadd.f32 1e-08, %v890_v24  ;;  %v884_v28 = vld [vmem:[%s2094_s13 + $0x20] sm:$0xff]  ;;  %v893_v35 = vld [vmem:[%s2094_s13 + $0x68] sm:$0xff] }
 0x160   : > { %v1793_v29 = vld [vmem:[%s2089_s6 + $0x74] ss:$8 sps:$4 sm:$0xff]   ;;  %v1795_v30 = vld [vmem:[%s2089_s6 + $0x70] ss:$8 sps:$4 sm:$0xff]   ;;  %v1796_v31 = vld [vmem:[%s2089_s6 + $0x64] ss:$8 sps:$4 sm:$0xff]  }
 0x161   : > { %1248 = vmatprep.subr.bf16.mxu0 %v1793_v29  ;;  %1652 = vmatprep.subr.bf16.mxu1 %v1793_v29  ;;  %v901_v32 = vadd.f32 1e-08, %v885_v25  ;;  %v1798_v33 = vld [vmem:[%s2089_s6 + $0x60] ss:$8 sps:$4 sm:$0xff]   ;;  %v900_v34 = vadd.f32 1e-08, %v884_v28 }
 0x162   : > { %959 = vperm.xlu1 %1792, %v905_v17   ;;  %1249 = vmatpush1.bf16.msra.mxu0 %v1795_v30  ;;  %v892_v36 = vld [vmem:[%s2094_s13 + $0x60] sm:$0xff]  ;;  %v1799_v37 = vld [vmem:[%s2089_s6 + $0x54] ss:$8 sps:$4 sm:$0xff]   ;;  %v909_v38 = vadd.f32 1e-08, %v893_v35  ;;  %v867_v24 = vld [vmem:[#allocation2 + $0xc8] sm:$0xff] }
 0x163   : > { %919 = vperm.xlu0 %1791, %v897_v18   ;;  %1668 = vmatpush1.bf16.msra.mxu1 %v1795_v30  ;;  %v1801_v39 = vld [vmem:[%s2089_s6 + $0x50] ss:$8 sps:$4 sm:$0xff]   ;;  %v908_v40 = vadd.f32 1e-08, %v892_v36  ;;  %v1802_v43 = vld [vmem:[%s2089_s6 + $0x44] ss:$8 sps:$4 sm:$0xff]  }
 0x164   : > { %1250 = vmatprep.subr.bf16.mxu0 %v1796_v31  ;;  %1653 = vmatprep.subr.bf16.mxu1 %v1796_v31  ;;  %v887_v41 = vld [vmem:[%s2094_s13 + $0x38] sm:$0xff]  ;;  %v886_v42 = vld [vmem:[%s2094_s13 + $0x30] sm:$0xff]  ;;  %v1804_v45 = vld [vmem:[%s2089_s6 + $0x40] ss:$8 sps:$4 sm:$0xff]  }
 0x165   : > { %v895_v44 = vld [vmem:[%s2094_s13 + $0x78] sm:$0xff]  ;;  %v903_v46 = vadd.f32 1e-08, %v887_v41  ;;  %v902_v47 = vadd.f32 1e-08, %v886_v42  ;;  %v894_v48 = vld [vmem:[%s2094_s13 + $0x70] sm:$0xff] }
 0x166   : > { %929 = vperm.xlu1 %1792, %v899_v21   ;;  %1251 = vmatpush1.bf16.msra.mxu0 %v1798_v33  ;;  %v1805_v49 = vld [vmem:[%s2089_s6 + $0x34] ss:$8 sps:$4 sm:$0xff]   ;;  %v1807_v50 = vld [vmem:[%s2089_s6 + $0x30] ss:$8 sps:$4 sm:$0xff]   ;;  %v911_v51 = vadd.f32 1e-08, %v895_v44 }
 0x167   : > { %924 = vperm.xlu0 %1791, %v898_v22   ;;  %1669 = vmatpush1.bf16.msra.mxu1 %v1798_v33  ;;  %v910_v52 = vadd.f32 1e-08, %v894_v48  ;;  %v1808_v53 = vld [vmem:[%s2089_s6 + $0x24] ss:$8 sps:$4 sm:$0xff]   ;;  %v1810_v54 = vld [vmem:[%s2089_s6 + $0x20] ss:$8 sps:$4 sm:$0xff]  }
 0x168   : > { %1252 = vmatprep.subr.bf16.mxu0 %v1799_v37  ;;  %1654 = vmatprep.subr.bf16.mxu1 %v1799_v37  ;;  %v1811_v55 = vld [vmem:[%s2089_s6 + $0x14] ss:$8 sps:$4 sm:$0xff]   ;;  %v1813_v56 = vld [vmem:[%s2089_s6 + $0x10] ss:$8 sps:$4 sm:$0xff]   ;;  %v1814_v57 = vld [vmem:[%s2089_s6 + $0x4] ss:$8 sps:$4 sm:$0xff]  }
 0x169   : > { %v1816_v58 = vld [vmem:[%s2089_s6] ss:$8 sps:$4 sm:$0xff]   ;;  %v1817_v59 = vld [vmem:[%s2089_s6 + $0xf4] ss:$8 sps:$4 sm:$0xff]   ;;  %v1819_v60 = vld [vmem:[%s2089_s6 + $0xf0] ss:$8 sps:$4 sm:$0xff]  }
 0x16a   : > { %969 = vperm.xlu1 %1792, %v907_v26   ;;  %1253 = vmatpush1.bf16.msra.mxu0 %v1801_v39  ;;  %v1820_v61 = vld [vmem:[%s2089_s6 + $0xe4] ss:$8 sps:$4 sm:$0xff]   ;;  %v1822_v62 = vld [vmem:[%s2089_s6 + $0xe0] ss:$8 sps:$4 sm:$0xff]   ;;  %v1823_v63 = vld [vmem:[%s2089_s6 + $0xd4] ss:$8 sps:$4 sm:$0xff]  }
 0x16b   : > { %964 = vperm.xlu0 %1791, %v906_v27   ;;  %1670 = vmatpush1.bf16.msra.mxu1 %v1801_v39  ;;  %v1825_v0 = vld [vmem:[%s2089_s6 + $0xd0] ss:$8 sps:$4 sm:$0xff]   ;;  %v1826_v1 = vld [vmem:[%s2089_s6 + $0xc4] ss:$8 sps:$4 sm:$0xff]   ;;  %v1828_v2 = vld [vmem:[%s2089_s6 + $0xc0] ss:$8 sps:$4 sm:$0xff]  }
 0x16c   : > { %1254 = vmatprep.subr.bf16.mxu0 %v1802_v43  ;;  %1655 = vmatprep.subr.bf16.mxu1 %v1802_v43  ;;  %v1829_v3 = vld [vmem:[%s2089_s6 + $0xb4] ss:$8 sps:$4 sm:$0xff]   ;;  %v1831_v4 = vld [vmem:[%s2089_s6 + $0xb0] ss:$8 sps:$4 sm:$0xff]   ;;  %v1832_v5 = vld [vmem:[%s2089_s6 + $0xa4] ss:$8 sps:$4 sm:$0xff]  }
 0x16d   : > { %v1834_v6 = vld [vmem:[%s2089_s6 + $0xa0] ss:$8 sps:$4 sm:$0xff]   ;;  %v1835_v7 = vld [vmem:[%s2089_s6 + $0x94] ss:$8 sps:$4 sm:$0xff]   ;;  %v1837_v8 = vld [vmem:[%s2089_s6 + $0x90] ss:$8 sps:$4 sm:$0xff]  }
 0x16e   : > { %939 = vperm.xlu1 %1792, %v901_v32   ;;  %1255 = vmatpush1.bf16.msra.mxu0 %v1804_v45  ;;  %v1838_v9 = vld [vmem:[%s2089_s6 + $0x84] ss:$8 sps:$4 sm:$0xff]   ;;  %v1840_v10 = vld [vmem:[%s2089_s6 + $0x80] ss:$8 sps:$4 sm:$0xff]   ;;  %v865_v20 = vld [vmem:[#allocation2 + $0x58] sm:$0xff] }
 0x16f   : > { %934 = vperm.xlu0 %1791, %v900_v34   ;;  %1671 = vmatpush1.bf16.msra.mxu1 %v1804_v45  ;;  %v849_v19 = vld [vmem:[#allocation2] sm:$0xff]  ;;  %v864_v25 = vld [vmem:[#allocation2 + $0x38] sm:$0xff]  ;;  %v848_v29 = vld [vmem:[#allocation2 + $0xb0] sm:$0xff] }
 0x170   : > { %1256 = vmatprep.subr.bf16.mxu0 %v1805_v49  ;;  %1656 = vmatprep.subr.bf16.mxu1 %v1805_v49  ;;  %v866_v26 = vld [vmem:[#allocation2 + $0x40] sm:$0xff]  ;;  %v851_v28 = vld [vmem:[#allocation2 + $0x18] sm:$0xff]  ;;  %v855_v43 = vld [vmem:[#allocation2 + $0x48] sm:$0xff] }
 0x171   : > { %v850_v30 = vld [vmem:[#allocation2 + $0xd8] sm:$0xff] }
 0x172   : > { %979 = vperm.xlu1 %1792, %v909_v38   ;;  %1257 = vmatpush1.bf16.msra.mxu0 %v1807_v50 }
 0x173   : > { %974 = vperm.xlu0 %1791, %v908_v40   ;;  %1672 = vmatpush1.bf16.msra.mxu1 %v1807_v50 }
 0x174   : > { %1258 = vmatprep.subr.bf16.mxu0 %v1808_v53  ;;  %1657 = vmatprep.subr.bf16.mxu1 %v1808_v53 }
 0x176   : > { %949 = vperm.xlu1 %1792, %v903_v46   ;;  %1259 = vmatpush1.bf16.msra.mxu0 %v1810_v54  ;;  %v853_v46 = vld [vmem:[#allocation2 + $0x68] sm:$0xff] }
 0x177   : > { %944 = vperm.xlu0 %1791, %v902_v47   ;;  %1673 = vmatpush1.bf16.msra.mxu1 %v1810_v54 }
 0x178   : > { %1260 = vmatprep.subr.bf16.mxu0 %v1811_v55  ;;  %1658 = vmatprep.subr.bf16.mxu1 %v1811_v55 }
 0x17a   : > { %989 = vperm.xlu1 %1792, %v911_v51   ;;  %1261 = vmatpush1.bf16.msra.mxu0 %v1813_v56 }
 0x17b   : > { %984 = vperm.xlu0 %1791, %v910_v52   ;;  %1674 = vmatpush1.bf16.msra.mxu1 %v1813_v56  ;;  %v871_v52 = vld [vmem:[#allocation2 + $0xc0] sm:$0xff]  ;;  %v852_v56 = vld [vmem:[#allocation2 + $0x50] sm:$0xff] }
 0x17c   : > { %1262 = vmatprep.subr.bf16.mxu0 %v1814_v57  ;;  %1659 = vmatprep.subr.bf16.mxu1 %v1814_v57  ;;  %v854_v57 = vld [vmem:[#allocation2 + $0x30] sm:$0xff] }
 0x17e   : > { %1263 = vmatpush1.bf16.msra.mxu0 %v1816_v58 }
 0x17f   : > { %1675 = vmatpush1.bf16.msra.mxu1 %v1816_v58  ;;  %1264 = vmatprep.subr.bf16.mxu0 %v1817_v59  ;;  %v870_v58 = vld [vmem:[#allocation2 + $0x70] sm:$0xff] }
 0x180   : > { %1660 = vmatprep.subr.bf16.mxu1 %v1817_v59  ;;  %v869_v59 = vld [vmem:[#allocation2 + $0x90] sm:$0xff] }
 0x182   : > { %1265 = vmatpush2.bf16.msra.mxu0 %v1819_v60 }
 0x183   : > { %1676 = vmatpush2.bf16.msra.mxu1 %v1819_v60  ;;  %1266 = vmatprep.subr.bf16.mxu0 %v1820_v61  ;;  %v868_v60 = vld [vmem:[#allocation2 + $0xe0] sm:$0xff] }
 0x184   : > { %1661 = vmatprep.subr.bf16.mxu1 %v1820_v61 }
 0x186   : > { %1267 = vmatpush2.bf16.msra.mxu0 %v1822_v62 }
 0x187   : > { %1677 = vmatpush2.bf16.msra.mxu1 %v1822_v62  ;;  %1268 = vmatprep.subr.bf16.mxu0 %v1823_v63 }
 0x188   : > { %1662 = vmatprep.subr.bf16.mxu1 %v1823_v63 }
 0x18a   : > { %1269 = vmatpush2.bf16.msra.mxu0 %v1825_v0 }
 0x18b   : > { %1678 = vmatpush2.bf16.msra.mxu1 %v1825_v0  ;;  %1270 = vmatprep.subr.bf16.mxu0 %v1826_v1 }
 0x18c   : > { %1663 = vmatprep.subr.bf16.mxu1 %v1826_v1 }
 0x18e   : > { %1271 = vmatpush2.bf16.msra.mxu0 %v1828_v2 }
 0x18f   : > { %1679 = vmatpush2.bf16.msra.mxu1 %v1828_v2  ;;  %1272 = vmatprep.subr.bf16.mxu0 %v1829_v3 }
 0x190   : > { %1664 = vmatprep.subr.bf16.mxu1 %v1829_v3 }
 0x192   : > { %1273 = vmatpush2.bf16.msra.mxu0 %v1831_v4 }
 0x193   : > { %1680 = vmatpush2.bf16.msra.mxu1 %v1831_v4  ;;  %1274 = vmatprep.subr.bf16.mxu0 %v1832_v5 }
 0x194   : > { %1665 = vmatprep.subr.bf16.mxu1 %v1832_v5 }
 0x196   : > { %1275 = vmatpush2.bf16.msra.mxu0 %v1834_v6 }
 0x197   : > { %1681 = vmatpush2.bf16.msra.mxu1 %v1834_v6  ;;  %1276 = vmatprep.subr.bf16.mxu0 %v1835_v7 }
 0x198   : > { %1666 = vmatprep.subr.bf16.mxu1 %v1835_v7 }
 0x19a   : > { %1277 = vmatpush2.bf16.msra.mxu0 %v1837_v8 }
 0x19b   : > { %1682 = vmatpush2.bf16.msra.mxu1 %v1837_v8  ;;  %1278 = vmatprep.subr.bf16.mxu0 %v1838_v9  ;;  %v859_v8 = vld [vmem:[#allocation2 + $0xb8] sm:$0xff] }
 0x19c   : > { %1667 = vmatprep.subr.bf16.mxu1 %v1838_v9  ;;  %v857_v9 = vld [vmem:[#allocation2 + $0x88] sm:$0xff] }
 0x19e   : > { %1279 = vmatpush2.bf16.msra.mxu0 %v1840_v10 }
 0x19f   : > { %1683 = vmatpush2.bf16.msra.mxu1 %v1840_v10 }
 0x1d9   : > { %v955_v11 = vpop.permute.xlu1 %954 }
 0x1da   : > { %v915_v12 = vpop.permute.xlu0 %914  ;;  %1841 = vrcp.f32 %v955_v11 }
 0x1db   : > { %1843 = vrcp.f32 %v915_v12 }
 0x1dd   : > { %v960_v13 = vpop.permute.xlu1 %959 }
 0x1de   : > { %v920_v14 = vpop.permute.xlu0 %919  ;;  %1845 = vrcp.f32 %v960_v13 }
 0x1df   : > { %1847 = vrcp.f32 %v920_v14 }
 0x1e1   : > { %v930_v15 = vpop.permute.xlu1 %929 }
 0x1e2   : > { %v925_v16 = vpop.permute.xlu0 %924  ;;  %1849 = vrcp.f32 %v930_v15 }
 0x1e3   : > { %1851 = vrcp.f32 %v925_v16  ;;  %v875_v16 = vld [vmem:[#allocation2 + $0x28] sm:$0xff] }
 0x1e5   : > { %v970_v17 = vpop.permute.xlu1 %969 }
 0x1e6   : > { %v965_v18 = vpop.permute.xlu0 %964  ;;  %1853 = vrcp.f32 %v970_v17 }
 0x1e7   : > { %1855 = vrcp.f32 %v965_v18  ;;  %v1842_v21 = vpop.eup %1841  ;;  %v856_v18 = vld [vmem:[#allocation2 + $0x80] sm:$0xff] }
 0x1e8   : > { %v1844_v27 = vpop.eup %1843  ;;  %v1018_v33 = vmul.f32 %v1842_v21, %v865_v20  ;;  %v1017_v35 = vmul.f32 %v1842_v21, %v864_v25  ;;  %v874_v20 = vld [vmem:[#allocation2 + $0x10] sm:$0xff] }
 0x1e9   : > { %v940_v22 = vpop.permute.xlu1 %939  ;;  %v994_v39 = vmul.f32 %v1844_v27, %v849_v19  ;;  %v993_v41 = vmul.f32 %v1844_v27, %v848_v29  ;;  %v858_v19 = vld [vmem:[#allocation2 + $0xe8] sm:$0xff]  ;;  %v873_v21 = vld [vmem:[#allocation2 + $0xd0] sm:$0xff] }
 0x1ea   : > { %v935_v23 = vpop.permute.xlu0 %934  ;;  %1857 = vrcp.f32 %v940_v22  ;;  %v872_v22 = vld [vmem:[#allocation2 + $0xa8] sm:$0xff] }
 0x1eb   : > { %v1846_v31 = vpop.eup %1845  ;;  %1859 = vrcp.f32 %v935_v23 }
 0x1ec   : > { %v1848_v32 = vpop.eup %1847  ;;  %v1021_v34 = vmul.f32 %v1846_v31, %v867_v24  ;;  %v1020_v36 = vmul.f32 %v1846_v31, %v866_v26 }
 0x1ed   : > { %v980_v37 = vpop.permute.xlu1 %979  ;;  %v997_v40 = vmul.f32 %v1848_v32, %v851_v28  ;;  %v996_v42 = vmul.f32 %v1848_v32, %v850_v30  ;;  %v863_v32 = vld [vmem:[#allocation2 + $0x78] sm:$0xff] }
 0x1ee   : > { %v975_v38 = vpop.permute.xlu0 %974  ;;  %1861 = vrcp.f32 %v980_v37  ;;  %v1049_v44 = vpack.c.bf16 %v1021_v34, %v1018_v33  ;;  %v1048_v45 = vpack.c.bf16 %v1020_v36, %v1017_v35  ;;  %v861_v33 = vld [vmem:[#allocation2 + $0xf0] sm:$0xff] }
 0x1ef   : > { %v1850_v47 = vpop.eup %1849  ;;  %1863 = vrcp.f32 %v975_v38  ;;  %v1041_v48 = vpack.c.bf16 %v997_v40, %v994_v39  ;;  %v1040_v49 = vpack.c.bf16 %v996_v42, %v993_v41  ;;  %v860_v40 = vld [vmem:[#allocation2 + $0x60] sm:$0xff]  ;;  %v879_v42 = vld [vmem:[#allocation2 + $0x98] sm:$0xff] }
 0x1f0   : > { %v1852_v50 = vpop.eup %1851  ;;  %1320 = vmatprep.mubr.bf16.mxu1 %v1049_v44  ;;  %v1003_v51 = vmul.f32 %v1850_v47, %v855_v43  ;;  %v1002_v2 = vmul.f32 %v1850_v47, %v854_v57  ;;  %v862_v43 = vld [vmem:[#allocation2 + $0x8] sm:$0xff]  ;;  %v878_v44 = vld [vmem:[#allocation2 + $0x20] sm:$0xff] }
 0x1f1   : > { %1280 = vmatprep.mubr.bf16.mxu0 %v1041_v48  ;;  %v950_v53 = vpop.permute.xlu1 %949  ;;  %1321 = vmatmul.mubr.bf16.vlgmr.msra.gmra.mxu1 %v1048_v45  ;;  %v1000_v55 = vmul.f32 %v1852_v50, %v853_v46  ;;  %v999_v1 = vmul.f32 %v1852_v50, %v852_v56  ;;  %v877_v45 = vld [vmem:[#allocation2 + $0xf8] sm:$0xff]  ;;  %v876_v46 = vld [vmem:[#allocation2 + $0xa0] sm:$0xff] }
 0x1f2   : > { %v945_v54 = vpop.permute.xlu0 %944  ;;  %1865 = vrcp.f32 %v950_v53  ;;  %1281 = vmatmul.mubr.bf16.vlgmr.msra.gmra.mxu0 %v1040_v49 }
 0x1f3   : > { %v1854_v61 = vpop.eup %1853  ;;  %1867 = vrcp.f32 %v945_v54  ;;  %v1043_v62 = vpack.c.bf16 %v1003_v51, %v1000_v55  ;;  %v1042_v14 = vpack.c.bf16 %v1002_v2, %v999_v1 }
 0x1f4   : > { %v1856_v63 = vpop.eup %1855  ;;  %v1027_v0 = vmul.f32 %v1854_v61, %v871_v52  ;;  %v1026_v3 = vmul.f32 %v1854_v61, %v870_v58 }
 0x1f5   : > { %1290 = vmatprep.mubr.bf16.mxu0 %v1043_v62  ;;  %v990_v4 = vpop.permute.xlu1 %989  ;;  %v1024_v6 = vmul.f32 %v1856_v63, %v869_v59  ;;  %v1023_v7 = vmul.f32 %v1856_v63, %v868_v60 }
 0x1f6   : > { %v985_v5 = vpop.permute.xlu0 %984  ;;  %1869 = vrcp.f32 %v990_v4 }
 0x1f7   : > { %v1858_v10 = vpop.eup %1857  ;;  %1871 = vrcp.f32 %v985_v5  ;;  %v1051_v11 = vpack.c.bf16 %v1027_v0, %v1024_v6  ;;  %v1050_v12 = vpack.c.bf16 %v1026_v3, %v1023_v7 }
 0x1f8   : > { %v1860_v13 = vpop.eup %1859  ;;  %v1009_v15 = vmul.f32 %v1858_v10, %v859_v8  ;;  %v1008_v28 = vmul.f32 %v1858_v10, %v858_v19 }
 0x1f9   : > { %1330 = vmatprep.mubr.bf16.mxu1 %v1051_v11  ;;  %v1006_v17 = vmul.f32 %v1860_v13, %v857_v9  ;;  %v1005_v27 = vmul.f32 %v1860_v13, %v856_v18 }
 0x1fa   : > { %1291 = vmatmul.mubr.bf16.gmra.mxu0 %v1042_v14  ;;  %1331 = vmatmul.mubr.bf16.gmra.mxu1 %v1050_v12 }
 0x1fb   : > { %v1862_v23 = vpop.eup %1861  ;;  %v1045_v24 = vpack.c.bf16 %v1009_v15, %v1006_v17  ;;  %v1044_v38 = vpack.c.bf16 %v1008_v28, %v1005_v27 }
 0x1fc   : > { %v1864_v25 = vpop.eup %1863  ;;  %v1033_v26 = vmul.f32 %v1862_v23, %v875_v16  ;;  %v1032_v29 = vmul.f32 %v1862_v23, %v874_v20 }
 0x1fd   : > { %1300 = vmatprep.mubr.bf16.mxu0 %v1045_v24  ;;  %v1030_v30 = vmul.f32 %v1864_v25, %v873_v21  ;;  %v1029_v31 = vmul.f32 %v1864_v25, %v872_v22 }
 0x1ff   : > { %v1866_v34 = vpop.eup %1865  ;;  %v1053_v35 = vpack.c.bf16 %v1033_v26, %v1030_v30  ;;  %v1052_v36 = vpack.c.bf16 %v1032_v29, %v1029_v31 }
 0x200   : > { %v1868_v37 = vpop.eup %1867  ;;  %v1015_v39 = vmul.f32 %v1866_v34, %v863_v32  ;;  %v1014_v52 = vmul.f32 %v1866_v34, %v862_v43 }
 0x201   : > { %1340 = vmatprep.mubr.bf16.mxu1 %v1053_v35  ;;  %v1012_v41 = vmul.f32 %v1868_v37, %v861_v33  ;;  %v1011_v51 = vmul.f32 %v1868_v37, %v860_v40 }
 0x202   : > { %1301 = vmatmul.mubr.bf16.gmra.mxu0 %v1044_v38  ;;  %1341 = vmatmul.mubr.bf16.gmra.mxu1 %v1052_v36 }
 0x203   : > { %v1870_v47 = vpop.eup %1869  ;;  %v1047_v48 = vpack.c.bf16 %v1015_v39, %v1012_v41  ;;  %v1046_v58 = vpack.c.bf16 %v1014_v52, %v1011_v51 }
 0x204   : > { %v1872_v49 = vpop.eup %1871  ;;  %v1039_v50 = vmul.f32 %v1870_v47, %v879_v42  ;;  %v1038_v53 = vmul.f32 %v1870_v47, %v878_v44 }
 0x205   : > { %1310 = vmatprep.mubr.bf16.mxu0 %v1047_v48  ;;  %v1036_v54 = vmul.f32 %v1872_v49, %v877_v45  ;;  %v1035_v55 = vmul.f32 %v1872_v49, %v876_v46 }
 0x207   : > { %v1055_v56 = vpack.c.bf16 %v1039_v50, %v1036_v54  ;;  %v1054_v57 = vpack.c.bf16 %v1038_v53, %v1035_v55 }
 0x209   : > { %1350 = vmatprep.mubr.bf16.mxu1 %v1055_v56 }
 0x20a   : > { %1311 = vmatmul.mubr.bf16.gmra.mxu0 %v1046_v58  ;;  %1351 = vmatmul.mubr.bf16.gmra.mxu1 %v1054_v57 }
 0x2b1   : > { %v1322_v59 = vpop.f32.mrf.mxu1 }
 0x2b2   : > { %v1282_v60 = vpop.f32.mrf.mxu0  ;;  %1377 = vst [vmem:[%s2099_s5 + $0x80] sm:$0xff] %v1322_v59 }
 0x2b3   : > { %1361 = vst [vmem:[%s2099_s5] sm:$0xff] %v1282_v60  ;;  %v1324_v61 = vpop.f32.mrf.mxu1 }
 0x2b4   : > { %v1284_v62 = vpop.f32.mrf.mxu0  ;;  %1378 = vst [vmem:[%s2099_s5 + $0x88] sm:$0xff] %v1324_v61 }
 0x2b5   : > { %1362 = vst [vmem:[%s2099_s5 + $0x8] sm:$0xff] %v1284_v62  ;;  %v1326_v63 = vpop.f32.mrf.mxu1 }
 0x2b6   : > { %v1286_v0 = vpop.f32.mrf.mxu0  ;;  %1379 = vst [vmem:[%s2099_s5 + $0x90] sm:$0xff] %v1326_v63 }
 0x2b7   : > { %1363 = vst [vmem:[%s2099_s5 + $0x10] sm:$0xff] %v1286_v0  ;;  %v1328_v1 = vpop.f32.mrf.mxu1 }
 0x2b8   : > { %v1288_v2 = vpop.f32.mrf.mxu0  ;;  %1380 = vst [vmem:[%s2099_s5 + $0x98] sm:$0xff] %v1328_v1 }
 0x2b9   : > { %1364 = vst [vmem:[%s2099_s5 + $0x18] sm:$0xff] %v1288_v2 }
 0x2ba   : > { %v1292_v3 = vpop.f32.mrf.mxu0  ;;  %v1332_v4 = vpop.f32.mrf.mxu1 }
 0x2bb   : > { %1365 = vst [vmem:[%s2099_s5 + $0x20] sm:$0xff] %v1292_v3  ;;  %1381 = vst [vmem:[%s2099_s5 + $0xa0] sm:$0xff] %v1332_v4 }
 0x2bc   : > { %v1294_v5 = vpop.f32.mrf.mxu0  ;;  %v1334_v6 = vpop.f32.mrf.mxu1 }
 0x2bd   : > { %1366 = vst [vmem:[%s2099_s5 + $0x28] sm:$0xff] %v1294_v5  ;;  %1382 = vst [vmem:[%s2099_s5 + $0xa8] sm:$0xff] %v1334_v6 }
 0x2be   : > { %v1296_v7 = vpop.f32.mrf.mxu0  ;;  %v1336_v8 = vpop.f32.mrf.mxu1 }
 0x2bf   : > { %1367 = vst [vmem:[%s2099_s5 + $0x30] sm:$0xff] %v1296_v7  ;;  %1383 = vst [vmem:[%s2099_s5 + $0xb0] sm:$0xff] %v1336_v8 }
 0x2c0   : > { %v1298_v9 = vpop.f32.mrf.mxu0  ;;  %v1338_v10 = vpop.f32.mrf.mxu1 }
 0x2c1   : > { %1368 = vst [vmem:[%s2099_s5 + $0x38] sm:$0xff] %v1298_v9  ;;  %1384 = vst [vmem:[%s2099_s5 + $0xb8] sm:$0xff] %v1338_v10 }
 0x2c2   : > { %v1302_v11 = vpop.f32.mrf.mxu0  ;;  %v1342_v12 = vpop.f32.mrf.mxu1 }
 0x2c3   : > { %1369 = vst [vmem:[%s2099_s5 + $0x40] sm:$0xff] %v1302_v11  ;;  %1385 = vst [vmem:[%s2099_s5 + $0xc0] sm:$0xff] %v1342_v12 }
 0x2c4   : > { %v1304_v13 = vpop.f32.mrf.mxu0  ;;  %v1344_v14 = vpop.f32.mrf.mxu1 }
 0x2c5   : > { %1370 = vst [vmem:[%s2099_s5 + $0x48] sm:$0xff] %v1304_v13  ;;  %1386 = vst [vmem:[%s2099_s5 + $0xc8] sm:$0xff] %v1344_v14 }
 0x2c6   : > { %v1306_v15 = vpop.f32.mrf.mxu0  ;;  %v1346_v16 = vpop.f32.mrf.mxu1 }
 0x2c7   : > { %1371 = vst [vmem:[%s2099_s5 + $0x50] sm:$0xff] %v1306_v15  ;;  %1387 = vst [vmem:[%s2099_s5 + $0xd0] sm:$0xff] %v1346_v16 }
 0x2c8   : > { %v1308_v17 = vpop.f32.mrf.mxu0  ;;  %v1348_v18 = vpop.f32.mrf.mxu1 }
 0x2c9   : > { %1372 = vst [vmem:[%s2099_s5 + $0x58] sm:$0xff] %v1308_v17  ;;  %1388 = vst [vmem:[%s2099_s5 + $0xd8] sm:$0xff] %v1348_v18 }
 0x2ca   : > { %v1312_v19 = vpop.f32.mrf.mxu0  ;;  %v1352_v20 = vpop.f32.mrf.mxu1 }
 0x2cb   : > { %1373 = vst [vmem:[%s2099_s5 + $0x60] sm:$0xff] %v1312_v19  ;;  %1389 = vst [vmem:[%s2099_s5 + $0xe0] sm:$0xff] %v1352_v20 }
 0x2cc   : > { %v1314_v21 = vpop.f32.mrf.mxu0  ;;  %v1354_v22 = vpop.f32.mrf.mxu1 }
 0x2cd   : > { %1374 = vst [vmem:[%s2099_s5 + $0x68] sm:$0xff] %v1314_v21  ;;  %1390 = vst [vmem:[%s2099_s5 + $0xe8] sm:$0xff] %v1354_v22 }
 0x2ce   : > { %v1316_v23 = vpop.f32.mrf.mxu0  ;;  %v1356_v24 = vpop.f32.mrf.mxu1 }
 0x2cf   : > { %1375 = vst [vmem:[%s2099_s5 + $0x70] sm:$0xff] %v1316_v23  ;;  %1391 = vst [vmem:[%s2099_s5 + $0xf0] sm:$0xff] %v1356_v24 }
 0x2d0   : > { %v1318_v25 = vpop.f32.mrf.mxu0  ;;  %v1358_v26 = vpop.f32.mrf.mxu1 }
 0x2d1   : > { %1376 = vst [vmem:[%s2099_s5 + $0x78] sm:$0xff] %v1318_v25  ;;  %1392 = vst [vmem:[%s2099_s5 + $0xf8] sm:$0xff] %v1358_v26 }
 0x2d2 PF: > { %s14_s23 = sadd.s32 1, %s1943_s23   ;;  %s2260_s19 = sld [smem:[#allocation4_spill]] }
 0x2d3   : > { %p11_p2 = scmp.ge.s32.totalorder %s14_s23, 18   ;;  %s2261_s22 = sld [smem:[#allocation6_spill]] }
 0x2d4   : > { %s2262_s24 = sld [smem:[#allocation5_spill]]  ;;  %s2264_s15 = smov %s1915_s16 }
 0x2d5   : > { %s2263_s25 = sld [smem:[#allocation7_spill]]  ;;  %s2265_s16 = smov %s2044_s8 }
 0x2d6   : > { %s2266_s17 = smov %s1931_s20  ;;  %s2267_s18 = smov %s1935_s21 }
 0x2d7   :  { %13 = sbr.rel (!%p11_p2) target bundleno = 7 (0x7), region = 129 }
 0x2d9   : > { %s2268_s20 = smov %s2261_s22 }
 0x2da   : > { %s2269_s21 = smov %s2262_s24 }
 0x2db   : > { %s2270_s22 = smov %s2263_s25 }

// kernel: mbgcn_forward.12
= control target key start
LH: loop header
LB: loop body
LE: loop exit
PB: predicated region body
PF: predicated region fallthrough
CT: control target
= control target key end

     0   :  { %s97_s0 = inlined_call_operand.vmem [shape: f32[8,256], index: 0, kind: input, shape index: {}]   ;;  %s98_s1 = inlined_call_operand.hbm [shape: f32[1,1], index: 1, kind: output, shape index: {}]  }
   0x1   :  { %v15_v0 = vld [vmem:[%s97_s0] sm:$0xff]  ;;  %v16_v1 = vld [vmem:[%s97_s0 + $0x8] sm:$0xff] }
   0x2   :  { %6 = vsyncpa [#allocation3], 0  ;;  %v18_v2 = vmul.f32 %v15_v0, %v15_v0  ;;  %v19_v3 = vmul.f32 %v16_v1, %v16_v1  ;;  %vm13_vm0 = vcmask 0   ;;  %v74_v5 = vmov 0.0   ;;  %s75_s10 = smov [#allocation2]  }
   0x3   :  { %14 = vst.msk [vmem:[#allocation2] sm:$0x1] %vm13_vm0, %v74_v5  ;;  %s40_s0 = sshll.u32 %s75_s10, 4  ;;  %s41_s0 = int_to_ptr.vmem [resolvable:$true] %s40_s0 }
   0x4   :  { %v20_v4 = vadd.f32 %v19_v3, %v18_v2  ;;  %s52_s12 = scalar_lea.vmem %s41_s0, 16  ;;  %s56_s13 = scalar_lea.vmem %s41_s0, 32 }
   0x5   :  { %p53_p0 = scmp.ne.s32.totalorder %s41_s0, %s52_s12  ;;  %p57_p1 = scmp.lt.s32.totalorder %s41_s0, %s41_s0 }
   0x6   :  { %21 = vadd.xlane.f32.xlu0 %v20_v4  ;;  %p58_p2 = scmp.lt.s32.totalorder %s56_s13, %s52_s12 }
   0x8   :  { %p59_p3 = por %p58_p2, %p57_p1 }
   0xa   :  { %v17_v13 = vld [vmem:[#allocation2] sm:$0x1]  ;;  %p60_p4 = pnand %p59_p3, %p53_p0 }
  0x8f   :  { %v22_v6 = vpop.xlane.xlu0 %21 }
  0x90   :  { %v23_v7 = vrot.slane %v22_v6, 4 }
  0x92   :  { %v24_v8 = vadd.f32 %v23_v7, %v22_v6 }
  0x94   :  { %v25_v9 = vrot.slane %v24_v8, 2 }
  0x96   :  { %v26_v10 = vadd.f32 %v25_v9, %v24_v8 }
  0x98   :  { %v27_v11 = vrot.slane %v26_v10, 1 }
  0x9a   :  { %v28_v12 = vadd.f32 %v27_v11, %v26_v10 }
  0x9c   :  { %48 = vpush %v28_v12 }
  0xcd   :  { %s49_s11 = spop %48 }
  0xce   :  { %v30_v14 = vstv %s49_s11 }
  0xcf   :  { %v31_v15 = vadd.f32 %v30_v14, %v17_v13 }
  0xd1   :  { %33 = vst.msk [vmem:[#allocation2] sm:$0x1] %vm13_vm0, %v31_v15 }
  0xd2   :  { %63 = shalt.err (!%p60_p4)
}
  0xd3   :  { %43 = dma.vmem_to_hbm [thread:$0]  %s41_s0, 16, %s98_s1, [#allocation3]  }
  0xd4   :  { %72 = dma.done.wait [#allocation3], 16  }
  0xd5   :  { %73 = vsyncadd [#allocation3], 4294967280 }
  0xd6   :  { %47 = vsyncpa [#allocation3], 1 }

// kernel: mbgcn_forward.11
= control target key start
LH: loop header
LB: loop body
LE: loop exit
PB: predicated region body
PF: predicated region fallthrough
CT: control target
= control target key end

     0   :  { %9 = vsyncpa [#allocation4], 0  ;;  %s1293_s15 = smov 0   ;;  %s1295_s16 = smov 0   ;;  %s1620_s0 = inlined_call_operand.vmem [shape: f32[8,256], index: 0, kind: input, shape index: {}]   ;;  %s1621_s1 = inlined_call_operand.vmem [shape: f32[8,16,256], index: 1, kind: input, shape index: {}]   ;;  %s1622_s2 = inlined_call_operand.vmem [shape: f32[2,8,256], index: 2, kind: input, shape index: {}]   ;;  %s1623_s3 = inlined_call_operand.vmem [shape: f32[2,8,16,256], index: 3, kind: input, shape index: {}]   ;;  %s1624_s4 = inlined_call_operand.hbm [shape: f32[8,16], index: 4, kind: output, shape index: {}]  }
   0x1   :  { %s1297_s17 = smov 0  }
   0x2 LB: > { %s1156_s18 = sadd.s32 4294967295, %s1263_s17   ;;  %s24_s19 = sadd.s32 1, %s1259_s16  ;;  %s1263_s17 = sphi %s1297_s17, %s15_s17   ;;  %s1259_s16 = sphi %s1295_s16, %s1627_s16   ;;  %s1255_s15 = sphi %s1293_s15, %s1626_s15  }
   0x3   : > { %p25_p0 = scmp.ge.s32.totalorder %s24_s19, 2  ;;  %p1161_p1 = scmp.ge.s32.totalorder %s1263_s17, 1 }
   0x4   : > { %p221_p2 = scmp.lt.s32.totalorder %s1263_s17, 3 }
   0x5   : > { %s1629_s19 = smov (%p25_p0, %s24_s19), 0 }
   0x6   : > { %p222_p3 = pnand %p1161_p1, %p221_p2 }
   0x7   : > { %p279_p4 = scmp.lt.s32.totalorder (!%p222_p3), %s1255_s15, 1  ;;  %p1166_p5 = scmp.ne.s32.totalorder (!%p222_p3), %s1255_s15, 0 }
   0x8   : > { %225 = sbr.rel (%p222_p3) target bundleno = 422 (0x1a6), region = 36 }
   0xd   : > { %s280_s20 = scalar_select %p279_p4, %s1255_s15, 1 }
   0xe   : > { %302 = sbr.rel (%p1166_p5) target bundleno = 207 (0xcf), region = 40 }
   0xf   : > { %s1172_s21 = sshll.u32 %s280_s20, 4  ;;  %s1173_s22 = sshll.u32 %s280_s20, 8 }
  0x10   : > { %s1319_s25 = scalar_lea.vmem %s1622_s2, %s1172_s21  ;;  %s1324_s28 = scalar_lea.vmem %s1623_s3, %s1173_s22 }
  0x13   : > { %v344_v0 = vlaneseq  ;;  %v1265_v1 = vmov 1966171168   ;;  %v1207_v5 = vld [vmem:[%s1620_s0 + $0x4] ss:$8 sps:$4 sm:$0xff]   ;;  %v1209_v7 = vld [vmem:[%s1620_s0] ss:$8 sps:$4 sm:$0xff]  }
  0x14   : > { %v342_v2 = vunpack.c.l.s4 %v1265_v1  ;;  %v323_v15 = vld [vmem:[%s1621_s1 + $0x90] sm:$0xff]  ;;  %v324_v19 = vld [vmem:[%s1621_s1 + $0x98] sm:$0xff]  ;;  %v305_v20 = vld [vmem:[%s1621_s1] sm:$0xff]  ;;  %vm576_vm0 = vcmask 130112   ;;  %vm641_vm1 = vcmask 1041409   ;;  %vm643_vm2 = vcmask 1042434  }
  0x15   : > { %v1327_v3 = vshrl.u32 %v344_v0, 7  ;;  %v1329_v4 = vand.u32 127, %v344_v0  ;;  %v306_v21 = vld [vmem:[%s1621_s1 + $0x8] sm:$0xff]  ;;  %v307_v27 = vld [vmem:[%s1621_s1 + $0x10] sm:$0xff]  ;;  %v308_v28 = vld [vmem:[%s1621_s1 + $0x18] sm:$0xff]  ;;  %vm645_vm3 = vcmask 1043459  }
  0x16   : > { %v343_v6 = vunpack.c.0.s8 %v342_v2  ;;  %v321_v30 = vld [vmem:[%s1621_s1 + $0x80] sm:$0xff]  ;;  %v310_v37 = vld [vmem:[%s1621_s1 + $0x28] sm:$0xff]  ;;  %v311_v43 = vld [vmem:[%s1621_s1 + $0x30] sm:$0xff]  ;;  %vm647_vm4 = vcmask 1044484   ;;  %vm649_vm5 = vcmask 1045509   ;;  %vm651_vm6 = vcmask 1046534  }
  0x17   : > { %v571_v8 = vadd.s32 4294967288, %v1329_v4  ;;  %v1343_v12 = vsub.s32 0, %v1327_v3  ;;  %v1346_v13 = vsub.s32 1, %v1327_v3  ;;  %v309_v36 = vld [vmem:[%s1621_s1 + $0x20] sm:$0xff]  ;;  %v322_v38 = vld [vmem:[%s1621_s1 + $0x88] sm:$0xff]  ;;  %v312_v44 = vld [vmem:[%s1621_s1 + $0x38] sm:$0xff] }
  0x18   : > { %v346_v9 = vsub.s32 %v343_v6, %v1327_v3  ;;  %v313_v55 = vld [vmem:[%s1621_s1 + $0x40] sm:$0xff]  ;;  %v314_v56 = vld [vmem:[%s1621_s1 + $0x48] sm:$0xff]  ;;  %v315_v60 = vld [vmem:[%s1621_s1 + $0x50] sm:$0xff]  ;;  %vm653_vm7 = vcmask 1047559   ;;  %vm656_vm8 = vcmask 130048  }
  0x19   : > { %v1340_v10 = vsub.s32 %v571_v8, %v1327_v3  ;;  %v316_v61 = vld [vmem:[%s1621_s1 + $0x58] sm:$0xff]  ;;  %v326_v6 = vld [vmem:[%s1621_s1 + $0xa8] sm:$0xff] }
  0x1a   : > { %v354_v11 = vrot.slane %v1207_v5, %v346_v9  ;;  %v347_v14 = vrot.slane %v1209_v7, %v346_v9  ;;  %v325_v5 = vld [vmem:[%s1621_s1 + $0xa0] sm:$0xff] }
  0x1c   : > { %v1351_v16 = vrot.slane %v354_v11, %v346_v9  ;;  %v363_v17 = vrot.slane %v347_v14, %v346_v9  ;;  %v355_v18 = vcombine.high %v347_v14, %v347_v14  ;;  %v356_v22 = vcombine.high %v354_v11, %v354_v11  ;;  %v327_v14 = vld [vmem:[%s1621_s1 + $0xb0] sm:$0xff] }
  0x1e   : > { %v424_v23 = vrot.slane %v1351_v16, %v1343_v12  ;;  %v428_v24 = vrot.slane %v1351_v16, %v1346_v13  ;;  %v392_v25 = vrot.slane %v363_v17, %v1343_v12  ;;  %v396_v26 = vrot.slane %v363_v17, %v1346_v13 }
  0x1f   : > { %v377_v29 = vrot.slane %v355_v18, %v346_v9  ;;  %v385_v31 = vcombine.high %v363_v17, %v363_v17  ;;  %v384_v48 = vrot.slane %v356_v22, %v346_v9 }
  0x20   : > { %v487_v32 = vmul.f32 %v424_v23, %v323_v15  ;;  %v488_v33 = vmul.f32 %v428_v24, %v324_v19  ;;  %v469_v34 = vmul.f32 %v392_v25, %v305_v20  ;;  %v470_v35 = vmul.f32 %v396_v26, %v306_v21  ;;  %v328_v15 = vld [vmem:[%s1621_s1 + $0xb8] sm:$0xff] }
  0x21   : > { %v471_v39 = vmul.f32 %v392_v25, %v307_v27  ;;  %v472_v40 = vmul.f32 %v396_v26, %v308_v28  ;;  %v400_v41 = vrot.slane %v377_v29, %v1343_v12  ;;  %v404_v42 = vrot.slane %v377_v29, %v1346_v13  ;;  %v319_v25 = vld [vmem:[%s1621_s1 + $0x70] sm:$0xff]  ;;  %v317_v28 = vld [vmem:[%s1621_s1 + $0x60] sm:$0xff] }
  0x22   : > { %v528_v45 = vadd.f32 %v488_v33, %v487_v32  ;;  %v501_v46 = vadd.f32 %v470_v35, %v469_v34  ;;  %v485_v47 = vmul.f32 %v424_v23, %v321_v30  ;;  %v486_v52 = vmul.f32 %v428_v24, %v322_v38  ;;  %v332_v38 = vld [vmem:[%s1621_s1 + $0xd8] sm:$0xff] }
  0x23   : > { %v504_v49 = vadd.f32 %v472_v40, %v471_v39  ;;  %v473_v50 = vmul.f32 %v400_v41, %v309_v36  ;;  %v474_v51 = vmul.f32 %v404_v42, %v310_v37  ;;  %v475_v53 = vmul.f32 %v400_v41, %v311_v43  ;;  %v329_v39 = vld [vmem:[%s1621_s1 + $0xc0] sm:$0xff]  ;;  %v330_v40 = vld [vmem:[%s1621_s1 + $0xc8] sm:$0xff] }
  0x24   : > { %529 = vadd.xlane.f32.xlu1 %v528_v45  ;;  %502 = vadd.xlane.f32.xlu0 %v501_v46  ;;  %v476_v54 = vmul.f32 %v404_v42, %v312_v44  ;;  %v408_v57 = vrot.slane %v385_v31, %v1343_v12  ;;  %v412_v59 = vrot.slane %v385_v31, %v1346_v13 }
  0x25   : > { %v507_v58 = vadd.f32 %v474_v51, %v473_v50  ;;  %v432_v62 = vrot.slane %v384_v48, %v1343_v12  ;;  %v436_v63 = vrot.slane %v384_v48, %v1346_v13  ;;  %v525_v0 = vadd.f32 %v486_v52, %v485_v47  ;;  %v336_v50 = vld [vmem:[%s1621_s1 + $0xf8] sm:$0xff]  ;;  %v333_v51 = vld [vmem:[%s1621_s1 + $0xe0] sm:$0xff] }
  0x26   : > { %v477_v1 = vmul.f32 %v408_v57, %v313_v55  ;;  %v478_v2 = vmul.f32 %v412_v59, %v314_v56  ;;  %v387_v7 = vcombine.high %v377_v29, %v377_v29  ;;  %v510_v8 = vadd.f32 %v476_v54, %v475_v53  ;;  %v318_v29 = vld [vmem:[%s1621_s1 + $0x68] sm:$0xff] }
  0x27   : > { %v479_v9 = vmul.f32 %v408_v57, %v315_v60  ;;  %v480_v11 = vmul.f32 %v412_v59, %v316_v61  ;;  %v489_v17 = vmul.f32 %v432_v62, %v325_v5  ;;  %v490_v18 = vmul.f32 %v436_v63, %v326_v6 }
  0x28   : > { %505 = vadd.xlane.f32.xlu0 %v504_v49  ;;  %508 = vadd.xlane.f32.xlu1 %v507_v58  ;;  %v386_v19 = vcombine.high %v1351_v16, %v1351_v16  ;;  %v513_v20 = vadd.f32 %v478_v2, %v477_v1  ;;  %v491_v21 = vmul.f32 %v432_v62, %v327_v14  ;;  %v320_v16 = vld [vmem:[%s1621_s1 + $0x78] sm:$0xff] }
  0x29   : > { %v492_v22 = vmul.f32 %v436_v63, %v328_v15  ;;  %v416_v23 = vrot.slane %v387_v7, %v1343_v12  ;;  %v516_v24 = vadd.f32 %v480_v11, %v479_v9  ;;  %v420_v26 = vrot.slane %v387_v7, %v1346_v13 }
  0x2a   : > { %v1431_v27 = vsub.s32 %v1329_v4, %v1327_v3  ;;  %v531_v30 = vadd.f32 %v490_v18, %v489_v17  ;;  %v440_v31 = vrot.slane %v386_v19, %v1343_v12  ;;  %v331_v3 = vld [vmem:[%s1621_s1 + $0xd0] sm:$0xff]  ;;  %v444_v4 = vrot.slane %v386_v19, %v1346_v13 }
  0x2b   : > { %v534_v32 = vadd.f32 %v492_v22, %v491_v21  ;;  %v483_v33 = vmul.f32 %v416_v23, %v319_v25  ;;  %v388_v34 = vcombine.high %v384_v48, %v384_v48  ;;  %v484_v35 = vmul.f32 %v420_v26, %v320_v16  ;;  %v335_v48 = vld [vmem:[%s1621_s1 + $0xf0] sm:$0xff] }
  0x2c   : > { %526 = vadd.xlane.f32.xlu0 %v525_v0  ;;  %511 = vadd.xlane.f32.xlu1 %v510_v8  ;;  %v481_v36 = vmul.f32 %v416_v23, %v317_v28  ;;  %v482_v37 = vmul.f32 %v420_v26, %v318_v29  ;;  %v495_v41 = vmul.f32 %v440_v31, %v331_v3 }
  0x2d   : > { %v496_v42 = vmul.f32 %v444_v4, %v332_v38  ;;  %v493_v43 = vmul.f32 %v440_v31, %v329_v39  ;;  %v494_v44 = vmul.f32 %v444_v4, %v330_v40  ;;  %v448_v45 = vrot.slane %v388_v34, %v1343_v12  ;;  %v334_v12 = vld [vmem:[%s1621_s1 + $0xe8] sm:$0xff] }
  0x2e   : > { %v522_v46 = vadd.f32 %v484_v35, %v483_v33  ;;  %v519_v47 = vadd.f32 %v482_v37, %v481_v36  ;;  %v452_v49 = vrot.slane %v388_v34, %v1346_v13 }
  0x2f   : > { %v540_v52 = vadd.f32 %v496_v42, %v495_v41  ;;  %v537_v53 = vadd.f32 %v494_v44, %v493_v43  ;;  %v499_v54 = vmul.f32 %v448_v45, %v335_v48  ;;  %v497_v56 = vmul.f32 %v448_v45, %v333_v51 }
  0x30   : > { %514 = vadd.xlane.f32.xlu0 %v513_v20  ;;  %517 = vadd.xlane.f32.xlu1 %v516_v24  ;;  %v500_v55 = vmul.f32 %v452_v49, %v336_v50  ;;  %v498_v13 = vmul.f32 %v452_v49, %v334_v12 }
  0x32   : > { %v546_v57 = vadd.f32 %v500_v55, %v499_v54  ;;  %v543_v58 = vadd.f32 %v498_v13, %v497_v56 }
  0x34   : > { %532 = vadd.xlane.f32.xlu0 %v531_v30  ;;  %535 = vadd.xlane.f32.xlu1 %v534_v32 }
  0x38   : > { %523 = vadd.xlane.f32.xlu1 %v522_v46  ;;  %520 = vadd.xlane.f32.xlu0 %v519_v47 }
  0x3c   : > { %541 = vadd.xlane.f32.xlu1 %v540_v52  ;;  %538 = vadd.xlane.f32.xlu0 %v537_v53 }
  0x40   : > { %547 = vadd.xlane.f32.xlu1 %v546_v57  ;;  %544 = vadd.xlane.f32.xlu0 %v543_v58 }
  0xad   : > { %v530_v59 = vpop.xlane.xlu1 %529  ;;  %v503_v60 = vpop.xlane.xlu0 %502 }
  0xae   : > { %v570_v63 = vrot.slane %v503_v60, %v1431_v27  ;;  %v612_v6 = vrot.slane %v530_v59, %v1340_v10 }
  0xb1   : > { %v506_v61 = vpop.xlane.xlu0 %505  ;;  %v509_v62 = vpop.xlane.xlu1 %508 }
  0xb2   : > { %v575_v0 = vrot.slane %v506_v61, %v1340_v10  ;;  %v581_v7 = vrot.slane %v509_v62, %v1431_v27 }
  0xb4   : > { %v577_v1 = vsel %vm576_vm0, %v575_v0, %v570_v63 }
  0xb5   : > { %v527_v2 = vpop.xlane.xlu0 %526  ;;  %v512_v5 = vpop.xlane.xlu1 %511 }
  0xb6   : > { %v608_v8 = vrot.slane %v527_v2, %v1431_v27  ;;  %v585_v9 = vrot.slane %v512_v5, %v1340_v10 }
  0xb8   : > { %v613_v11 = vsel %vm576_vm0, %v612_v6, %v608_v8  ;;  %v586_v14 = vsel %vm576_vm0, %v585_v9, %v581_v7 }
  0xb9   : > { %v642_v15 = vsel %vm641_vm1, %v586_v14, %v577_v1  ;;  %v515_v17 = vpop.xlane.xlu0 %514  ;;  %v518_v18 = vpop.xlane.xlu1 %517 }
  0xba   : > { %v590_v19 = vrot.slane %v515_v17, %v1431_v27  ;;  %v594_v20 = vrot.slane %v518_v18, %v1340_v10 }
  0xbc   : > { %v595_v21 = vsel %vm576_vm0, %v594_v20, %v590_v19 }
  0xbd   : > { %v644_v22 = vsel %vm643_vm2, %v595_v21, %v642_v15  ;;  %v533_v23 = vpop.xlane.xlu0 %532  ;;  %v536_v24 = vpop.xlane.xlu1 %535 }
  0xbe   : > { %v617_v25 = vrot.slane %v533_v23, %v1431_v27  ;;  %v621_v26 = vrot.slane %v536_v24, %v1340_v10 }
  0xc0   : > { %v622_v16 = vsel %vm576_vm0, %v621_v26, %v617_v25 }
  0xc1   : > { %v524_v28 = vpop.xlane.xlu1 %523  ;;  %v521_v29 = vpop.xlane.xlu0 %520 }
  0xc2   : > { %v603_v30 = vrot.slane %v524_v28, %v1340_v10  ;;  %v599_v31 = vrot.slane %v521_v29, %v1431_v27 }
  0xc4   : > { %v604_v32 = vsel %vm576_vm0, %v603_v30, %v599_v31 }
  0xc5   : > { %v646_v33 = vsel %vm645_vm3, %v604_v32, %v644_v22  ;;  %v542_v3 = vpop.xlane.xlu1 %541  ;;  %v539_v4 = vpop.xlane.xlu0 %538 }
  0xc6   : > { %v648_v34 = vsel %vm647_vm4, %v613_v11, %v646_v33  ;;  %v630_v35 = vrot.slane %v542_v3, %v1340_v10  ;;  %v626_v36 = vrot.slane %v539_v4, %v1431_v27 }
  0xc7   : > { %v650_v37 = vsel %vm649_vm5, %v622_v16, %v648_v34 }
  0xc8   : > { %v631_v38 = vsel %vm576_vm0, %v630_v35, %v626_v36 }
  0xc9   : > { %v652_v39 = vsel %vm651_vm6, %v631_v38, %v650_v37  ;;  %v548_v40 = vpop.xlane.xlu1 %547  ;;  %v545_v41 = vpop.xlane.xlu0 %544 }
  0xca   : > { %v639_v42 = vrot.slane %v548_v40, %v1340_v10  ;;  %v635_v43 = vrot.slane %v545_v41, %v1431_v27 }
  0xcc   : > { %v640_v44 = vsel %vm576_vm0, %v639_v42, %v635_v43 }
  0xcd   : > { %v654_v45 = vsel %vm653_vm7, %v640_v44, %v652_v39 }
  0xce   : > { %657 = vst.msk [vmem:[#allocation2] sm:$0xff] %vm656_vm8, %v654_v45 }
  0xcf PF: > { %v700_v46 = vlaneseq  ;;  %v1266_v47 = vmov 1966171168   ;;  %v1210_v10 = vld [vmem:[%s1319_s25 + $0x4] ss:$8 sps:$4 sm:$0xff]   ;;  %v1212_v51 = vld [vmem:[%s1319_s25] ss:$8 sps:$4 sm:$0xff]  }
  0xd0   : > { %v698_v48 = vunpack.c.l.s4 %v1266_v47  ;;  %v678_v57 = vld [vmem:[%s1324_s28 + $0x90] sm:$0xff]  ;;  %v679_v61 = vld [vmem:[%s1324_s28 + $0x98] sm:$0xff]  ;;  %v660_v62 = vld [vmem:[%s1324_s28] sm:$0xff]  ;;  %vm948_vm9 = vcmask 130112   ;;  %vm1013_vm10 = vcmask 1041409   ;;  %vm1015_vm11 = vcmask 1042434  }
  0xd1   : > { %v1494_v49 = vshrl.u32 %v700_v46, 7  ;;  %v1496_v50 = vand.u32 127, %v700_v46  ;;  %v661_v63 = vld [vmem:[%s1324_s28 + $0x8] sm:$0xff]  ;;  %v662_v7 = vld [vmem:[%s1324_s28 + $0x10] sm:$0xff]  ;;  %v663_v8 = vld [vmem:[%s1324_s28 + $0x18] sm:$0xff]  ;;  %vm1017_vm12 = vcmask 1043459  }
  0xd2   : > { %v699_v27 = vunpack.c.0.s8 %v698_v48  ;;  %v664_v9 = vld [vmem:[%s1324_s28 + $0x20] sm:$0xff]  ;;  %v665_v21 = vld [vmem:[%s1324_s28 + $0x28] sm:$0xff]  ;;  %v666_v23 = vld [vmem:[%s1324_s28 + $0x30] sm:$0xff]  ;;  %vm1019_vm13 = vcmask 1044484   ;;  %vm1021_vm14 = vcmask 1045509   ;;  %vm1023_vm15 = vcmask 1046534  }
  0xd3   : > { %v943_v12 = vadd.s32 4294967288, %v1496_v50  ;;  %v1506_v55 = vsub.s32 0, %v1494_v49  ;;  %v1509_v56 = vsub.s32 1, %v1494_v49  ;;  %v676_v14 = vld [vmem:[%s1324_s28 + $0x80] sm:$0xff]  ;;  %v677_v22 = vld [vmem:[%s1324_s28 + $0x88] sm:$0xff]  ;;  %v667_v28 = vld [vmem:[%s1324_s28 + $0x38] sm:$0xff] }
  0xd4   : > { %v702_v52 = vsub.s32 %v699_v27, %v1494_v49  ;;  %v668_v37 = vld [vmem:[%s1324_s28 + $0x40] sm:$0xff]  ;;  %v669_v40 = vld [vmem:[%s1324_s28 + $0x48] sm:$0xff]  ;;  %v670_v42 = vld [vmem:[%s1324_s28 + $0x50] sm:$0xff]  ;;  %vm1025_vm0 = vcmask 1047559   ;;  %vm1029_vm1 = vcmask 130048   ;;  %p1167_p6 = scmp.ne.s32.totalorder %s1255_s15, 1 }
  0xd5   : > { %v1503_v53 = vsub.s32 %v943_v12, %v1494_v49  ;;  %v671_v43 = vld [vmem:[%s1324_s28 + $0x58] sm:$0xff]  ;;  %v681_v27 = vld [vmem:[%s1324_s28 + $0xa8] sm:$0xff] }
  0xd6   : > { %v710_v54 = vrot.slane %v1210_v10, %v702_v52  ;;  %v703_v13 = vrot.slane %v1212_v51, %v702_v52  ;;  %v680_v10 = vld [vmem:[%s1324_s28 + $0xa0] sm:$0xff] }
  0xd8   : > { %v1512_v58 = vrot.slane %v710_v54, %v702_v52  ;;  %v719_v59 = vrot.slane %v703_v13, %v702_v52  ;;  %v711_v60 = vcombine.high %v703_v13, %v703_v13  ;;  %v712_v0 = vcombine.high %v710_v54, %v710_v54  ;;  %v682_v13 = vld [vmem:[%s1324_s28 + $0xb0] sm:$0xff] }
  0xda   : > { %v780_v1 = vrot.slane %v1512_v58, %v1506_v55  ;;  %v784_v2 = vrot.slane %v1512_v58, %v1509_v56  ;;  %v748_v5 = vrot.slane %v719_v59, %v1506_v55  ;;  %v752_v6 = vrot.slane %v719_v59, %v1509_v56 }
  0xdb   : > { %v733_v11 = vrot.slane %v711_v60, %v702_v52  ;;  %v741_v15 = vcombine.high %v719_v59, %v719_v59  ;;  %v740_v32 = vrot.slane %v712_v0, %v702_v52 }
  0xdc   : > { %v843_v17 = vmul.f32 %v780_v1, %v678_v57  ;;  %v844_v18 = vmul.f32 %v784_v2, %v679_v61  ;;  %v825_v19 = vmul.f32 %v748_v5, %v660_v62  ;;  %v826_v20 = vmul.f32 %v752_v6, %v661_v63  ;;  %v683_v57 = vld [vmem:[%s1324_s28 + $0xb8] sm:$0xff] }
  0xdd   : > { %v827_v24 = vmul.f32 %v748_v5, %v662_v7  ;;  %v828_v25 = vmul.f32 %v752_v6, %v663_v8  ;;  %v756_v26 = vrot.slane %v733_v11, %v1506_v55  ;;  %v760_v16 = vrot.slane %v733_v11, %v1509_v56  ;;  %v674_v5 = vld [vmem:[%s1324_s28 + $0x70] sm:$0xff]  ;;  %v675_v7 = vld [vmem:[%s1324_s28 + $0x78] sm:$0xff]  ;;  %v672_v8 = vld [vmem:[%s1324_s28 + $0x60] sm:$0xff] }
  0xde   : > { %v884_v29 = vadd.f32 %v844_v18, %v843_v17  ;;  %v857_v30 = vadd.f32 %v826_v20, %v825_v19  ;;  %v841_v31 = vmul.f32 %v780_v1, %v676_v14  ;;  %v842_v4 = vmul.f32 %v784_v2, %v677_v22  ;;  %v686_v18 = vld [vmem:[%s1324_s28 + $0xd0] sm:$0xff] }
  0xdf   : > { %v829_v33 = vmul.f32 %v756_v26, %v664_v9  ;;  %v830_v3 = vmul.f32 %v760_v16, %v665_v21  ;;  %v831_v34 = vmul.f32 %v756_v26, %v666_v23  ;;  %v860_v35 = vadd.f32 %v828_v25, %v827_v24  ;;  %v673_v9 = vld [vmem:[%s1324_s28 + $0x68] sm:$0xff]  ;;  %v687_v24 = vld [vmem:[%s1324_s28 + $0xd8] sm:$0xff]  ;;  %v684_v25 = vld [vmem:[%s1324_s28 + $0xc0] sm:$0xff] }
  0xe0   : > { %885 = vadd.xlane.f32.xlu1 %v884_v29  ;;  %858 = vadd.xlane.f32.xlu0 %v857_v30  ;;  %v832_v36 = vmul.f32 %v760_v16, %v667_v28  ;;  %v764_v38 = vrot.slane %v741_v15, %v1506_v55  ;;  %v768_v41 = vrot.slane %v741_v15, %v1509_v56  ;;  %v685_v26 = vld [vmem:[%s1324_s28 + $0xc8] sm:$0xff] }
  0xe1   : > { %v863_v39 = vadd.f32 %v830_v3, %v829_v33  ;;  %v788_v44 = vrot.slane %v740_v32, %v1506_v55  ;;  %v792_v45 = vrot.slane %v740_v32, %v1509_v56  ;;  %v881_v46 = vadd.f32 %v842_v4, %v841_v31  ;;  %v691_v3 = vld [vmem:[%s1324_s28 + $0xf8] sm:$0xff]  ;;  %v688_v4 = vld [vmem:[%s1324_s28 + $0xe0] sm:$0xff] }
  0xe2   : > { %v866_v47 = vadd.f32 %v832_v36, %v831_v34  ;;  %v833_v48 = vmul.f32 %v764_v38, %v668_v37  ;;  %v743_v51 = vcombine.high %v733_v11, %v733_v11  ;;  %v834_v12 = vmul.f32 %v768_v41, %v669_v40  ;;  %v689_v34 = vld [vmem:[%s1324_s28 + $0xe8] sm:$0xff] }
  0xe3   : > { %v835_v52 = vmul.f32 %v764_v38, %v670_v42  ;;  %v836_v54 = vmul.f32 %v768_v41, %v671_v43  ;;  %v845_v59 = vmul.f32 %v788_v44, %v680_v10  ;;  %v846_v60 = vmul.f32 %v792_v45, %v681_v27 }
  0xe4   : > { %861 = vadd.xlane.f32.xlu0 %v860_v35  ;;  %864 = vadd.xlane.f32.xlu1 %v863_v39  ;;  %v742_v61 = vcombine.high %v1512_v58, %v1512_v58  ;;  %v847_v62 = vmul.f32 %v788_v44, %v682_v13  ;;  %v848_v63 = vmul.f32 %v792_v45, %v683_v57 }
  0xe5   : > { %v772_v0 = vrot.slane %v743_v51, %v1506_v55  ;;  %v869_v1 = vadd.f32 %v834_v12, %v833_v48  ;;  %v872_v2 = vadd.f32 %v836_v54, %v835_v52  ;;  %v776_v6 = vrot.slane %v743_v51, %v1509_v56 }
  0xe6   : > { %v887_v11 = vadd.f32 %v846_v60, %v845_v59  ;;  %v796_v58 = vrot.slane %v742_v61, %v1506_v55  ;;  %v1556_v14 = vsub.s32 %v1496_v50, %v1494_v49  ;;  %v890_v15 = vadd.f32 %v848_v63, %v847_v62 }
  0xe7   : > { %v839_v17 = vmul.f32 %v772_v0, %v674_v5  ;;  %v800_v19 = vrot.slane %v742_v61, %v1509_v56  ;;  %v744_v20 = vcombine.high %v740_v32, %v740_v32  ;;  %v840_v21 = vmul.f32 %v776_v6, %v675_v7  ;;  %v690_v32 = vld [vmem:[%s1324_s28 + $0xf0] sm:$0xff] }
  0xe8   : > { %882 = vadd.xlane.f32.xlu0 %v881_v46  ;;  %867 = vadd.xlane.f32.xlu1 %v866_v47  ;;  %v837_v22 = vmul.f32 %v772_v0, %v672_v8  ;;  %v838_v23 = vmul.f32 %v776_v6, %v673_v9  ;;  %v851_v49 = vmul.f32 %v796_v58, %v686_v18 }
  0xe9   : > { %v852_v50 = vmul.f32 %v800_v19, %v687_v24  ;;  %v849_v16 = vmul.f32 %v796_v58, %v684_v25  ;;  %v850_v28 = vmul.f32 %v800_v19, %v685_v26  ;;  %v804_v29 = vrot.slane %v744_v20, %v1506_v55 }
  0xea   : > { %v878_v30 = vadd.f32 %v840_v21, %v839_v17  ;;  %v875_v31 = vadd.f32 %v838_v23, %v837_v22  ;;  %v808_v33 = vrot.slane %v744_v20, %v1509_v56 }
  0xeb   : > { %v896_v35 = vadd.f32 %v852_v50, %v851_v49  ;;  %v893_v36 = vadd.f32 %v850_v28, %v849_v16  ;;  %v855_v37 = vmul.f32 %v804_v29, %v690_v32  ;;  %v853_v39 = vmul.f32 %v804_v29, %v688_v4 }
  0xec   : > { %870 = vadd.xlane.f32.xlu0 %v869_v1  ;;  %873 = vadd.xlane.f32.xlu1 %v872_v2  ;;  %v856_v38 = vmul.f32 %v808_v33, %v691_v3  ;;  %v854_v40 = vmul.f32 %v808_v33, %v689_v34 }
  0xee   : > { %v902_v55 = vadd.f32 %v856_v38, %v855_v37  ;;  %v899_v41 = vadd.f32 %v854_v40, %v853_v39 }
  0xf0   : > { %888 = vadd.xlane.f32.xlu0 %v887_v11  ;;  %891 = vadd.xlane.f32.xlu1 %v890_v15 }
  0xf4   : > { %879 = vadd.xlane.f32.xlu1 %v878_v30  ;;  %876 = vadd.xlane.f32.xlu0 %v875_v31 }
  0xf8   : > { %897 = vadd.xlane.f32.xlu1 %v896_v35  ;;  %894 = vadd.xlane.f32.xlu0 %v893_v36 }
  0xfc   : > { %903 = vadd.xlane.f32.xlu1 %v902_v55  ;;  %900 = vadd.xlane.f32.xlu0 %v899_v41  ;;  %v692_v41 = vld [vmem:[#allocation2] sm:$0xff] }
 0x169   : > { %v886_v42 = vpop.xlane.xlu1 %885  ;;  %v859_v43 = vpop.xlane.xlu0 %858 }
 0x16a   : > { %v905_v56 = vmul.f32 0.25, %v859_v43  ;;  %v914_v47 = vmul.f32 0.25, %v886_v42 }
 0x16c   : > { %v942_v48 = vrot.slane %v905_v56, %v1556_v14  ;;  %v984_v57 = vrot.slane %v914_v47, %v1503_v53 }
 0x16d   : > { %v862_v44 = vpop.xlane.xlu0 %861  ;;  %v865_v45 = vpop.xlane.xlu1 %864 }
 0x16e   : > { %v906_v46 = vmul.f32 0.25, %v862_v44  ;;  %v907_v27 = vmul.f32 0.25, %v865_v45 }
 0x170   : > { %v947_v10 = vrot.slane %v906_v46, %v1503_v53  ;;  %v953_v59 = vrot.slane %v907_v27, %v1556_v14 }
 0x171   : > { %v883_v51 = vpop.xlane.xlu0 %882  ;;  %v868_v12 = vpop.xlane.xlu1 %867 }
 0x172   : > { %v949_v52 = vsel %vm948_vm9, %v947_v10, %v942_v48  ;;  %v913_v54 = vmul.f32 0.25, %v883_v51  ;;  %v908_v13 = vmul.f32 0.25, %v868_v12 }
 0x174   : > { %v980_v60 = vrot.slane %v913_v54, %v1556_v14  ;;  %v957_v61 = vrot.slane %v908_v13, %v1503_v53 }
 0x175   : > { %v871_v62 = vpop.xlane.xlu0 %870  ;;  %v874_v63 = vpop.xlane.xlu1 %873 }
 0x176   : > { %v985_v0 = vsel %vm948_vm9, %v984_v57, %v980_v60  ;;  %v958_v1 = vsel %vm948_vm9, %v957_v61, %v953_v59  ;;  %v909_v2 = vmul.f32 0.25, %v871_v62  ;;  %v910_v5 = vmul.f32 0.25, %v874_v63 }
 0x177   : > { %v1014_v6 = vsel %vm1013_vm10, %v958_v1, %v949_v52 }
 0x178   : > { %v962_v7 = vrot.slane %v909_v2, %v1556_v14  ;;  %v966_v8 = vrot.slane %v910_v5, %v1503_v53 }
 0x179   : > { %v889_v9 = vpop.xlane.xlu0 %888  ;;  %v892_v11 = vpop.xlane.xlu1 %891 }
 0x17a   : > { %v967_v58 = vsel %vm948_vm9, %v966_v8, %v962_v7  ;;  %v915_v15 = vmul.f32 0.25, %v889_v9  ;;  %v916_v17 = vmul.f32 0.25, %v892_v11 }
 0x17b   : > { %v1016_v18 = vsel %vm1015_vm11, %v967_v58, %v1014_v6 }
 0x17c   : > { %v989_v19 = vrot.slane %v915_v15, %v1556_v14  ;;  %v993_v20 = vrot.slane %v916_v17, %v1503_v53 }
 0x17d   : > { %v880_v21 = vpop.xlane.xlu1 %879  ;;  %v877_v22 = vpop.xlane.xlu0 %876 }
 0x17e   : > { %v994_v23 = vsel %vm948_vm9, %v993_v20, %v989_v19  ;;  %v912_v24 = vmul.f32 0.25, %v880_v21  ;;  %v911_v25 = vmul.f32 0.25, %v877_v22 }
 0x180   : > { %v975_v26 = vrot.slane %v912_v24, %v1503_v53  ;;  %v971_v49 = vrot.slane %v911_v25, %v1556_v14 }
 0x181   : > { %v898_v50 = vpop.xlane.xlu1 %897  ;;  %v895_v16 = vpop.xlane.xlu0 %894 }
 0x182   : > { %v976_v28 = vsel %vm948_vm9, %v975_v26, %v971_v49  ;;  %v918_v29 = vmul.f32 0.25, %v898_v50  ;;  %v917_v30 = vmul.f32 0.25, %v895_v16 }
 0x183   : > { %v1018_v31 = vsel %vm1017_vm12, %v976_v28, %v1016_v18 }
 0x184   : > { %v1020_v32 = vsel %vm1019_vm13, %v985_v0, %v1018_v31  ;;  %v1002_v33 = vrot.slane %v918_v29, %v1503_v53  ;;  %v998_v3 = vrot.slane %v917_v30, %v1556_v14 }
 0x185   : > { %v1022_v4 = vsel %vm1021_vm14, %v994_v23, %v1020_v32  ;;  %v904_v34 = vpop.xlane.xlu1 %903  ;;  %v901_v35 = vpop.xlane.xlu0 %900 }
 0x186   : > { %v1003_v36 = vsel %vm948_vm9, %v1002_v33, %v998_v3  ;;  %v920_v37 = vmul.f32 0.25, %v904_v34  ;;  %v919_v38 = vmul.f32 0.25, %v901_v35 }
 0x187   : > { %v1024_v39 = vsel %vm1023_vm15, %v1003_v36, %v1022_v4 }
 0x188   : > { %v1011_v40 = vrot.slane %v920_v37, %v1503_v53  ;;  %v1007_v55 = vrot.slane %v919_v38, %v1556_v14 }
 0x18a   : > { %v1012_v42 = vsel %vm948_vm9, %v1011_v40, %v1007_v55  ;;  %1034 = sbr.rel (%p1167_p6) target bundleno = 407 (0x197), region = 44 }
 0x18b   : > { %v1026_v43 = vsel %vm1025_vm0, %v1012_v42, %v1024_v39 }
 0x18c   : > { %v1028_v56 = vadd.f32 %v1026_v43, %v692_v41 }
 0x18e   : > { %1030 = vst.msk [vmem:[#allocation2] sm:$0xff] %vm1029_vm1, %v1028_v56 }
 0x195   : > { %v1035_v44 = vld [vmem:[#allocation2] sm:$0xff] }
 0x196   : > { %1036 = vst.msk [vmem:[#allocation3] sm:$0xff] %vm1029_vm1, %v1035_v44 }
 0x197 PF: > { %p1596_p7 = scmp.eq.s32.totalorder %s1156_s18, 1  ;;  %s1267_s28 = smov [#allocation3]  }
 0x198   : > { %s1046_s14 = sshll.u32 %s1267_s28, 4  ;;  %s1047_s14 = int_to_ptr.vmem [resolvable:$true] %s1046_s14 }
 0x199   : > { %s1213_s20 = scalar_lea.vmem %s1047_s14, 128  ;;  %p1220_p11 = scmp.lt.s32.totalorder %s1047_s14, %s1047_s14 }
 0x19a   : > { %p1214_p8 = scmp.ne.s32.totalorder %s1047_s14, %s1213_s20  ;;  %p1221_p12 = scmp.lt.s32.totalorder %s1213_s20, %s1213_s20 }
 0x19c   : > { %p1215_p9 = pnand %p1214_p8, %p1596_p7  ;;  %p1222_p13 = por %p1221_p12, %p1220_p11 }
 0x19e   : > { %p1216_p10 = pneg %p1215_p9 }
 0x1a0   : > { %p1223_p0 = pnand %p1222_p13, %p1216_p10 }
 0x1a2   : > { %1226 = shalt.err (!%p1223_p0)
}
 0x1a3   : > { %1175 = dma.vmem_to_hbm [thread:$0]  (%p1596_p7), %s1047_s14, 128, %s1624_s4, [#allocation4]  }
 0x1a4   : > { %1250 = dma.done.wait (%p1596_p7), [#allocation4], 128  }
 0x1a5   : > { %1252 = vsyncadd (%p1596_p7), [#allocation4], 4294967168 }
 0x1a6 PF: > { %s15_s17 = sadd.s32 1, %s1263_s17   ;;  %s1626_s15 = smov %s1259_s16 }
 0x1a7   : > { %p12_p1 = scmp.ge.s32.totalorder %s15_s17, 4   ;;  %s1627_s16 = smov %s1629_s19 }
 0x1a9   :  { %14 = sbr.rel (!%p12_p1) target bundleno = 2 (0x2), region = 81 }
 0x1ae   :  { %1059 = vsyncpa [#allocation4], 1 }
 0x1af   :  { %1061 = vsyncpa [#allocation4 + $0x1], 1 }

// kernel: mbgcn_forward.13
= control target key start
LH: loop header
LB: loop body
LE: loop exit
PB: predicated region body
PF: predicated region fallthrough
CT: control target
= control target key end

     0   :  { %6 = vsyncpa [#allocation3], 0  ;;  %s300_s6 = smov 0   ;;  %s348_s0 = inlined_call_operand.vmem [shape: f32[128,256], index: 0, kind: input, shape index: {}]   ;;  %s349_s1 = inlined_call_operand.hbm [shape: f32[1,1], index: 1, kind: output, shape index: {}]  }
   0x1 LB: > { %s306_s7 = sadd.s32 4294967295, %s286_s6   ;;  %p224_p0 = scmp.ge.s32.totalorder %s286_s6, 1  ;;  %s286_s6 = sphi %s300_s6, %s12_s6  }
   0x2   : > { %p85_p1 = scmp.lt.s32.totalorder %s286_s6, 3 }
   0x4   : > { %p86_p2 = pnand %p224_p0, %p85_p1 }
   0x5   : > { %s225_s8 = sshll.u32 (!%p86_p2), %s306_s7, 3  ;;  %p228_p4 = scmp.ne.s32.totalorder (!%p86_p2), %s306_s7, 0 }
   0x6   : > { %89 = sbr.rel (%p86_p2) target bundleno = 259 (0x103), region = 24  ;;  %p102_p3 = scmp.lt.s32.totalorder (!%p86_p2), %s225_s8, 15 }
   0xb   : > { %s351_s8 = smov (!%p102_p3, %s225_s8), 15  ;;  %111 = sbr.rel (%p228_p4) target bundleno = 18 (0x12), region = 28 }
   0xc   : > { %s233_s9 = sshll.u32 %s351_s8, 4 }
   0xd   : > { %s314_s12 = scalar_lea.vmem %s348_s0, %s233_s9 }
  0x10   : > { %vm112_vm0 = vcmask 0   ;;  %v288_v0 = vmov 0.0  }
  0x11   : > { %113 = vst.msk [vmem:[#allocation2] sm:$0x1] %vm112_vm0, %v288_v0 }
  0x12 PF: > { %v114_v1 = vld [vmem:[%s314_s12] sm:$0xff]  ;;  %v115_v2 = vld [vmem:[%s314_s12 + $0x8] sm:$0xff]  ;;  %v116_v3 = vld [vmem:[%s314_s12 + $0x10] sm:$0xff]  ;;  %s289_s13 = smov [#allocation2]   ;;  %vm173_vm1 = vcmask 0   ;;  %p240_p5 = scmp.eq.s32.totalorder %s306_s7, 1 }
  0x13   : > { %v117_v4 = vld [vmem:[%s314_s12 + $0x18] sm:$0xff]  ;;  %v131_v5 = vmul.f32 %v114_v1, %v114_v1  ;;  %v132_v6 = vmul.f32 %v115_v2, %v115_v2  ;;  %v133_v7 = vmul.f32 %v116_v3, %v116_v3  ;;  %v118_v8 = vld [vmem:[%s314_s12 + $0x20] sm:$0xff]  ;;  %v119_v11 = vld [vmem:[%s314_s12 + $0x28] sm:$0xff]  ;;  %s182_s14 = sshll.u32 %s289_s13, 4  ;;  %s183_s14 = int_to_ptr.vmem [resolvable:$true] %s182_s14 }
  0x14   : > { %v134_v9 = vmul.f32 %v117_v4, %v117_v4  ;;  %v135_v12 = vmul.f32 %v118_v8, %v118_v8  ;;  %v120_v14 = vld [vmem:[%s314_s12 + $0x30] sm:$0xff]  ;;  %v136_v15 = vmul.f32 %v119_v11, %v119_v11  ;;  %v121_v17 = vld [vmem:[%s314_s12 + $0x38] sm:$0xff]  ;;  %v122_v20 = vld [vmem:[%s314_s12 + $0x40] sm:$0xff]  ;;  %s252_s16 = scalar_lea.vmem %s183_s14, 16  ;;  %s258_s17 = scalar_lea.vmem %s183_s14, 32 }
  0x15   : > { %v147_v10 = vadd.f32 %v132_v6, %v131_v5  ;;  %v137_v18 = vmul.f32 %v120_v14, %v120_v14  ;;  %v138_v21 = vmul.f32 %v121_v17, %v121_v17  ;;  %v123_v23 = vld [vmem:[%s314_s12 + $0x48] sm:$0xff]  ;;  %v139_v24 = vmul.f32 %v122_v20, %v122_v20  ;;  %v124_v26 = vld [vmem:[%s314_s12 + $0x50] sm:$0xff]  ;;  %v125_v29 = vld [vmem:[%s314_s12 + $0x58] sm:$0xff]  ;;  %p253_p6 = scmp.ne.s32.totalorder %s183_s14, %s252_s16  ;;  %p259_p9 = scmp.lt.s32.totalorder %s183_s14, %s183_s14 }
  0x16   : > { %v140_v27 = vmul.f32 %v123_v23, %v123_v23  ;;  %v141_v30 = vmul.f32 %v124_v26, %v124_v26  ;;  %v126_v32 = vld [vmem:[%s314_s12 + $0x60] sm:$0xff]  ;;  %v142_v33 = vmul.f32 %v125_v29, %v125_v29  ;;  %v127_v35 = vld [vmem:[%s314_s12 + $0x68] sm:$0xff]  ;;  %v128_v38 = vld [vmem:[%s314_s12 + $0x70] sm:$0xff]  ;;  %p260_p10 = scmp.lt.s32.totalorder %s258_s17, %s252_s16 }
  0x17   : > { %v148_v13 = vadd.f32 %v147_v10, %v133_v7  ;;  %v143_v36 = vmul.f32 %v126_v32, %v126_v32  ;;  %v144_v39 = vmul.f32 %v127_v35, %v127_v35  ;;  %v129_v41 = vld [vmem:[%s314_s12 + $0x78] sm:$0xff]  ;;  %v145_v42 = vmul.f32 %v128_v38, %v128_v38  ;;  %p254_p7 = pnand %p253_p6, %p240_p5 }
  0x18   : > { %v146_v44 = vmul.f32 %v129_v41, %v129_v41  ;;  %v130_v55 = vld [vmem:[#allocation2] sm:$0x1]  ;;  %p261_p11 = por %p260_p10, %p259_p9 }
  0x19   : > { %v149_v16 = vadd.f32 %v148_v13, %v134_v9  ;;  %p255_p8 = pneg %p254_p7 }
  0x1b   : > { %v150_v19 = vadd.f32 %v149_v16, %v135_v12  ;;  %p262_p12 = pnand %p261_p11, %p255_p8 }
  0x1d   : > { %v151_v22 = vadd.f32 %v150_v19, %v136_v15 }
  0x1f   : > { %v152_v25 = vadd.f32 %v151_v22, %v137_v18 }
  0x21   : > { %v153_v28 = vadd.f32 %v152_v25, %v138_v21 }
  0x23   : > { %v154_v31 = vadd.f32 %v153_v28, %v139_v24 }
  0x25   : > { %v155_v34 = vadd.f32 %v154_v31, %v140_v27 }
  0x27   : > { %v156_v37 = vadd.f32 %v155_v34, %v141_v30 }
  0x29   : > { %v157_v40 = vadd.f32 %v156_v37, %v142_v33 }
  0x2b   : > { %v158_v43 = vadd.f32 %v157_v40, %v143_v36 }
  0x2d   : > { %v159_v45 = vadd.f32 %v158_v43, %v144_v39 }
  0x2f   : > { %v160_v46 = vadd.f32 %v159_v45, %v145_v42 }
  0x31   : > { %v161_v47 = vadd.f32 %v160_v46, %v146_v44 }
  0x33   : > { %162 = vadd.xlane.f32.xlu0 %v161_v47 }
  0xbc   : > { %v163_v48 = vpop.xlane.xlu0 %162 }
  0xbd   : > { %v164_v49 = vrot.slane %v163_v48, 4 }
  0xbf   : > { %v165_v50 = vadd.f32 %v164_v49, %v163_v48 }
  0xc1   : > { %v166_v51 = vrot.slane %v165_v50, 2 }
  0xc3   : > { %v167_v52 = vadd.f32 %v166_v51, %v165_v50 }
  0xc5   : > { %v168_v53 = vrot.slane %v167_v52, 1 }
  0xc7   : > { %v169_v54 = vadd.f32 %v168_v53, %v167_v52 }
  0xc9   : > { %234 = vpush %v169_v54 }
  0xfa   : > { %s235_s15 = spop %234 }
  0xfb   : > { %v171_v56 = vstv %s235_s15 }
  0xfc   : > { %v172_v57 = vadd.f32 %v171_v56, %v130_v55 }
  0xfe   : > { %174 = vst.msk [vmem:[#allocation2] sm:$0x1] %vm173_vm1, %v172_v57 }
  0xff   : > { %265 = shalt.err (!%p262_p12)
}
 0x100   : > { %237 = dma.vmem_to_hbm [thread:$0]  (%p240_p5), %s183_s14, 16, %s349_s1, [#allocation3]  }
 0x101   : > { %281 = dma.done.wait (%p240_p5), [#allocation3], 16  }
 0x102   : > { %283 = vsyncadd (%p240_p5), [#allocation3], 4294967280 }
 0x103 PF: > { %s12_s6 = sadd.s32 1, %s286_s6  }
 0x104   : > { %p9_p13 = scmp.ge.s32.totalorder %s12_s6, 4  }
 0x106   :  { %11 = sbr.rel (!%p9_p13) target bundleno = 1 (0x1), region = 55 }
 0x10b   :  { %195 = vsyncpa [#allocation3], 1 }
 0x10c   :  { %197 = vsyncpa [#allocation3 + $0x1], 1 }

</bundles_post_ra>
